<compile_context>
chip_gen: v6e
topology: v6e:2x2x1
jax: 0.10.0
libtpu: 0.0.40
codegen_flags: <defaults>
</compile_context>

<pallas_src>
import jax
import jax.numpy as jnp
from jax import lax
from jax.experimental import pallas as pl
from jax.experimental.pallas import tpu as pltpu

LANES = 128


def _vmem_budget_bytes():
    """Generation-aware VMEM budget (bytes), with headroom for the compiler."""
    try:
        phys = int(pltpu.get_tpu_info().vmem_capacity_bytes)
    except Exception:
        phys = 64 * 1024 * 1024   # most conservative recent generation (v7x)
    # Leave 25% headroom for compiler-internal scratch / spills.
    return min((phys * 3) // 4, 96 * 1024 * 1024)


def _vmem_tile_bytes(shape, itemsize):
    """Rough physically-padded VMEM footprint of an array ((8,128) tiling)."""
    s = (1,) * max(0, 2 - len(shape)) + tuple(int(d) for d in shape)
    minor = pl.cdiv(s[-1], LANES) * LANES
    second = pl.cdiv(s[-2], 8) * 8
    lead = 1
    for d in s[:-2]:
        lead *= d
    return lead * second * minor * itemsize


# ---------------------------------------------------------------------------
# Fused Conv3d + BatchNorm3d(train) + ReLU
# ---------------------------------------------------------------------------
def conv3d_bn_relu(x_ncdhw, weight, bias, gamma, beta, *, stride=1,
                   padding=0, eps=1e-3):
    """Forward of Conv3d(+bias) -> BatchNorm3d (train-mode stats) -> ReLU.

    `bias` is accepted for API parity but never added: a per-channel constant
    added before train-mode BatchNorm is exactly cancelled by the batch-mean
    subtraction, so the module output is unchanged (up to fp rounding).
    BatchNorm running-stat buffers are not modeled (they do not affect the
    forward output).
    """
    del bias  # provably cancelled by train-mode BN

    if isinstance(stride, int):
        stride = (stride,) * 3
    if isinstance(padding, int):
        padding = (padding,) * 3
    sd, sh, sw = stride
    pd, ph, pw = padding

    N, Cin, D, H, W = x_ncdhw.shape
    Cout, _, Kd, Kh, Kw = weight.shape

    Do = (D + 2 * pd - Kd) // sd + 1
    Ho = (H + 2 * ph - Kh) // sh + 1
    Wo = (W + 2 * pw - Kw) // sw + 1
    Dp, Hp, Wp = D + 2 * pd, H + 2 * ph, W + 2 * pw

    NR = N * Do * Ho                     # GEMM rows (one per (n, do, ho))
    LN = Wo * Cout                       # output lanes (128 here -> lane-dense)
    K0 = Wp * Cin                        # raw contraction length per (kd,kh) tap
    KP = pl.cdiv(K0, LANES) * LANES      # per-tap segment, padded to 128 lanes
    KT = Kd * Kh * KP                    # staged (concatenated) contraction
    n_per_ch = N * Do * Ho * Wo          # elements per channel for batch stats
    inv_m = 1.0 / float(n_per_ch)

    # ---- input packing: NCDHW -> padded (N, Dp, Hp, KP) bf16 ---------------
    x = jnp.transpose(x_ncdhw, (0, 2, 3, 4, 1))            # NDHWC
    x = jnp.pad(x, ((0, 0), (pd, pd), (ph, ph), (pw, pw), (0, 0)))
    x = x.reshape(N, Dp, Hp, K0)
    x = jnp.pad(x, ((0, 0), (0, 0), (0, 0), (0, KP - K0)))
    x = x.astype(jnp.bfloat16)

    # ---- block-Toeplitz weight slab: single (KT, LN) matrix ----------------
    # T[(kd*Kh+kh)*KP + wp*Cin + c, wo*Cout + co] = W[co, c, kd, kh, wp - wo*sw]
    # (zero outside the kernel window and in the KP-K0 pad lanes), so all
    # Kd*Kh taps, the Kw taps and the Cin contraction collapse into ONE matmul
    # whose output comes out (wo, co)-packed and 128-lane dense.
    w_t = jnp.transpose(weight, (2, 3, 4, 1, 0)).astype(jnp.float32)  # (Kd,Kh,Kw,Cin,Cout)
    ind = (jnp.arange(Wp)[None, :, None] ==
           (jnp.arange(Wo)[None, None, :] * sw +
            jnp.arange(Kw)[:, None, None])).astype(jnp.float32)       # (Kw,Wp,Wo)
    wt = jnp.einsum('abkco,kpw->abpcwo', w_t, ind)     # (Kd,Kh,Wp,Cin,Wo,Cout)
    wt = wt.reshape(Kd * Kh, K0, LN)
    wt = jnp.pad(wt, ((0, 0), (0, KP - K0), (0, 0)))   # zero rows under x's pad lanes
    wt = wt.reshape(KT, LN).astype(jnp.bfloat16)

    # ---- per-channel fold matrix + lane-tiled BN parameters ----------------
    # gsum[i, j] = 1 if lanes i, j belong to the same channel: one small MXU
    # dot both reduces the per-(wo, co) sums across wo and re-broadcasts the
    # per-channel totals back to all LN lanes.
    lane = jnp.arange(LN)
    gsum = (lane[:, None] % Cout == lane[None, :] % Cout).astype(jnp.float32)
    gamma_t = jnp.tile(gamma.astype(jnp.float32), Wo).reshape(1, LN)
    beta_t = jnp.tile(beta.astype(jnp.float32), Wo).reshape(1, LN)

    taps = [(kd, kh) for kd in range(Kd) for kh in range(Kh)]

    def kernel(x_ref, wt_ref, gsum_ref, gamma_ref, beta_ref, o_ref, lhs_ref):
        # --- stage the implicit-im2col lhs ONCE (aligned 128-wide stores) ---
        for t, (kd, kh) in enumerate(taps):
            d_idx = pl.ds(kd, Do) if sd == 1 else pl.ds(kd, Do, stride=sd)
            h_idx = pl.ds(kh, Ho) if sh == 1 else pl.ds(kh, Ho, stride=sh)
            # TODO(synk): strided pl.ds on the D/H axes (stride > 1) is
            # untested; the demo module config uses stride=1.
            lhs_ref[:, pl.ds(t * KP, KP)] = (
                x_ref[:, d_idx, h_idx, :].reshape(NR, KP))

        # --- conv: ONE wide MXU dot, f32 accumulation in the MXU result path
        conv = jnp.dot(lhs_ref[...], wt_ref[...],
                       preferred_element_type=jnp.float32)       # (NR, LN) f32

        # --- train-mode BatchNorm batch stats (centered two-pass) -----------
        s1 = jnp.sum(conv, axis=0, keepdims=True)                # (1, LN)
        mean = jnp.dot(s1, gsum_ref[...],
                       preferred_element_type=jnp.float32) * inv_m
        cen = conv - mean
        s2 = jnp.sum(cen * cen, axis=0, keepdims=True)
        var = jnp.dot(s2, gsum_ref[...],
                      preferred_element_type=jnp.float32) * inv_m
        scale = gamma_ref[...] * lax.rsqrt(var + eps)
        shift = beta_ref[...] - mean * scale

        # --- normalize + affine + ReLU, 128-lane-dense store ----------------
        o_ref[...] = jnp.maximum(conv * scale + shift, 0.0)

    # ---- generation-aware VMEM budgeting -----------------------------------
    vmem_need = (
        _vmem_tile_bytes(x.shape, 2)            # padded input volume (bf16)
        + _vmem_tile_bytes(wt.shape, 2)         # block-Toeplitz weight slab
        + _vmem_tile_bytes(gsum.shape, 4)       # channel-fold matrix
        + 2 * _vmem_tile_bytes(gamma_t.shape, 4)
        + _vmem_tile_bytes((NR, KT), 2)         # staged lhs scratch (bf16)
        + _vmem_tile_bytes((NR, LN), 4)         # output tile (f32)
        + 3 * NR * LN * 4                       # f32 temporaries (conv/cen/epilogue)
        + NR * KP * 2                           # per-tap slice relayout temp
    )
    budget = _vmem_budget_bytes()
    # TODO(synk): fall back to a row-tiled two-pass pipeline (conv+partial
    # stats, then combine + bn+relu) with a "parallel" NR grid for production
    # shapes that exceed the per-chip VMEM budget / need both v7x TensorCores.
    assert vmem_need < budget, (vmem_need, budget)
    vmem_limit = min(budget, max(32 * 1024 * 1024, int(vmem_need) * 2))

    out = pl.pallas_call(
        kernel,
        out_shape=jax.ShapeDtypeStruct((NR, LN), jnp.float32),
        in_specs=[pl.BlockSpec(memory_space=pltpu.MemorySpace.VMEM)] * 5,
        out_specs=pl.BlockSpec(memory_space=pltpu.MemorySpace.VMEM),
        scratch_shapes=[pltpu.VMEM((NR, KT), jnp.bfloat16)],   # staged lhs
        compiler_params=pltpu.CompilerParams(vmem_limit_bytes=vmem_limit),
    )(x, wt, gsum, gamma_t, beta_t)

    # (N*Do*Ho, Wo*Cout) -> NCDHW (kept only for PyTorch layout parity; drop
    # this wrapper-side transpose and keep channels-last / (NR, LN) if the
    # surrounding model can consume it -- it is the lane-sparse part).
    out = out.reshape(N, Do, Ho, Wo, Cout)
    return jnp.transpose(out, (0, 4, 1, 2, 3))


# ---------------------------------------------------------------------------
# Pure-JAX reference (exact PyTorch-module semantics, all f32)
# ---------------------------------------------------------------------------
def _reference(x, weight, bias, gamma, beta, *, stride, padding, eps=1e-3):
    s = (stride,) * 3 if isinstance(stride, int) else stride
    p = (padding,) * 3 if isinstance(padding, int) else padding
    conv = lax.conv_general_dilated(
        x, weight, window_strides=s, padding=[(pi, pi) for pi in p],
        dimension_numbers=("NCDHW", "OIDHW", "NCDHW"))
    conv = conv + bias.reshape(1, -1, 1, 1, 1)
    mean = jnp.mean(conv, axis=(0, 2, 3, 4), keepdims=True)
    var = jnp.mean((conv - mean) ** 2, axis=(0, 2, 3, 4), keepdims=True)
    xn = (conv - mean) * lax.rsqrt(var + eps)
    xn = xn * gamma.reshape(1, -1, 1, 1, 1) + beta.reshape(1, -1, 1, 1, 1)
    return jnp.maximum(xn, 0.0)


if __name__ == "__main__":
    # Module config: Conv3d(in=4, out=8, kernel_size=3, padding=1, stride=1)
    N, Cin, Cout = 2, 4, 8
    D, H, W = 8, 16, 16
    Kd = Kh = Kw = 3
    stride, padding = 1, 1

    key = jax.random.PRNGKey(0)
    k_x, k_w, k_b = jax.random.split(key, 3)

    x = jax.random.normal(k_x, (N, Cin, D, H, W), dtype=jnp.float32)
    weight = 0.1 * jax.random.normal(k_w, (Cout, Cin, Kd, Kh, Kw),
                                     dtype=jnp.float32)
    bias = 0.1 * jax.random.normal(k_b, (Cout,), dtype=jnp.float32)
    gamma = jnp.ones((Cout,), jnp.float32)   # BatchNorm3d default init
    beta = jnp.zeros((Cout,), jnp.float32)   # BatchNorm3d default init

    fwd = jax.jit(lambda xx, ww, bb, gg, be: conv3d_bn_relu(
        xx, ww, bb, gg, be, stride=stride, padding=padding, eps=1e-3))
    out = jax.block_until_ready(fwd(x, weight, bias, gamma, beta))

    ref = _reference(x, weight, bias, gamma, beta,
                     stride=stride, padding=padding, eps=1e-3)
    assert out.shape == ref.shape, (out.shape, ref.shape)
    max_err = float(jnp.max(jnp.abs(out - ref)))
    # bf16 MXU operands introduce ~5e-3 worst-case deviation from the all-f32
    # reference at these magnitudes; tolerance sized for that.
    assert jnp.allclose(out, ref, atol=2e-2, rtol=2e-2), max_err

    print("KERNEL_OK")
</pallas_src>

<mosaic_0001>
module attributes {stable_mosaic.version = 11 : i64} {
  func.func @kernel(%arg0: memref<2x10x18x128xbf16, #tpu.memory_space<vmem>>, %arg1: memref<1152x128xbf16, #tpu.memory_space<vmem>>, %arg2: memref<128x128xf32, #tpu.memory_space<vmem>>, %arg3: memref<1x128xf32, #tpu.memory_space<vmem>>, %arg4: memref<1x128xf32, #tpu.memory_space<vmem>>, %arg5: memref<256x128xf32, #tpu.memory_space<vmem>>, %arg6: memref<256x1152xbf16, #tpu.memory_space<vmem>>) attributes {dimension_semantics = [], scalar_prefetch = 0 : i64, scratch_operands = 1 : i64, tpu.core_type = #tpu.core_type<tc>} {
    %c0 = arith.constant 0 : index
    %c0_0 = arith.constant 0 : index
    %c0_1 = arith.constant 0 : index
    %c0_2 = arith.constant 0 : index
    %0 = vector.load %arg0[%c0, %c0_0, %c0_1, %c0_2] : memref<2x10x18x128xbf16, #tpu.memory_space<vmem>>, vector<2x8x16x128xbf16>
    %1 = vector.shape_cast %0 : vector<2x8x16x128xbf16> to vector<256x128xbf16>
    %c0_3 = arith.constant 0 : index
    %c0_4 = arith.constant 0 : index
    %2 = vector.load %arg6[%c0_3, %c0_4] : memref<256x1152xbf16, #tpu.memory_space<vmem>>, vector<256x128xbf16>
    tpu.vector_store %arg6[%c0_3, %c0_4], %1 {strides = array<i32>} : memref<256x1152xbf16, #tpu.memory_space<vmem>>, vector<256x128xbf16>,
    %c0_5 = arith.constant 0 : index
    %c0_6 = arith.constant 0 : index
    %c1 = arith.constant 1 : index
    %c0_7 = arith.constant 0 : index
    %3 = vector.load %arg0[%c0_5, %c0_6, %c1, %c0_7] : memref<2x10x18x128xbf16, #tpu.memory_space<vmem>>, vector<2x8x16x128xbf16>
    %4 = vector.shape_cast %3 : vector<2x8x16x128xbf16> to vector<256x128xbf16>
    %c0_8 = arith.constant 0 : index
    %c128 = arith.constant 128 : index
    %5 = vector.load %arg6[%c0_8, %c128] : memref<256x1152xbf16, #tpu.memory_space<vmem>>, vector<256x128xbf16>
    tpu.vector_store %arg6[%c0_8, %c128], %4 {strides = array<i32>} : memref<256x1152xbf16, #tpu.memory_space<vmem>>, vector<256x128xbf16>,
    %c0_9 = arith.constant 0 : index
    %c0_10 = arith.constant 0 : index
    %c2 = arith.constant 2 : index
    %c0_11 = arith.constant 0 : index
    %6 = vector.load %arg0[%c0_9, %c0_10, %c2, %c0_11] : memref<2x10x18x128xbf16, #tpu.memory_space<vmem>>, vector<2x8x16x128xbf16>
    %7 = vector.shape_cast %6 : vector<2x8x16x128xbf16> to vector<256x128xbf16>
    %c0_12 = arith.constant 0 : index
    %c256 = arith.constant 256 : index
    %8 = vector.load %arg6[%c0_12, %c256] : memref<256x1152xbf16, #tpu.memory_space<vmem>>, vector<256x128xbf16>
    tpu.vector_store %arg6[%c0_12, %c256], %7 {strides = array<i32>} : memref<256x1152xbf16, #tpu.memory_space<vmem>>, vector<256x128xbf16>,
    %c0_13 = arith.constant 0 : index
    %c1_14 = arith.constant 1 : index
    %c0_15 = arith.constant 0 : index
    %c0_16 = arith.constant 0 : index
    %9 = vector.load %arg0[%c0_13, %c1_14, %c0_15, %c0_16] : memref<2x10x18x128xbf16, #tpu.memory_space<vmem>>, vector<2x8x16x128xbf16>
    %10 = vector.shape_cast %9 : vector<2x8x16x128xbf16> to vector<256x128xbf16>
    %c0_17 = arith.constant 0 : index
    %c384 = arith.constant 384 : index
    %11 = vector.load %arg6[%c0_17, %c384] : memref<256x1152xbf16, #tpu.memory_space<vmem>>, vector<256x128xbf16>
    tpu.vector_store %arg6[%c0_17, %c384], %10 {strides = array<i32>} : memref<256x1152xbf16, #tpu.memory_space<vmem>>, vector<256x128xbf16>,
    %c0_18 = arith.constant 0 : index
    %c1_19 = arith.constant 1 : index
    %c1_20 = arith.constant 1 : index
    %c0_21 = arith.constant 0 : index
    %12 = vector.load %arg0[%c0_18, %c1_19, %c1_20, %c0_21] : memref<2x10x18x128xbf16, #tpu.memory_space<vmem>>, vector<2x8x16x128xbf16>
    %13 = vector.shape_cast %12 : vector<2x8x16x128xbf16> to vector<256x128xbf16>
    %c0_22 = arith.constant 0 : index
    %c512 = arith.constant 512 : index
    %14 = vector.load %arg6[%c0_22, %c512] : memref<256x1152xbf16, #tpu.memory_space<vmem>>, vector<256x128xbf16>
    tpu.vector_store %arg6[%c0_22, %c512], %13 {strides = array<i32>} : memref<256x1152xbf16, #tpu.memory_space<vmem>>, vector<256x128xbf16>,
    %c0_23 = arith.constant 0 : index
    %c1_24 = arith.constant 1 : index
    %c2_25 = arith.constant 2 : index
    %c0_26 = arith.constant 0 : index
    %15 = vector.load %arg0[%c0_23, %c1_24, %c2_25, %c0_26] : memref<2x10x18x128xbf16, #tpu.memory_space<vmem>>, vector<2x8x16x128xbf16>
    %16 = vector.shape_cast %15 : vector<2x8x16x128xbf16> to vector<256x128xbf16>
    %c0_27 = arith.constant 0 : index
    %c640 = arith.constant 640 : index
    %17 = vector.load %arg6[%c0_27, %c640] : memref<256x1152xbf16, #tpu.memory_space<vmem>>, vector<256x128xbf16>
    tpu.vector_store %arg6[%c0_27, %c640], %16 {strides = array<i32>} : memref<256x1152xbf16, #tpu.memory_space<vmem>>, vector<256x128xbf16>,
    %c0_28 = arith.constant 0 : index
    %c2_29 = arith.constant 2 : index
    %c0_30 = arith.constant 0 : index
    %c0_31 = arith.constant 0 : index
    %18 = vector.load %arg0[%c0_28, %c2_29, %c0_30, %c0_31] : memref<2x10x18x128xbf16, #tpu.memory_space<vmem>>, vector<2x8x16x128xbf16>
    %19 = vector.shape_cast %18 : vector<2x8x16x128xbf16> to vector<256x128xbf16>
    %c0_32 = arith.constant 0 : index
    %c768 = arith.constant 768 : index
    %20 = vector.load %arg6[%c0_32, %c768] : memref<256x1152xbf16, #tpu.memory_space<vmem>>, vector<256x128xbf16>
    tpu.vector_store %arg6[%c0_32, %c768], %19 {strides = array<i32>} : memref<256x1152xbf16, #tpu.memory_space<vmem>>, vector<256x128xbf16>,
    %c0_33 = arith.constant 0 : index
    %c2_34 = arith.constant 2 : index
    %c1_35 = arith.constant 1 : index
    %c0_36 = arith.constant 0 : index
    %21 = vector.load %arg0[%c0_33, %c2_34, %c1_35, %c0_36] : memref<2x10x18x128xbf16, #tpu.memory_space<vmem>>, vector<2x8x16x128xbf16>
    %22 = vector.shape_cast %21 : vector<2x8x16x128xbf16> to vector<256x128xbf16>
    %c0_37 = arith.constant 0 : index
    %c896 = arith.constant 896 : index
    %23 = vector.load %arg6[%c0_37, %c896] : memref<256x1152xbf16, #tpu.memory_space<vmem>>, vector<256x128xbf16>
    tpu.vector_store %arg6[%c0_37, %c896], %22 {strides = array<i32>} : memref<256x1152xbf16, #tpu.memory_space<vmem>>, vector<256x128xbf16>,
    %c0_38 = arith.constant 0 : index
    %c2_39 = arith.constant 2 : index
    %c2_40 = arith.constant 2 : index
    %c0_41 = arith.constant 0 : index
    %24 = vector.load %arg0[%c0_38, %c2_39, %c2_40, %c0_41] : memref<2x10x18x128xbf16, #tpu.memory_space<vmem>>, vector<2x8x16x128xbf16>
    %25 = vector.shape_cast %24 : vector<2x8x16x128xbf16> to vector<256x128xbf16>
    %c0_42 = arith.constant 0 : index
    %c1024 = arith.constant 1024 : index
    %26 = vector.load %arg6[%c0_42, %c1024] : memref<256x1152xbf16, #tpu.memory_space<vmem>>, vector<256x128xbf16>
    tpu.vector_store %arg6[%c0_42, %c1024], %25 {strides = array<i32>} : memref<256x1152xbf16, #tpu.memory_space<vmem>>, vector<256x128xbf16>,
    %c0_43 = arith.constant 0 : index
    %c0_44 = arith.constant 0 : index
    %27 = vector.load %arg6[%c0_43, %c0_44] : memref<256x1152xbf16, #tpu.memory_space<vmem>>, vector<256x1152xbf16>
    %c0_45 = arith.constant 0 : index
    %c0_46 = arith.constant 0 : index
    %28 = vector.load %arg1[%c0_45, %c0_46] : memref<1152x128xbf16, #tpu.memory_space<vmem>>, vector<1152x128xbf16>
    %cst = arith.constant dense<0.000000e+00> : vector<256x128xf32>
    %29 = tpu.matmul %27, %28, %cst {dimension_numbers = #tpu.dot_dimension_numbers<[1], [0], [0], [1], [0, 0, 1, 1], [], []>} : vector<256x1152xbf16>, vector<1152x128xbf16>, vector<256x128xf32> -> vector<256x128xf32>
    %cst_47 = arith.constant dense<0.000000e+00> : vector<128xf32>
    %30 = vector.multi_reduction <add>, %29, %cst_47 [0] : vector<256x128xf32> to vector<128xf32>
    %31 = vector.shape_cast %30 : vector<128xf32> to vector<1x128xf32>
    %c0_48 = arith.constant 0 : index
    %c0_49 = arith.constant 0 : index
    %32 = vector.load %arg2[%c0_48, %c0_49] : memref<128x128xf32, #tpu.memory_space<vmem>>, vector<128x128xf32>
    %cst_50 = arith.constant dense<0.000000e+00> : vector<1x128xf32>
    %33 = tpu.matmul %31, %32, %cst_50 {dimension_numbers = #tpu.dot_dimension_numbers<[1], [0], [0], [1], [0, 0, 1, 1], [], []>} : vector<1x128xf32>, vector<128x128xf32>, vector<1x128xf32> -> vector<1x128xf32>
    %cst_51 = arith.constant 2.44140625E-4 : f32
    %34 = vector.broadcast %cst_51 : f32 to vector<1x128xf32>
    %35 = arith.mulf %33, %34 : vector<1x128xf32>
    %36 = vector.broadcast %35 : vector<1x128xf32> to vector<256x128xf32>
    %37 = arith.subf %29, %36 : vector<256x128xf32>
    %38 = arith.mulf %37, %37 : vector<256x128xf32>
    %cst_52 = arith.constant dense<0.000000e+00> : vector<128xf32>
    %39 = vector.multi_reduction <add>, %38, %cst_52 [0] : vector<256x128xf32> to vector<128xf32>
    %40 = vector.shape_cast %39 : vector<128xf32> to vector<1x128xf32>
    %c0_53 = arith.constant 0 : index
    %c0_54 = arith.constant 0 : index
    %41 = vector.load %arg2[%c0_53, %c0_54] : memref<128x128xf32, #tpu.memory_space<vmem>>, vector<128x128xf32>
    %cst_55 = arith.constant dense<0.000000e+00> : vector<1x128xf32>
    %42 = tpu.matmul %40, %41, %cst_55 {dimension_numbers = #tpu.dot_dimension_numbers<[1], [0], [0], [1], [0, 0, 1, 1], [], []>} : vector<1x128xf32>, vector<128x128xf32>, vector<1x128xf32> -> vector<1x128xf32>
    %cst_56 = arith.constant 2.44140625E-4 : f32
    %43 = vector.broadcast %cst_56 : f32 to vector<1x128xf32>
    %44 = arith.mulf %42, %43 : vector<1x128xf32>
    %c0_57 = arith.constant 0 : index
    %c0_58 = arith.constant 0 : index
    %45 = vector.load %arg3[%c0_57, %c0_58] : memref<1x128xf32, #tpu.memory_space<vmem>>, vector<1x128xf32>
    %cst_59 = arith.constant 1.000000e-03 : f32
    %46 = vector.broadcast %cst_59 : f32 to vector<1x128xf32>
    %47 = arith.addf %44, %46 : vector<1x128xf32>
    %48 = math.rsqrt %47 : vector<1x128xf32>
    %49 = arith.mulf %45, %48 : vector<1x128xf32>
    %c0_60 = arith.constant 0 : index
    %c0_61 = arith.constant 0 : index
    %50 = vector.load %arg4[%c0_60, %c0_61] : memref<1x128xf32, #tpu.memory_space<vmem>>, vector<1x128xf32>
    %51 = arith.mulf %35, %49 : vector<1x128xf32>
    %52 = arith.subf %50, %51 : vector<1x128xf32>
    %53 = vector.broadcast %49 : vector<1x128xf32> to vector<256x128xf32>
    %54 = arith.mulf %29, %53 : vector<256x128xf32>
    %55 = vector.broadcast %52 : vector<1x128xf32> to vector<256x128xf32>
    %56 = arith.addf %54, %55 : vector<256x128xf32>
    %cst_62 = arith.constant 0.000000e+00 : f32
    %57 = vector.broadcast %cst_62 : f32 to vector<256x128xf32>
    %58 = arith.maximumf %56, %57 : vector<256x128xf32>
    %c0_63 = arith.constant 0 : index
    %c0_64 = arith.constant 0 : index
    %59 = vector.load %arg5[%c0_63, %c0_64] : memref<256x128xf32, #tpu.memory_space<vmem>>, vector<256x128xf32>
    tpu.vector_store %arg5[%c0_63, %c0_64], %58 {strides = array<i32>} : memref<256x128xf32, #tpu.memory_space<vmem>>, vector<256x128xf32>,
    return
  }
}

</mosaic_0001>

<bundles_post_ra>
// kernel: tile.13
= control target key start
LH: loop header
LB: loop body
LE: loop exit
PB: predicated region body
PF: predicated region fallthrough
CT: control target
= control target key end

     0   :  { %s28_s0 = inlined_call_operand.vmem [shape: f32[8], index: 0, kind: input, shape index: {}]   ;;  %s29_s1 = inlined_call_operand.vmem [shape: f32[16,8], index: 1, kind: output, shape index: {}]  }
   0x1   :  { %v4_v0 = vld [vmem:[%s28_s0] ss:$0 sm:$0xff] }
   0x2   :  { %5 = vst [vmem:[%s29_s1] sm:$0xff] %v4_v0  ;;  %8 = vst [vmem:[%s29_s1 + $0x8] sm:$0xff] %v4_v0 }

// kernel: tile.14
= control target key start
LH: loop header
LB: loop body
LE: loop exit
PB: predicated region body
PF: predicated region fallthrough
CT: control target
= control target key end

     0   :  { %s133_s10 = smov 120   ;;  %s134_s11 = smov 104   ;;  %vm3_vm0 = vcmask 64512   ;;  %vm9_vm1 = vcmask 1048512   ;;  %vm15_vm2 = vcmask 982912   ;;  %vm21_vm3 = vcmask 917312   ;;  %s209_s0 = inlined_call_operand.vmem [shape: f32[16,8], index: 0, kind: input, shape index: {}]   ;;  %s210_s1 = inlined_call_operand.vmem [shape: f32[1,128], index: 1, kind: output, shape index: {}]  }
   0x1   :  { %v103_v0 = vld [vmem:[%s209_s0 + $0xf] sm:$0x1]   ;;  %v105_v1 = vld [vmem:[%s209_s0 + $0xd] sm:$0x1]   ;;  %v104_v2 = vld [vmem:[%s209_s0 + $0xe] sm:$0x1]  }
   0x2   :  { %7 = vrot.lane.b32.xlu0 %v103_v0, %s133_s10  ;;  %19 = vrot.lane.b32.xlu1 %v105_v1, %s134_s11  ;;  %v106_v3 = vld [vmem:[%s209_s0 + $0xc] sm:$0x1]   ;;  %s135_s16 = smov 112   ;;  %s136_s17 = smov 96   ;;  %v107_v4 = vld [vmem:[%s209_s0 + $0xb] sm:$0x1]  }
   0x3   :  { %v108_v5 = vld [vmem:[%s209_s0 + $0xa] sm:$0x1]   ;;  %v2_v6 = vld [vmem:[%s209_s0] sm:$0x1]   ;;  %s137_s24 = smov 88   ;;  %s138_s25 = smov 80  }
   0x4   :  { %4 = vst.msk [vmem:[#allocation0] sm:$0x1] %vm3_vm0, %v2_v6   ;;  %v109_v7 = vld [vmem:[%s209_s0 + $0x9] sm:$0x1]   ;;  %v110_v8 = vld [vmem:[%s209_s0 + $0x8] sm:$0x1]  }
   0x5   :  { %s139_s30 = smov 72   ;;  %s140_s2 = smov 64   ;;  %v111_v9 = vld [vmem:[%s209_s0 + $0x7] sm:$0x1]   ;;  %v112_v10 = vld [vmem:[%s209_s0 + $0x6] sm:$0x1]  }
   0x6   :  { %13 = vrot.lane.b32.xlu0 %v104_v2, %s135_s16  ;;  %25 = vrot.lane.b32.xlu1 %v106_v3, %s136_s17  ;;  %s141_s7 = smov 56   ;;  %s142_s8 = smov 48   ;;  %v113_v11 = vld [vmem:[%s209_s0 + $0x5] sm:$0x1]   ;;  %v114_v12 = vld [vmem:[%s209_s0 + $0x4] sm:$0x1]  }
   0x7   :  { %s143_s13 = smov 40   ;;  %s144_s14 = smov 32   ;;  %v115_v13 = vld [vmem:[%s209_s0 + $0x3] sm:$0x1]   ;;  %v116_v14 = vld [vmem:[%s209_s0 + $0x2] sm:$0x1]  }
   0x8   :  { %s145_s19 = smov 24   ;;  %s146_s20 = smov 16   ;;  %v117_v15 = vld [vmem:[%s209_s0 + $0x1] sm:$0x1]   ;;  %vm27_vm4 = vcmask 851712   ;;  %vm33_vm5 = vcmask 786112  }
   0x9   :  { %s147_s0 = smov 8   ;;  %vm39_vm6 = vcmask 720512   ;;  %vm45_vm7 = vcmask 654912   ;;  %vm51_vm8 = vcmask 589312   ;;  %vm57_vm9 = vcmask 523712  }
   0xa   :  { %31 = vrot.lane.b32.xlu0 %v107_v4, %s137_s24  ;;  %37 = vrot.lane.b32.xlu1 %v108_v5, %s138_s25  ;;  %vm63_vm10 = vcmask 458112   ;;  %vm69_vm11 = vcmask 392512   ;;  %vm75_vm12 = vcmask 326912   ;;  %vm81_vm13 = vcmask 261312  }
   0xb   :  { %vm87_vm14 = vcmask 195712   ;;  %vm93_vm15 = vcmask 130112  }
   0xe   :  { %43 = vrot.lane.b32.xlu0 %v109_v7, %s139_s30  ;;  %49 = vrot.lane.b32.xlu1 %v110_v8, %s140_s2 }
  0x12   :  { %55 = vrot.lane.b32.xlu0 %v111_v9, %s141_s7  ;;  %61 = vrot.lane.b32.xlu1 %v112_v10, %s142_s8 }
  0x16   :  { %67 = vrot.lane.b32.xlu0 %v113_v11, %s143_s13  ;;  %73 = vrot.lane.b32.xlu1 %v114_v12, %s144_s14 }
  0x1a   :  { %79 = vrot.lane.b32.xlu0 %v115_v13, %s145_s19  ;;  %85 = vrot.lane.b32.xlu1 %v116_v14, %s146_s20 }
  0x1e   :  { %91 = vrot.lane.b32.xlu0 %v117_v15, %s147_s0 }
  0x74   :  { %v8_v16 = vpop.permute.xlu0 %7   ;;  %v20_v17 = vpop.permute.xlu1 %19  }
  0x75   :  { %10 = vst.msk [vmem:[#allocation0] sm:$0x1] %vm9_vm1, %v8_v16  }
  0x78   :  { %v14_v18 = vpop.permute.xlu0 %13   ;;  %v26_v19 = vpop.permute.xlu1 %25  }
  0x79   :  { %16 = vst.msk [vmem:[#allocation0] sm:$0x1] %vm15_vm2, %v14_v18  }
  0x7a   :  { %22 = vst.msk [vmem:[#allocation0] sm:$0x1] %vm21_vm3, %v20_v17  }
  0x7b   :  { %28 = vst.msk [vmem:[#allocation0] sm:$0x1] %vm27_vm4, %v26_v19  }
  0x7c   :  { %v32_v20 = vpop.permute.xlu0 %31   ;;  %v38_v21 = vpop.permute.xlu1 %37  }
  0x7d   :  { %34 = vst.msk [vmem:[#allocation0] sm:$0x1] %vm33_vm5, %v32_v20  }
  0x7e   :  { %40 = vst.msk [vmem:[#allocation0] sm:$0x1] %vm39_vm6, %v38_v21  }
  0x80   :  { %v44_v22 = vpop.permute.xlu0 %43   ;;  %v50_v23 = vpop.permute.xlu1 %49  }
  0x81   :  { %46 = vst.msk [vmem:[#allocation0] sm:$0x1] %vm45_vm7, %v44_v22  }
  0x82   :  { %52 = vst.msk [vmem:[#allocation0] sm:$0x1] %vm51_vm8, %v50_v23  }
  0x84   :  { %v56_v24 = vpop.permute.xlu0 %55   ;;  %v62_v25 = vpop.permute.xlu1 %61  }
  0x85   :  { %58 = vst.msk [vmem:[#allocation0] sm:$0x1] %vm57_vm9, %v56_v24  }
  0x86   :  { %64 = vst.msk [vmem:[#allocation0] sm:$0x1] %vm63_vm10, %v62_v25  }
  0x88   :  { %v68_v26 = vpop.permute.xlu0 %67   ;;  %v74_v27 = vpop.permute.xlu1 %73  }
  0x89   :  { %70 = vst.msk [vmem:[#allocation0] sm:$0x1] %vm69_vm11, %v68_v26  }
  0x8a   :  { %76 = vst.msk [vmem:[#allocation0] sm:$0x1] %vm75_vm12, %v74_v27  }
  0x8c   :  { %v80_v28 = vpop.permute.xlu0 %79   ;;  %v86_v29 = vpop.permute.xlu1 %85  }
  0x8d   :  { %82 = vst.msk [vmem:[#allocation0] sm:$0x1] %vm81_vm13, %v80_v28  }
  0x8e   :  { %88 = vst.msk [vmem:[#allocation0] sm:$0x1] %vm87_vm14, %v86_v29  }
  0x90   :  { %v92_v30 = vpop.permute.xlu0 %91  }
  0x91   :  { %94 = vst.msk [vmem:[#allocation0] sm:$0x1] %vm93_vm15, %v92_v30  }
  0x98   :  { %v99_v31 = vld [vmem:[#allocation0] sm:$0x1] }
  0x99   :  { %102 = vst [vmem:[%s210_s1] sm:$0x1] %v99_v31 }

// kernel: _lambda_.1
= control target key start
LH: loop header
LB: loop body
LE: loop exit
PB: predicated region body
PF: predicated region fallthrough
CT: control target
= control target key end

     0   :  { %vm133_vm0 = vsmask.f32 3328  ;;  %vm134_vm1 = vsmask.f32 7440  ;;  %vm680_vm2 = vcmask 1042432   ;;  %vm681_vm3 = vcmask 1046532   ;;  %s9537_s1 = inlined_call_operand.vmem [shape: bf16[1152,128], index: 1, kind: input, shape index: {}]   ;;  %s9538_s0 = inlined_call_operand.vmem [shape: bf16[2,10,18,128], index: 0, kind: input, shape index: {}]   ;;  %s9539_s2 = inlined_call_operand.vmem [shape: f32[128,128], index: 2, kind: input, shape index: {}]   ;;  %s9540_s3 = inlined_call_operand.vmem [shape: f32[1,128], index: 3, kind: input, shape index: {}]   ;;  %s9541_s4 = inlined_call_operand.vmem [shape: f32[1,128], index: 4, kind: input, shape index: {}]   ;;  %s9542_s5 = inlined_call_operand.vmem [shape: f32[256,128], index: 5, kind: output, shape index: {}]  }
   0x1   :  { %v6399_v0 = vld [vmem:[%s9537_s1 + $0x78] sm:$0xff]   ;;  %v6403_v4 = vld [vmem:[%s9537_s1 + $0x70] sm:$0xff]   ;;  %v6407_v8 = vld [vmem:[%s9537_s1 + $0x68] sm:$0xff]   ;;  %vm6667_vm6 = vmmov 0  }
   0x2   :  { %v6400_v1 = vld [vmem:[%s9537_s1 + $0xf8] sm:$0xff]   ;;  %5773 = vmatprep.subr.bf16.mxu0 %v6399_v0  ;;  %v6404_v5 = vld [vmem:[%s9537_s1 + $0xf0] sm:$0xff]   ;;  %v6408_v9 = vld [vmem:[%s9537_s1 + $0xe8] sm:$0xff]  }
   0x3   :  { %v6401_v2 = vld [vmem:[%s9537_s1 + $0x38] sm:$0xff]   ;;  %5885 = vmatprep.subr.bf16.mxu1 %v6400_v1  ;;  %v6405_v6 = vld [vmem:[%s9537_s1 + $0x30] sm:$0xff]   ;;  %v6409_v10 = vld [vmem:[%s9537_s1 + $0x28] sm:$0xff]  }
   0x4   :  { %v6402_v3 = vld [vmem:[%s9537_s1 + $0xb8] sm:$0xff]   ;;  %5774 = vmatpush3.bf16.msra.mxu0 %v6401_v2  ;;  %v6406_v7 = vld [vmem:[%s9537_s1 + $0xb0] sm:$0xff]   ;;  %v6410_v11 = vld [vmem:[%s9537_s1 + $0xa8] sm:$0xff]  }
   0x5   :  { %5886 = vmatpush3.bf16.msra.mxu1 %v6402_v3  ;;  %5775 = vmatprep.subr.bf16.mxu0 %v6403_v4  ;;  %v6411_v12 = vld [vmem:[%s9537_s1 + $0x60] sm:$0xff]   ;;  %v6415_v16 = vld [vmem:[%s9537_s1 + $0x58] sm:$0xff]   ;;  %v6419_v20 = vld [vmem:[%s9537_s1 + $0x50] sm:$0xff]  }
   0x6   :  { %5887 = vmatprep.subr.bf16.mxu1 %v6404_v5  ;;  %v6412_v13 = vld [vmem:[%s9537_s1 + $0xe0] sm:$0xff]   ;;  %v6416_v17 = vld [vmem:[%s9537_s1 + $0xd8] sm:$0xff]   ;;  %v6420_v21 = vld [vmem:[%s9537_s1 + $0xd0] sm:$0xff]  }
   0x7   :  { %v6413_v14 = vld [vmem:[%s9537_s1 + $0x20] sm:$0xff]   ;;  %v6417_v18 = vld [vmem:[%s9537_s1 + $0x18] sm:$0xff]   ;;  %v6421_v22 = vld [vmem:[%s9537_s1 + $0x10] sm:$0xff]  }
   0x8   :  { %5776 = vmatpush3.bf16.msra.mxu0 %v6405_v6  ;;  %v6414_v15 = vld [vmem:[%s9537_s1 + $0xa0] sm:$0xff]   ;;  %v6418_v19 = vld [vmem:[%s9537_s1 + $0x98] sm:$0xff]   ;;  %v6422_v23 = vld [vmem:[%s9537_s1 + $0x90] sm:$0xff]  }
   0x9   :  { %5888 = vmatpush3.bf16.msra.mxu1 %v6406_v7  ;;  %5777 = vmatprep.subr.bf16.mxu0 %v6407_v8  ;;  %v6423_v24 = vld [vmem:[%s9537_s1 + $0x48] sm:$0xff]   ;;  %v6427_v28 = vld [vmem:[%s9537_s1 + $0x40] sm:$0xff]   ;;  %v6437_v43 = vld [vmem:[%s9537_s1 + $0x178] sm:$0xff]  }
   0xa   :  { %5889 = vmatprep.subr.bf16.mxu1 %v6408_v9  ;;  %v6424_v25 = vld [vmem:[%s9537_s1 + $0xc8] sm:$0xff]   ;;  %v6428_v29 = vld [vmem:[%s9537_s1 + $0xc0] sm:$0xff]   ;;  %vm6823_vm4 = vmor %vm680_vm2, %vm681_vm3 }
   0xb   :  { %v6425_v26 = vld [vmem:[%s9537_s1 + $0x8] sm:$0xff]   ;;  %v6429_v30 = vld [vmem:[%s9537_s1] sm:$0xff]   ;;  %vm6832_vm5 = vmor %vm133_vm0, %vm134_vm1 }
   0xc   :  { %5778 = vmatpush3.bf16.msra.mxu0 %v6409_v10  ;;  %v6426_v27 = vld [vmem:[%s9537_s1 + $0x88] sm:$0xff]   ;;  %v6430_v31 = vld [vmem:[%s9537_s1 + $0x80] sm:$0xff]   ;;  %v5270_v58 = vld [vmem:[%s9538_s0 + $0x10] sm:$0xf] }
   0xd   :  { %5890 = vmatpush3.bf16.msra.mxu1 %v6410_v11  ;;  %5779 = vmatprep.subr.bf16.mxu0 %v6411_v12  ;;  %v21_v32 = vld [vmem:[%s9538_s0] sm:$0xf]  ;;  %v22_v33 = vld [vmem:[%s9538_s0 + $0x4] sm:$0xf]  ;;  %v87_v36 = vld [vmem:[%s9538_s0 + $0x8] sm:$0x1] }
   0xe   :  { %5891 = vmatprep.subr.bf16.mxu1 %v6412_v13  ;;  %v85_v34 = vld [vmem:[%s9538_s0] sm:$0xf]  ;;  %53 = vst [vmem:[#allocation2] sm:$0xf] %v21_v32  ;;  %54 = vst [vmem:[#allocation2 + $0x24] sm:$0xf] %v22_v33 }
   0xf   :  { %v86_v35 = vld [vmem:[%s9538_s0 + $0x4] sm:$0xf]  ;;  %v137_v37 = vshrl.u32 %v85_v34, 16  ;;  %v140_v38 = vshll.u32 %v85_v34, 16  ;;  %v156_v41 = vshll.u32 %v87_v36, 16 }
  0x10   :  { %5780 = vmatpush3.bf16.msra.mxu0 %v6413_v14  ;;  %v146_v39 = vshll.u32 %v86_v35, 16  ;;  %v150_v40 = vshrl.u32 %v86_v35, 16  ;;  %v584_v42 = vld [vmem:[%s9538_s0] sm:$0xe]  ;;  %v585_v46 = vld [vmem:[%s9538_s0 + $0x4] sm:$0xf] }
  0x11   :  { %5892 = vmatpush3.bf16.msra.mxu1 %v6414_v15  ;;  %5781 = vmatprep.subr.bf16.mxu0 %v6415_v16  ;;  %v139_v44 = vrot.slane %v137_v37, 4  ;;  %v142_v45 = vrot.slane %v140_v38, 5  ;;  %v586_v47 = vld [vmem:[%s9538_s0 + $0x8] sm:$0x1]  ;;  %v158_v50 = vrot.slane %v156_v41, 5  ;;  %v5253_v52 = vrot.slane %v584_v42, 9 }
  0x12   :  { %5893 = vmatprep.subr.bf16.mxu1 %v6416_v17  ;;  %v148_v48 = vrot.slane %v146_v39, 5  ;;  %v152_v49 = vrot.slane %v150_v40, 4  ;;  %v5269_v53 = vld [vmem:[%s9538_s0 + $0xc] sm:$0xf]  ;;  %v685_v56 = vrot.slane %v585_v46, 5  ;;  %v688_v57 = vrot.slane %v586_v47, 5 }
  0x13   :  { %v143_v55 = vor.u32 %v142_v45, %v139_v44  ;;  %892 = vst [vmem:[#allocation2 + $0xc] sm:$0xf] %v5269_v53  ;;  %893 = vst [vmem:[#allocation2 + $0x30] sm:$0xf] %v5270_v58  ;;  %v23_v63 = vld [vmem:[%s9538_s0 + $0xc] sm:$0xf] }
  0x14   :  { %5782 = vmatpush3.bf16.msra.mxu0 %v6417_v18  ;;  %v153_v59 = vor.u32 %v152_v49, %v148_v48  ;;  %v686_v61 = vsel %vm6823_vm4, %v5253_v52, %v685_v56  ;;  %v687_v62 = vrot.slane %v685_v56, 4  ;;  %v24_v1 = vld [vmem:[%s9538_s0 + $0x10] sm:$0xf]  ;;  %55 = vst [vmem:[#allocation2 + $0x48] sm:$0xf] %v23_v63  ;;  %v6438_v37 = vld [vmem:[%s9537_s1 + $0x138] sm:$0xff]  }
  0x15   :  { %5894 = vmatpush3.bf16.msra.mxu1 %v6418_v19  ;;  %5783 = vmatprep.subr.bf16.mxu0 %v6419_v20  ;;  %v144_v60 = vrot.slane %v143_v55, 4  ;;  %827 = vst [vmem:[#allocation2 + $0x8] sm:$0xf] %v686_v61  ;;  %v88_v2 = vld [vmem:[%s9538_s0 + $0xc] sm:$0xf] }
  0x16   :  { %5895 = vmatprep.subr.bf16.mxu1 %v6420_v21  ;;  %v154_v0 = vrot.slane %v153_v59, 4  ;;  %v689_v4 = vsel %vm6823_vm4, %v687_v62, %v688_v57  ;;  %56 = vst [vmem:[#allocation2 + $0x6c] sm:$0xf] %v24_v1  ;;  %v89_v5 = vld [vmem:[%s9538_s0 + $0x10] sm:$0xf]  ;;  %v161_v7 = vshrl.u32 %v88_v2, 16 }
  0x17   :  { %v149_v3 = vsel %vm6832_vm5, %v144_v60, %v148_v48  ;;  %v90_v6 = vld [vmem:[%s9538_s0 + $0x14] sm:$0x1]  ;;  %v164_v8 = vshll.u32 %v88_v2, 16  ;;  %828 = vst [vmem:[#allocation2 + $0x2c] sm:$0xf] %v689_v4  ;;  %v170_v10 = vshll.u32 %v89_v5, 16 }
  0x18   :  { %5784 = vmatpush3.bf16.msra.mxu0 %v6421_v22  ;;  %v159_v9 = vsel %vm6832_vm5, %v154_v0, %v158_v50  ;;  %552 = vst [vmem:[#allocation2 + $0x4] sm:$0xf] %v149_v3  ;;  %v174_v11 = vshrl.u32 %v89_v5, 16  ;;  %v180_v12 = vshll.u32 %v90_v6, 16  ;;  %v587_v13 = vld [vmem:[%s9538_s0 + $0xc] sm:$0xe] }
  0x19   :  { %5896 = vmatpush3.bf16.msra.mxu1 %v6422_v23  ;;  %5785 = vmatprep.subr.bf16.mxu0 %v6423_v24  ;;  %553 = vst [vmem:[#allocation2 + $0x28] sm:$0xf] %v159_v9  ;;  %v163_v14 = vrot.slane %v161_v7, 4  ;;  %v166_v15 = vrot.slane %v164_v8, 5  ;;  %v588_v16 = vld [vmem:[%s9538_s0 + $0x10] sm:$0xf] }
  0x1a   :  { %5897 = vmatprep.subr.bf16.mxu1 %v6424_v25  ;;  %v589_v17 = vld [vmem:[%s9538_s0 + $0x14] sm:$0x1]  ;;  %v172_v18 = vrot.slane %v170_v10, 5  ;;  %v176_v19 = vrot.slane %v174_v11, 4  ;;  %v182_v20 = vrot.slane %v180_v12, 5  ;;  %v5254_v21 = vrot.slane %v587_v13, 9 }
  0x1b   :  { %v5271_v22 = vld [vmem:[%s9538_s0 + $0x18] sm:$0xf]  ;;  %v167_v23 = vor.u32 %v166_v15, %v163_v14  ;;  %v692_v24 = vrot.slane %v588_v16, 5  ;;  %v695_v25 = vrot.slane %v589_v17, 5  ;;  %v93_v35 = vld [vmem:[%s9538_s0 + $0x20] sm:$0x1] }
  0x1c   :  { %5786 = vmatpush3.bf16.msra.mxu0 %v6425_v26  ;;  %v5272_v26 = vld [vmem:[%s9538_s0 + $0x1c] sm:$0xf]  ;;  %894 = vst [vmem:[#allocation2 + $0x54] sm:$0xf] %v5271_v22  ;;  %v590_v42 = vld [vmem:[%s9538_s0 + $0x18] sm:$0xe] }
  0x1d   :  { %5898 = vmatpush3.bf16.msra.mxu1 %v6426_v27  ;;  %5787 = vmatprep.subr.bf16.mxu0 %v6427_v28  ;;  %v25_v27 = vld [vmem:[%s9538_s0 + $0x18] sm:$0xf]  ;;  %v177_v28 = vor.u32 %v176_v19, %v172_v18  ;;  %895 = vst [vmem:[#allocation2 + $0x78] sm:$0xf] %v5272_v26  ;;  %v168_v32 = vrot.slane %v167_v23, 4  ;;  %v693_v33 = vsel %vm6823_vm4, %v5254_v21, %v692_v24  ;;  %v694_v34 = vrot.slane %v692_v24, 4 }
  0x1e   :  { %5899 = vmatprep.subr.bf16.mxu1 %v6428_v29  ;;  %v26_v29 = vld [vmem:[%s9538_s0 + $0x1c] sm:$0xf]  ;;  %57 = vst [vmem:[#allocation2 + $0x90] sm:$0xf] %v25_v27  ;;  %829 = vst [vmem:[#allocation2 + $0x50] sm:$0xf] %v693_v33 }
  0x1f   :  { %58 = vst [vmem:[#allocation2 + $0xb4] sm:$0xf] %v26_v29  ;;  %v178_v38 = vrot.slane %v177_v28, 4  ;;  %v173_v44 = vsel %vm6832_vm5, %v168_v32, %v172_v18  ;;  %v696_v45 = vsel %vm6823_vm4, %v694_v34, %v695_v25  ;;  %v204_v47 = vshll.u32 %v93_v35, 16  ;;  %v6449_v48 = vld [vmem:[%s9537_s1 + $0x170] sm:$0xff]   ;;  %v6461_v9 = vld [vmem:[%s9537_s1 + $0x168] sm:$0xff]  }
  0x20   :  { %5788 = vmatpush3.bf16.msra.mxu0 %v6429_v30  ;;  %v91_v30 = vld [vmem:[%s9538_s0 + $0x18] sm:$0xf]  ;;  %v6431_v49 = vld [vmem:[#allocation2] ss:$36 sps:$4 sm:$0xff]   ;;  %554 = vst [vmem:[#allocation2 + $0x4c] sm:$0xf] %v173_v44 }
  0x21   :  { %5900 = vmatpush3.bf16.msra.mxu1 %v6430_v31  ;;  %5997 = vmatprep.subr.bf16.mxu0 %v6437_v43  ;;  %v92_v31 = vld [vmem:[%s9538_s0 + $0x1c] sm:$0xf]  ;;  %v185_v36 = vshrl.u32 %v91_v30, 16  ;;  %v188_v39 = vshll.u32 %v91_v30, 16  ;;  %v6434_v43 = vld [vmem:[#allocation2 + $0x8] ss:$36 sps:$4 sm:$0xff]   ;;  %v183_v52 = vsel %vm6832_vm5, %v178_v38, %v182_v20 }
  0x22   :  { %v194_v40 = vshll.u32 %v92_v31, 16  ;;  %v198_v41 = vshrl.u32 %v92_v31, 16  ;;  %v6433_v50 = vld [vmem:[#allocation2 + $0x4] ss:$36 sps:$4 sm:$0xff]   ;;  %830 = vst [vmem:[#allocation2 + $0x74] sm:$0xf] %v696_v45 }
  0x23   :  { %v187_v46 = vrot.slane %v185_v36, 4  ;;  %v190_v53 = vrot.slane %v188_v39, 5  ;;  %v6436_v55 = vld [vmem:[#allocation2 + $0xc] ss:$36 sps:$4 sm:$0xff]   ;;  %555 = vst [vmem:[#allocation2 + $0x70] sm:$0xf] %v183_v52  ;;  %4029 = vmatprep.mubr.bf16.mxu0 %v6433_v50 }
  0x24   :  { %v196_v56 = vrot.slane %v194_v40, 5  ;;  %v200_v57 = vrot.slane %v198_v41, 4  ;;  %v206_v58 = vrot.slane %v204_v47, 5  ;;  %v5255_v59 = vrot.slane %v590_v42, 9  ;;  %v591_v61 = vld [vmem:[%s9538_s0 + $0x1c] sm:$0xf]  ;;  %4190 = vmatprep.mubr.bf16.mxu1 %v6436_v55  ;;  %4030 = vmatmul.mubr.bf16.vlgmr.msra.gmra.mxu0 %v6431_v49 }
  0x25   :  { %v191_v60 = vor.u32 %v190_v53, %v187_v46  ;;  %v592_v62 = vld [vmem:[%s9538_s0 + $0x20] sm:$0x1]  ;;  %v5273_v63 = vld [vmem:[%s9538_s0 + $0x24] sm:$0xf]  ;;  %v699_v1 = vrot.slane %v591_v61, 5  ;;  %4191 = vmatmul.mubr.bf16.vlgmr.msra.gmra.mxu1 %v6434_v43  ;;  %5998 = vmatpush3.bf16.msra.mxu0 %v6438_v37  ;;  %v6450_v5 = vld [vmem:[%s9537_s1 + $0x130] sm:$0xff]  }
  0x26   :  { %v201_v0 = vor.u32 %v200_v57, %v196_v56  ;;  %v702_v2 = vrot.slane %v592_v62, 5  ;;  %v5274_v3 = vld [vmem:[%s9538_s0 + $0x28] sm:$0xf]  ;;  %896 = vst [vmem:[#allocation2 + $0x9c] sm:$0xf] %v5273_v63  ;;  %5999 = vmatprep.subr.bf16.mxu0 %v6449_v48  ;;  %v6473_v21 = vld [vmem:[%s9537_s1 + $0x160] sm:$0xff]  }
  0x27   :  { %v192_v4 = vrot.slane %v191_v60, 4  ;;  %897 = vst [vmem:[#allocation2 + $0xc0] sm:$0xf] %v5274_v3  ;;  %v700_v7 = vsel %vm6823_vm4, %v5255_v59, %v699_v1  ;;  %v701_v8 = vrot.slane %v699_v1, 4  ;;  %v27_v11 = vld [vmem:[%s9538_s0 + $0x24] sm:$0xf] }
  0x28   :  { %v202_v6 = vrot.slane %v201_v0, 4  ;;  %831 = vst [vmem:[#allocation2 + $0x98] sm:$0xf] %v700_v7  ;;  %v28_v12 = vld [vmem:[%s9538_s0 + $0x28] sm:$0xf]  ;;  %v6474_v34 = vld [vmem:[%s9537_s1 + $0x120] sm:$0xff]  }
  0x29   :  { %v197_v10 = vsel %vm6832_vm5, %v192_v4, %v196_v56  ;;  %v94_v13 = vld [vmem:[%s9538_s0 + $0x24] sm:$0xf]  ;;  %v6462_v14 = vld [vmem:[%s9537_s1 + $0x128] sm:$0xff]   ;;  %v6441_v16 = vld [vmem:[#allocation2 + $0x54] ss:$36 sps:$4 sm:$0xff]   ;;  %v703_v18 = vsel %vm6823_vm4, %v701_v8, %v702_v2  ;;  %6000 = vmatpush3.bf16.msra.mxu0 %v6450_v5 }
  0x2a   :  { %v2535_v15 = vld [vmem:[#allocation2 + $0x48] sm:$0xff]  ;;  %v207_v17 = vsel %vm6832_vm5, %v202_v6, %v206_v58  ;;  %556 = vst [vmem:[#allocation2 + $0x94] sm:$0xf] %v197_v10  ;;  %59 = vst [vmem:[#allocation2 + $0xd8] sm:$0xf] %v27_v11  ;;  %v209_v19 = vshrl.u32 %v94_v13, 16  ;;  %4198 = vmatprep.mubr.bf16.mxu1 %v6441_v16  ;;  %6001 = vmatprep.subr.bf16.mxu0 %v6461_v9 }
  0x2b   :  { %60 = vst [vmem:[#allocation2 + $0xfc] sm:$0xf] %v28_v12  ;;  %v212_v20 = vshll.u32 %v94_v13, 16  ;;  %v2540_v22 = vld [vmem:[#allocation2 + $0x6c] sm:$0xff]  ;;  %557 = vst [vmem:[#allocation2 + $0xb8] sm:$0xf] %v207_v17 }
  0x2c   :  { %v6439_v23 = vld [vmem:[#allocation2 + $0x4c] ss:$36 sps:$4 sm:$0xff]   ;;  %832 = vst [vmem:[#allocation2 + $0xbc] sm:$0xf] %v703_v18  ;;  %v5566_v25 = vcombine.low %v2535_v15, %v2540_v22  ;;  %v95_v26 = vld [vmem:[%s9538_s0 + $0x28] sm:$0xf] }
  0x2d   :  { %v6443_v24 = vld [vmem:[#allocation2 + $0x50] ss:$36 sps:$4 sm:$0xff]   ;;  %v96_v27 = vld [vmem:[%s9538_s0 + $0x2c] sm:$0x1]  ;;  %v211_v28 = vrot.slane %v209_v19, 4  ;;  %v214_v29 = vrot.slane %v212_v20, 5  ;;  %4037 = vmatprep.mubr.bf16.mxu0 %v6439_v23  ;;  %6002 = vmatpush3.bf16.msra.mxu0 %v6462_v14 }
  0x2e   :  { %v218_v30 = vshll.u32 %v95_v26, 16  ;;  %v222_v31 = vshrl.u32 %v95_v26, 16  ;;  %v228_v32 = vshll.u32 %v96_v27, 16  ;;  %v593_v33 = vld [vmem:[%s9538_s0 + $0x24] sm:$0xe]  ;;  %4038 = vmatmul.mubr.bf16.gmra.mxu0 %v5566_v25  ;;  %v6485_v39 = vld [vmem:[%s9537_s1 + $0x158] sm:$0xff]   ;;  %4199 = vmatmul.mubr.bf16.gmra.mxu1 %v6443_v24 }
  0x2f   :  { %v215_v35 = vor.u32 %v214_v29, %v211_v28  ;;  %v594_v36 = vld [vmem:[%s9538_s0 + $0x28] sm:$0xf]  ;;  %v595_v37 = vld [vmem:[%s9538_s0 + $0x2c] sm:$0x1]  ;;  %v5256_v38 = vrot.slane %v593_v33, 9  ;;  %6003 = vmatprep.subr.bf16.mxu0 %v6473_v21  ;;  %v6486_v48 = vld [vmem:[%s9537_s1 + $0x1f8] sm:$0xff]  }
  0x30   :  { %v220_v40 = vrot.slane %v218_v30, 5  ;;  %v224_v41 = vrot.slane %v222_v31, 4  ;;  %v230_v42 = vrot.slane %v228_v32, 5  ;;  %v706_v43 = vrot.slane %v594_v36, 5  ;;  %v5275_v44 = vld [vmem:[%s9538_s0 + $0x30] sm:$0xf]  ;;  %6109 = vmatprep.subr.bf16.mxu1 %v6486_v48 }
  0x31   :  { %v216_v45 = vrot.slane %v215_v35, 4  ;;  %v709_v46 = vrot.slane %v595_v37, 5  ;;  %v5276_v47 = vld [vmem:[%s9538_s0 + $0x34] sm:$0xf]  ;;  %898 = vst [vmem:[#allocation2 + $0xe4] sm:$0xf] %v5275_v44  ;;  %6004 = vmatpush3.bf16.msra.mxu0 %v6474_v34 }
  0x32   :  { %v2545_v49 = vld [vmem:[#allocation2 + $0x90] sm:$0xff]  ;;  %v225_v50 = vor.u32 %v224_v41, %v220_v40  ;;  %v707_v52 = vsel %vm6823_vm4, %v5256_v38, %v706_v43  ;;  %v708_v53 = vrot.slane %v706_v43, 4  ;;  %899 = vst [vmem:[#allocation2 + $0x108] sm:$0xf] %v5276_v47  ;;  %v6446_v60 = vld [vmem:[#allocation2 + $0x9c] ss:$36 sps:$4 sm:$0xff]   ;;  %6005 = vmatprep.subr.bf16.mxu0 %v6485_v39 }
  0x33   :  { %v29_v55 = vld [vmem:[%s9538_s0 + $0x30] sm:$0xf]  ;;  %v30_v56 = vld [vmem:[%s9538_s0 + $0x34] sm:$0xf]  ;;  %v221_v59 = vsel %vm6832_vm5, %v216_v45, %v220_v40  ;;  %833 = vst [vmem:[#allocation2 + $0xe0] sm:$0xf] %v707_v52  ;;  %4206 = vmatprep.mubr.bf16.mxu1 %v6446_v60 }
  0x34   :  { %v2550_v57 = vld [vmem:[#allocation2 + $0xb4] sm:$0xff]  ;;  %61 = vst [vmem:[#allocation2 + $0x120] sm:$0xf] %v29_v55  ;;  %62 = vst [vmem:[#allocation2 + $0x144] sm:$0xf] %v30_v56  ;;  %v226_v63 = vrot.slane %v225_v50, 4  ;;  %v710_v0 = vsel %vm6823_vm4, %v708_v53, %v709_v46 }
  0x35   :  { %v6444_v58 = vld [vmem:[#allocation2 + $0x94] ss:$36 sps:$4 sm:$0xff]   ;;  %v5575_v61 = vcombine.low %v2545_v49, %v2550_v57  ;;  %558 = vst [vmem:[#allocation2 + $0xdc] sm:$0xf] %v221_v59  ;;  %834 = vst [vmem:[#allocation2 + $0x104] sm:$0xf] %v710_v0 }
  0x36   :  { %v6448_v62 = vld [vmem:[#allocation2 + $0x98] ss:$36 sps:$4 sm:$0xff]   ;;  %4045 = vmatprep.mubr.bf16.mxu0 %v6444_v58  ;;  %v97_v2 = vld [vmem:[%s9538_s0 + $0x30] sm:$0xf]  ;;  %v98_v3 = vld [vmem:[%s9538_s0 + $0x34] sm:$0xf]  ;;  %v231_v5 = vsel %vm6832_vm5, %v226_v63, %v230_v42 }
  0x37   :  { %v6487_v1 = vld [vmem:[%s9537_s1 + $0x118] sm:$0xff]   ;;  %v233_v6 = vshrl.u32 %v97_v2, 16  ;;  %v236_v7 = vshll.u32 %v97_v2, 16  ;;  %v242_v8 = vshll.u32 %v98_v3, 16  ;;  %v596_v9 = vld [vmem:[%s9538_s0 + $0x30] sm:$0xe]  ;;  %4046 = vmatmul.mubr.bf16.gmra.mxu0 %v5575_v61  ;;  %4207 = vmatmul.mubr.bf16.gmra.mxu1 %v6448_v62 }
  0x38   :  { %v99_v4 = vld [vmem:[%s9538_s0 + $0x38] sm:$0x1]  ;;  %559 = vst [vmem:[#allocation2 + $0x100] sm:$0xf] %v231_v5  ;;  %v246_v11 = vshrl.u32 %v98_v3, 16  ;;  %v5257_v18 = vrot.slane %v596_v9, 9  ;;  %6006 = vmatpush3.bf16.msra.mxu0 %v6487_v1 }
  0x39   :  { %v6488_v10 = vld [vmem:[%s9537_s1 + $0x1b8] sm:$0xff]   ;;  %v252_v12 = vshll.u32 %v99_v4, 16  ;;  %v597_v13 = vld [vmem:[%s9538_s0 + $0x34] sm:$0xf]  ;;  %v235_v15 = vrot.slane %v233_v6, 4  ;;  %v238_v16 = vrot.slane %v236_v7, 5 }
  0x3a   :  { %v598_v14 = vld [vmem:[%s9538_s0 + $0x38] sm:$0x1]  ;;  %v244_v17 = vrot.slane %v242_v8, 5  ;;  %v5277_v19 = vld [vmem:[%s9538_s0 + $0x3c] sm:$0xf]  ;;  %v248_v20 = vrot.slane %v246_v11, 4  ;;  %6110 = vmatpush3.bf16.msra.mxu1 %v6488_v10 }
  0x3b   :  { %v713_v21 = vrot.slane %v597_v13, 5  ;;  %v716_v22 = vrot.slane %v598_v14, 5  ;;  %v5278_v23 = vld [vmem:[%s9538_s0 + $0x40] sm:$0xf]  ;;  %900 = vst [vmem:[#allocation2 + $0x12c] sm:$0xf] %v5277_v19  ;;  %v239_v24 = vor.u32 %v238_v16, %v235_v15 }
  0x3c   :  { %v254_v25 = vrot.slane %v252_v12, 5  ;;  %901 = vst [vmem:[#allocation2 + $0x150] sm:$0xf] %v5278_v23  ;;  %v2555_v26 = vld [vmem:[#allocation2 + $0xd8] sm:$0xff]  ;;  %v249_v27 = vor.u32 %v248_v20, %v244_v17  ;;  %v6453_v30 = vld [vmem:[#allocation2 + $0xe4] ss:$36 sps:$4 sm:$0xff]  }
  0x3d   :  { %v714_v28 = vsel %vm6823_vm4, %v5257_v18, %v713_v21  ;;  %v715_v29 = vrot.slane %v713_v21, 4  ;;  %v6455_v31 = vld [vmem:[#allocation2 + $0xe0] ss:$36 sps:$4 sm:$0xff]   ;;  %v240_v32 = vrot.slane %v239_v24, 4  ;;  %v31_v35 = vld [vmem:[%s9538_s0 + $0x3c] sm:$0xf]  ;;  %4214 = vmatprep.mubr.bf16.mxu1 %v6453_v30 }
  0x3e   :  { %835 = vst [vmem:[#allocation2 + $0x128] sm:$0xf] %v714_v28  ;;  %v250_v33 = vrot.slane %v249_v27, 4  ;;  %v32_v36 = vld [vmem:[%s9538_s0 + $0x40] sm:$0xf]  ;;  %v6499_v37 = vld [vmem:[%s9537_s1 + $0x150] sm:$0xff]  }
  0x3f   :  { %v717_v34 = vsel %vm6823_vm4, %v715_v29, %v716_v22  ;;  %v2560_v38 = vld [vmem:[#allocation2 + $0xfc] sm:$0xff]  ;;  %v245_v40 = vsel %vm6832_vm5, %v240_v32, %v244_v17  ;;  %63 = vst [vmem:[#allocation2 + $0x168] sm:$0xf] %v31_v35  ;;  %64 = vst [vmem:[#allocation2 + $0x18c] sm:$0xf] %v32_v36  ;;  %6007 = vmatprep.subr.bf16.mxu0 %v6499_v37  ;;  %4215 = vmatmul.mubr.bf16.gmra.mxu1 %v6455_v31  ;;  %v6500_v53 = vld [vmem:[%s9537_s1 + $0x1f0] sm:$0xff]  }
  0x40   :  { %v6451_v39 = vld [vmem:[#allocation2 + $0xdc] ss:$36 sps:$4 sm:$0xff]   ;;  %836 = vst [vmem:[#allocation2 + $0x14c] sm:$0xf] %v717_v34  ;;  %v5584_v42 = vcombine.low %v2555_v26, %v2560_v38  ;;  %v255_v43 = vsel %vm6832_vm5, %v250_v33, %v254_v25  ;;  %560 = vst [vmem:[#allocation2 + $0x124] sm:$0xf] %v245_v40  ;;  %6111 = vmatprep.subr.bf16.mxu1 %v6500_v53 }
  0x41   :  { %v100_v41 = vld [vmem:[%s9538_s0 + $0x3c] sm:$0xf]  ;;  %v101_v44 = vld [vmem:[%s9538_s0 + $0x40] sm:$0xf]  ;;  %v102_v45 = vld [vmem:[%s9538_s0 + $0x44] sm:$0x1]  ;;  %4053 = vmatprep.mubr.bf16.mxu0 %v6451_v39 }
  0x42   :  { %v257_v46 = vshrl.u32 %v100_v41, 16  ;;  %v260_v47 = vshll.u32 %v100_v41, 16  ;;  %561 = vst [vmem:[#allocation2 + $0x148] sm:$0xf] %v255_v43  ;;  %v266_v48 = vshll.u32 %v101_v44, 16  ;;  %v270_v49 = vshrl.u32 %v101_v44, 16  ;;  %4054 = vmatmul.mubr.bf16.gmra.mxu0 %v5584_v42 }
  0x43   :  { %v276_v50 = vshll.u32 %v102_v45, 16  ;;  %v599_v52 = vld [vmem:[%s9538_s0 + $0x3c] sm:$0xe]  ;;  %v600_v57 = vld [vmem:[%s9538_s0 + $0x40] sm:$0xf]  ;;  %v6501_v4 = vld [vmem:[%s9537_s1 + $0x110] sm:$0xff]  }
  0x44   :  { %v259_v55 = vrot.slane %v257_v46, 4  ;;  %v262_v56 = vrot.slane %v260_v47, 5  ;;  %v601_v58 = vld [vmem:[%s9538_s0 + $0x44] sm:$0x1]  ;;  %v268_v59 = vrot.slane %v266_v48, 5  ;;  %v272_v60 = vrot.slane %v270_v49, 4  ;;  %6008 = vmatpush3.bf16.msra.mxu0 %v6501_v4 }
  0x45   :  { %v278_v61 = vrot.slane %v276_v50, 5  ;;  %v5258_v62 = vrot.slane %v599_v52, 9  ;;  %v5279_v63 = vld [vmem:[%s9538_s0 + $0x48] sm:$0xf]  ;;  %v720_v1 = vrot.slane %v600_v57, 5  ;;  %v723_v2 = vrot.slane %v601_v58, 5 }
  0x46   :  { %v263_v0 = vor.u32 %v262_v56, %v259_v55  ;;  %v5280_v3 = vld [vmem:[%s9538_s0 + $0x4c] sm:$0xf]  ;;  %902 = vst [vmem:[#allocation2 + $0x174] sm:$0xf] %v5279_v63  ;;  %v273_v5 = vor.u32 %v272_v60, %v268_v59  ;;  %v33_v6 = vld [vmem:[%s9538_s0 + $0x48] sm:$0xf] }
  0x47   :  { %903 = vst [vmem:[#allocation2 + $0x198] sm:$0xf] %v5280_v3  ;;  %v34_v7 = vld [vmem:[%s9538_s0 + $0x4c] sm:$0xf]  ;;  %v103_v8 = vld [vmem:[%s9538_s0 + $0x48] sm:$0xf]  ;;  %v721_v12 = vsel %vm6823_vm4, %v5258_v62, %v720_v1 }
  0x48   :  { %v6458_v9 = vld [vmem:[#allocation2 + $0x12c] ss:$36 sps:$4 sm:$0xff]   ;;  %v264_v11 = vrot.slane %v263_v0, 4  ;;  %65 = vst [vmem:[#allocation2 + $0x1b0] sm:$0xf] %v33_v6  ;;  %v2565_v13 = vld [vmem:[#allocation2 + $0x120] sm:$0xff] }
  0x49   :  { %v6460_v10 = vld [vmem:[#allocation2 + $0x128] ss:$36 sps:$4 sm:$0xff]   ;;  %66 = vst [vmem:[#allocation2 + $0x1d4] sm:$0xf] %v34_v7  ;;  %v274_v14 = vrot.slane %v273_v5, 4  ;;  %v722_v15 = vrot.slane %v720_v1, 4  ;;  %4222 = vmatprep.mubr.bf16.mxu1 %v6458_v9 }
  0x4a   :  { %837 = vst [vmem:[#allocation2 + $0x170] sm:$0xf] %v721_v12  ;;  %v104_v16 = vld [vmem:[%s9538_s0 + $0x4c] sm:$0xf]  ;;  %v281_v17 = vshrl.u32 %v103_v8, 16  ;;  %v2570_v18 = vld [vmem:[#allocation2 + $0x144] sm:$0xff]  ;;  %v269_v20 = vsel %vm6832_vm5, %v264_v11, %v268_v59  ;;  %4223 = vmatmul.mubr.bf16.gmra.mxu1 %v6460_v10 }
  0x4b   :  { %v6456_v19 = vld [vmem:[#allocation2 + $0x124] ss:$36 sps:$4 sm:$0xff]   ;;  %v105_v21 = vld [vmem:[%s9538_s0 + $0x50] sm:$0x1]  ;;  %v284_v22 = vshll.u32 %v103_v8, 16  ;;  %v5593_v23 = vcombine.low %v2565_v13, %v2570_v18  ;;  %v279_v24 = vsel %vm6832_vm5, %v274_v14, %v278_v61  ;;  %v724_v25 = vsel %vm6823_vm4, %v722_v15, %v723_v2 }
  0x4c   :  { %562 = vst [vmem:[#allocation2 + $0x16c] sm:$0xf] %v269_v20  ;;  %v283_v26 = vrot.slane %v281_v17, 4  ;;  %v602_v27 = vld [vmem:[%s9538_s0 + $0x48] sm:$0xe]  ;;  %v6502_v29 = vld [vmem:[%s9537_s1 + $0x1b0] sm:$0xff]   ;;  %4061 = vmatprep.mubr.bf16.mxu0 %v6456_v19 }
  0x4d   :  { %v603_v28 = vld [vmem:[%s9538_s0 + $0x4c] sm:$0xf]  ;;  %563 = vst [vmem:[#allocation2 + $0x190] sm:$0xf] %v279_v24  ;;  %838 = vst [vmem:[#allocation2 + $0x194] sm:$0xf] %v724_v25  ;;  %4062 = vmatmul.mubr.bf16.gmra.mxu0 %v5593_v23  ;;  %6112 = vmatpush3.bf16.msra.mxu1 %v6502_v29 }
  0x4e   :  { %v286_v30 = vrot.slane %v284_v22, 5  ;;  %v290_v31 = vshll.u32 %v104_v16, 16  ;;  %v294_v32 = vshrl.u32 %v104_v16, 16  ;;  %v300_v33 = vshll.u32 %v105_v21, 16  ;;  %v604_v34 = vld [vmem:[%s9538_s0 + $0x50] sm:$0x1] }
  0x4f   :  { %v5259_v35 = vrot.slane %v602_v27, 9  ;;  %v727_v36 = vrot.slane %v603_v28, 5  ;;  %v730_v37 = vrot.slane %v604_v34, 5  ;;  %v5281_v38 = vld [vmem:[%s9538_s0 + $0x54] sm:$0xf]  ;;  %v6513_v39 = vld [vmem:[%s9537_s1 + $0x148] sm:$0xff]  }
  0x50   :  { %v287_v40 = vor.u32 %v286_v30, %v283_v26  ;;  %v292_v41 = vrot.slane %v290_v31, 5  ;;  %v296_v42 = vrot.slane %v294_v32, 4  ;;  %v302_v43 = vrot.slane %v300_v33, 5  ;;  %v5282_v44 = vld [vmem:[%s9538_s0 + $0x58] sm:$0xf]  ;;  %v6514_v45 = vld [vmem:[%s9537_s1 + $0x1e8] sm:$0xff]   ;;  %6009 = vmatprep.subr.bf16.mxu0 %v6513_v39 }
  0x51   :  { %904 = vst [vmem:[#allocation2 + $0x1bc] sm:$0xf] %v5281_v38  ;;  %v728_v46 = vsel %vm6823_vm4, %v5259_v35, %v727_v36  ;;  %v729_v47 = vrot.slane %v727_v36, 4  ;;  %905 = vst [vmem:[#allocation2 + $0x1e0] sm:$0xf] %v5282_v44  ;;  %v6515_v48 = vld [vmem:[%s9537_s1 + $0x108] sm:$0xff]   ;;  %6113 = vmatprep.subr.bf16.mxu1 %v6514_v45 }
  0x52   :  { %v288_v49 = vrot.slane %v287_v40, 4  ;;  %v297_v50 = vor.u32 %v296_v42, %v292_v41  ;;  %839 = vst [vmem:[#allocation2 + $0x1b8] sm:$0xf] %v728_v46  ;;  %v35_v53 = vld [vmem:[%s9538_s0 + $0x54] sm:$0xf]  ;;  %6010 = vmatpush3.bf16.msra.mxu0 %v6515_v48  ;;  %v6516_v12 = vld [vmem:[%s9537_s1 + $0x1a8] sm:$0xff]  }
  0x53   :  { %v731_v52 = vsel %vm6823_vm4, %v729_v47, %v730_v37  ;;  %v36_v55 = vld [vmem:[%s9538_s0 + $0x58] sm:$0xf]  ;;  %v106_v56 = vld [vmem:[%s9538_s0 + $0x54] sm:$0xf]  ;;  %v2575_v57 = vld [vmem:[#allocation2 + $0x168] sm:$0xff]  ;;  %6114 = vmatpush3.bf16.msra.mxu1 %v6516_v12 }
  0x54   :  { %v293_v58 = vsel %vm6832_vm5, %v288_v49, %v292_v41  ;;  %v298_v59 = vrot.slane %v297_v50, 4  ;;  %840 = vst [vmem:[#allocation2 + $0x1dc] sm:$0xf] %v731_v52  ;;  %67 = vst [vmem:[#allocation2 + $0x1f8] sm:$0xf] %v35_v53  ;;  %v2580_v62 = vld [vmem:[#allocation2 + $0x18c] sm:$0xff] }
  0x55   :  { %68 = vst [vmem:[#allocation2 + $0x21c] sm:$0xf] %v36_v55  ;;  %v107_v60 = vld [vmem:[%s9538_s0 + $0x58] sm:$0xf]  ;;  %v108_v61 = vld [vmem:[%s9538_s0 + $0x5c] sm:$0x1]  ;;  %v5602_v3 = vcombine.low %v2575_v57, %v2580_v62 }
  0x56   :  { %v6463_v63 = vld [vmem:[#allocation2 + $0x16c] ss:$36 sps:$4 sm:$0xff]   ;;  %564 = vst [vmem:[#allocation2 + $0x1b4] sm:$0xf] %v293_v58  ;;  %v305_v0 = vshrl.u32 %v106_v56, 16  ;;  %v308_v1 = vshll.u32 %v106_v56, 16  ;;  %v303_v5 = vsel %vm6832_vm5, %v298_v59, %v302_v43 }
  0x57   :  { %v6465_v2 = vld [vmem:[#allocation2 + $0x174] ss:$36 sps:$4 sm:$0xff]   ;;  %v314_v6 = vshll.u32 %v107_v60, 16  ;;  %v318_v7 = vshrl.u32 %v107_v60, 16  ;;  %4069 = vmatprep.mubr.bf16.mxu0 %v6463_v63  ;;  %565 = vst [vmem:[#allocation2 + $0x1d8] sm:$0xf] %v303_v5 }
  0x58   :  { %v6467_v4 = vld [vmem:[#allocation2 + $0x170] ss:$36 sps:$4 sm:$0xff]   ;;  %v307_v8 = vrot.slane %v305_v0, 4  ;;  %v310_v9 = vrot.slane %v308_v1, 5  ;;  %v324_v10 = vshll.u32 %v108_v61, 16  ;;  %4230 = vmatprep.mubr.bf16.mxu1 %v6465_v2  ;;  %4070 = vmatmul.mubr.bf16.gmra.mxu0 %v5602_v3  ;;  %v6522_v26 = vld [vmem:[%s9537_s1 + $0x1e0] sm:$0xff]  }
  0x59   :  { %v605_v11 = vld [vmem:[%s9538_s0 + $0x54] sm:$0xe]  ;;  %v316_v13 = vrot.slane %v314_v6, 5  ;;  %v320_v14 = vrot.slane %v318_v7, 4  ;;  %v606_v15 = vld [vmem:[%s9538_s0 + $0x58] sm:$0xf]  ;;  %4231 = vmatmul.mubr.bf16.gmra.mxu1 %v6467_v4  ;;  %6115 = vmatprep.subr.bf16.mxu1 %v6522_v26 }
  0x5a   :  { %v607_v16 = vld [vmem:[%s9538_s0 + $0x5c] sm:$0x1]  ;;  %v311_v17 = vor.u32 %v310_v9, %v307_v8  ;;  %v326_v18 = vrot.slane %v324_v10, 5  ;;  %v5260_v19 = vrot.slane %v605_v11, 9  ;;  %v734_v20 = vrot.slane %v606_v15, 5  ;;  %v6527_v35 = vld [vmem:[%s9537_s1 + $0x1a0] sm:$0xff]  }
  0x5b   :  { %v5283_v21 = vld [vmem:[%s9538_s0 + $0x60] sm:$0xf]  ;;  %v321_v22 = vor.u32 %v320_v14, %v316_v13  ;;  %v737_v23 = vrot.slane %v607_v16, 5  ;;  %v5284_v24 = vld [vmem:[%s9538_s0 + $0x64] sm:$0xf]  ;;  %6116 = vmatpush3.bf16.msra.mxu1 %v6527_v35 }
  0x5c   :  { %906 = vst [vmem:[#allocation2 + $0x204] sm:$0xf] %v5283_v21  ;;  %v37_v25 = vld [vmem:[%s9538_s0 + $0x78] sm:$0xf]  ;;  %v6470_v27 = vld [vmem:[#allocation2 + $0x1bc] ss:$36 sps:$4 sm:$0xff]   ;;  %v735_v30 = vsel %vm6823_vm4, %v5260_v19, %v734_v20 }
  0x5d   :  { %v6472_v28 = vld [vmem:[#allocation2 + $0x1b8] ss:$36 sps:$4 sm:$0xff]   ;;  %v312_v29 = vrot.slane %v311_v17, 4  ;;  %907 = vst [vmem:[#allocation2 + $0x228] sm:$0xf] %v5284_v24  ;;  %v2585_v31 = vld [vmem:[#allocation2 + $0x1b0] sm:$0xff]  ;;  %4238 = vmatprep.mubr.bf16.mxu1 %v6470_v27 }
  0x5e   :  { %69 = vst [vmem:[#allocation2 + $0x240] sm:$0xf] %v37_v25  ;;  %v322_v32 = vrot.slane %v321_v22, 4  ;;  %v736_v33 = vrot.slane %v734_v20, 4  ;;  %841 = vst [vmem:[#allocation2 + $0x200] sm:$0xf] %v735_v30 }
  0x5f   :  { %v38_v34 = vld [vmem:[%s9538_s0 + $0x7c] sm:$0xf]  ;;  %v317_v36 = vsel %vm6832_vm5, %v312_v29, %v316_v13  ;;  %v109_v37 = vld [vmem:[%s9538_s0 + $0x78] sm:$0xf]  ;;  %v111_v39 = vld [vmem:[%s9538_s0 + $0x80] sm:$0x1] }
  0x60   :  { %70 = vst [vmem:[#allocation2 + $0x264] sm:$0xf] %v38_v34  ;;  %v110_v38 = vld [vmem:[%s9538_s0 + $0x7c] sm:$0xf]  ;;  %v2590_v40 = vld [vmem:[#allocation2 + $0x1d4] sm:$0xff]  ;;  %v327_v42 = vsel %vm6832_vm5, %v322_v32, %v326_v18  ;;  %v738_v43 = vsel %vm6823_vm4, %v736_v33, %v737_v23  ;;  %v329_v44 = vshrl.u32 %v109_v37, 16 }
  0x61   :  { %v6468_v41 = vld [vmem:[#allocation2 + $0x1b4] ss:$36 sps:$4 sm:$0xff]   ;;  %566 = vst [vmem:[#allocation2 + $0x1fc] sm:$0xf] %v317_v36  ;;  %v332_v45 = vshll.u32 %v109_v37, 16  ;;  %v6529_v46 = vld [vmem:[%s9537_s1 + $0x140] sm:$0xff]   ;;  %v5611_v47 = vcombine.low %v2585_v31, %v2590_v40  ;;  %4239 = vmatmul.mubr.bf16.gmra.mxu1 %v6472_v28 }
  0x62   :  { %567 = vst [vmem:[#allocation2 + $0x220] sm:$0xf] %v327_v42  ;;  %842 = vst [vmem:[#allocation2 + $0x224] sm:$0xf] %v738_v43  ;;  %v338_v48 = vshll.u32 %v110_v38, 16  ;;  %v342_v49 = vshrl.u32 %v110_v38, 16  ;;  %4077 = vmatprep.mubr.bf16.mxu0 %v6468_v41  ;;  %6011 = vmatprep.subr.bf16.mxu0 %v6529_v46 }
  0x63   :  { %v348_v50 = vshll.u32 %v111_v39, 16  ;;  %v608_v52 = vld [vmem:[%s9538_s0 + $0x78] sm:$0xe]  ;;  %v6530_v53 = vld [vmem:[%s9537_s1 + $0x100] sm:$0xff]   ;;  %v331_v55 = vrot.slane %v329_v44, 4  ;;  %v334_v56 = vrot.slane %v332_v45, 5  ;;  %4078 = vmatmul.mubr.bf16.gmra.mxu0 %v5611_v47 }
  0x64   :  { %v609_v57 = vld [vmem:[%s9538_s0 + $0x7c] sm:$0xf]  ;;  %v610_v58 = vld [vmem:[%s9538_s0 + $0x80] sm:$0x1]  ;;  %v340_v59 = vrot.slane %v338_v48, 5  ;;  %v344_v60 = vrot.slane %v342_v49, 4  ;;  %6012 = vmatpush3.bf16.msra.mxu0 %v6530_v53 }
  0x65   :  { %v5261_v61 = vrot.slane %v608_v52, 9  ;;  %v5285_v62 = vld [vmem:[%s9538_s0 + $0x84] sm:$0xf]  ;;  %v335_v63 = vor.u32 %v334_v56, %v331_v55  ;;  %v741_v0 = vrot.slane %v609_v57, 5  ;;  %v744_v1 = vrot.slane %v610_v58, 5  ;;  %v6531_v29 = vld [vmem:[%s9537_s1 + $0x1d8] sm:$0xff]  }
  0x66   :  { %v5286_v2 = vld [vmem:[%s9538_s0 + $0x88] sm:$0xf]  ;;  %908 = vst [vmem:[#allocation2 + $0x24c] sm:$0xf] %v5285_v62  ;;  %v345_v3 = vor.u32 %v344_v60, %v340_v59  ;;  %v350_v4 = vrot.slane %v348_v50, 5  ;;  %6117 = vmatprep.subr.bf16.mxu1 %v6531_v29  ;;  %v6532_v37 = vld [vmem:[%s9537_s1 + $0x198] sm:$0xff]  }
  0x67   :  { %909 = vst [vmem:[#allocation2 + $0x270] sm:$0xf] %v5286_v2  ;;  %v336_v5 = vrot.slane %v335_v63, 4  ;;  %v742_v6 = vsel %vm6823_vm4, %v5261_v61, %v741_v0  ;;  %v743_v7 = vrot.slane %v741_v0, 4  ;;  %v6477_v14 = vld [vmem:[#allocation2 + $0x204] ss:$36 sps:$4 sm:$0xff]   ;;  %6118 = vmatpush3.bf16.msra.mxu1 %v6532_v37 }
  0x68   :  { %v2595_v8 = vld [vmem:[#allocation2 + $0x1f8] sm:$0xff]  ;;  %v346_v9 = vrot.slane %v345_v3, 4  ;;  %843 = vst [vmem:[#allocation2 + $0x248] sm:$0xf] %v742_v6  ;;  %v39_v18 = vld [vmem:[%s9538_s0 + $0x84] sm:$0xf]  ;;  %4246 = vmatprep.mubr.bf16.mxu1 %v6477_v14 }
  0x69   :  { %v2600_v10 = vld [vmem:[#allocation2 + $0x21c] sm:$0xff]  ;;  %v341_v12 = vsel %vm6832_vm5, %v336_v5, %v340_v59  ;;  %v745_v13 = vsel %vm6823_vm4, %v743_v7, %v744_v1  ;;  %v40_v19 = vld [vmem:[%s9538_s0 + $0x88] sm:$0xf]  ;;  %v112_v20 = vld [vmem:[%s9538_s0 + $0x84] sm:$0xf] }
  0x6a   :  { %v6475_v11 = vld [vmem:[#allocation2 + $0x1fc] ss:$36 sps:$4 sm:$0xff]   ;;  %v5620_v15 = vcombine.low %v2595_v8, %v2600_v10  ;;  %v351_v17 = vsel %vm6832_vm5, %v346_v9, %v350_v4  ;;  %568 = vst [vmem:[#allocation2 + $0x244] sm:$0xf] %v341_v12  ;;  %844 = vst [vmem:[#allocation2 + $0x26c] sm:$0xf] %v745_v13 }
  0x6b   :  { %v6479_v16 = vld [vmem:[#allocation2 + $0x200] ss:$36 sps:$4 sm:$0xff]   ;;  %4085 = vmatprep.mubr.bf16.mxu0 %v6475_v11  ;;  %569 = vst [vmem:[#allocation2 + $0x268] sm:$0xf] %v351_v17  ;;  %71 = vst [vmem:[#allocation2 + $0x288] sm:$0xf] %v39_v18 }
  0x6c   :  { %4086 = vmatmul.mubr.bf16.gmra.mxu0 %v5620_v15  ;;  %72 = vst [vmem:[#allocation2 + $0x2ac] sm:$0xf] %v40_v19  ;;  %v113_v21 = vld [vmem:[%s9538_s0 + $0x88] sm:$0xf]  ;;  %v114_v22 = vld [vmem:[%s9538_s0 + $0x8c] sm:$0x1]  ;;  %4247 = vmatmul.mubr.bf16.gmra.mxu1 %v6479_v16 }
  0x6d   :  { %v353_v23 = vshrl.u32 %v112_v20, 16  ;;  %v356_v24 = vshll.u32 %v112_v20, 16  ;;  %v362_v25 = vshll.u32 %v113_v21, 16  ;;  %v366_v26 = vshrl.u32 %v113_v21, 16  ;;  %v611_v28 = vld [vmem:[%s9538_s0 + $0x84] sm:$0xe] }
  0x6e   :  { %v372_v27 = vshll.u32 %v114_v22, 16  ;;  %v612_v32 = vld [vmem:[%s9538_s0 + $0x88] sm:$0xf]  ;;  %v613_v33 = vld [vmem:[%s9538_s0 + $0x8c] sm:$0x1]  ;;  %v5262_v36 = vrot.slane %v611_v28, 9 }
  0x6f   :  { %v355_v30 = vrot.slane %v353_v23, 4  ;;  %v358_v31 = vrot.slane %v356_v24, 5  ;;  %v364_v34 = vrot.slane %v362_v25, 5  ;;  %v368_v35 = vrot.slane %v366_v26, 4  ;;  %v5287_v40 = vld [vmem:[%s9538_s0 + $0x90] sm:$0xf] }
  0x70   :  { %v748_v39 = vrot.slane %v612_v32, 5  ;;  %v5288_v41 = vld [vmem:[%s9538_s0 + $0x94] sm:$0xf]  ;;  %v6482_v43 = vld [vmem:[#allocation2 + $0x24c] ss:$36 sps:$4 sm:$0xff]   ;;  %v374_v45 = vrot.slane %v372_v27, 5 }
  0x71   :  { %v359_v38 = vor.u32 %v358_v31, %v355_v30  ;;  %v2605_v42 = vld [vmem:[#allocation2 + $0x240] sm:$0xff]  ;;  %v369_v44 = vor.u32 %v368_v35, %v364_v34  ;;  %v751_v46 = vrot.slane %v613_v33, 5  ;;  %910 = vst [vmem:[#allocation2 + $0x294] sm:$0xf] %v5287_v40  ;;  %911 = vst [vmem:[#allocation2 + $0x2b8] sm:$0xf] %v5288_v41  ;;  %4254 = vmatprep.mubr.bf16.mxu1 %v6482_v43 }
  0x72   :  { %v2610_v47 = vld [vmem:[#allocation2 + $0x264] sm:$0xff]  ;;  %v749_v52 = vsel %vm6823_vm4, %v5262_v36, %v748_v39  ;;  %v750_v56 = vrot.slane %v748_v39, 4  ;;  %v41_v57 = vld [vmem:[%s9538_s0 + $0x90] sm:$0xf]  ;;  %v42_v58 = vld [vmem:[%s9538_s0 + $0x94] sm:$0xf] }
  0x73   :  { %v6480_v48 = vld [vmem:[#allocation2 + $0x244] ss:$36 sps:$4 sm:$0xff]   ;;  %v360_v50 = vrot.slane %v359_v38, 4  ;;  %v5629_v53 = vcombine.low %v2605_v42, %v2610_v47  ;;  %v370_v55 = vrot.slane %v369_v44, 4  ;;  %845 = vst [vmem:[#allocation2 + $0x290] sm:$0xf] %v749_v52 }
  0x74   :  { %v6484_v49 = vld [vmem:[#allocation2 + $0x248] ss:$36 sps:$4 sm:$0xff]   ;;  %4093 = vmatprep.mubr.bf16.mxu0 %v6480_v48  ;;  %73 = vst [vmem:[#allocation2 + $0x2d0] sm:$0xf] %v41_v57  ;;  %74 = vst [vmem:[#allocation2 + $0x2f4] sm:$0xf] %v42_v58  ;;  %v752_v0 = vsel %vm6823_vm4, %v750_v56, %v751_v46 }
  0x75   :  { %v365_v59 = vsel %vm6832_vm5, %v360_v50, %v364_v34  ;;  %v115_v60 = vld [vmem:[%s9538_s0 + $0x90] sm:$0xf]  ;;  %v116_v61 = vld [vmem:[%s9538_s0 + $0x94] sm:$0xf]  ;;  %v117_v62 = vld [vmem:[%s9538_s0 + $0x98] sm:$0x1]  ;;  %4094 = vmatmul.mubr.bf16.gmra.mxu0 %v5629_v53  ;;  %4255 = vmatmul.mubr.bf16.gmra.mxu1 %v6484_v49  ;;  %v375_v63 = vsel %vm6832_vm5, %v370_v55, %v374_v45 }
  0x76   :  { %570 = vst [vmem:[#allocation2 + $0x28c] sm:$0xf] %v365_v59  ;;  %v377_v1 = vshrl.u32 %v115_v60, 16  ;;  %v380_v2 = vshll.u32 %v115_v60, 16  ;;  %v614_v3 = vld [vmem:[%s9538_s0 + $0x90] sm:$0xe] }
  0x77   :  { %v615_v4 = vld [vmem:[%s9538_s0 + $0x94] sm:$0xf]  ;;  %571 = vst [vmem:[#allocation2 + $0x2b0] sm:$0xf] %v375_v63  ;;  %846 = vst [vmem:[#allocation2 + $0x2b4] sm:$0xf] %v752_v0 }
  0x78   :  { %v386_v5 = vshll.u32 %v116_v61, 16  ;;  %v390_v6 = vshrl.u32 %v116_v61, 16  ;;  %v396_v7 = vshll.u32 %v117_v62, 16  ;;  %v616_v8 = vld [vmem:[%s9538_s0 + $0x98] sm:$0x1]  ;;  %v5263_v9 = vrot.slane %v614_v3, 9 }
  0x79   :  { %v379_v10 = vrot.slane %v377_v1, 4  ;;  %v382_v11 = vrot.slane %v380_v2, 5  ;;  %v755_v12 = vrot.slane %v615_v4, 5  ;;  %v758_v13 = vrot.slane %v616_v8, 5  ;;  %v5289_v14 = vld [vmem:[%s9538_s0 + $0x9c] sm:$0xf] }
  0x7a   :  { %v388_v15 = vrot.slane %v386_v5, 5  ;;  %v392_v16 = vrot.slane %v390_v6, 4  ;;  %v5290_v17 = vld [vmem:[%s9538_s0 + $0xa0] sm:$0xf]  ;;  %912 = vst [vmem:[#allocation2 + $0x2dc] sm:$0xf] %v5289_v14 }
  0x7b   :  { %v6533_v18 = vld [vmem:[%s9537_s1 + $0x1d0] sm:$0xff]   ;;  %v383_v19 = vor.u32 %v382_v11, %v379_v10  ;;  %v756_v20 = vsel %vm6823_vm4, %v5263_v9, %v755_v12  ;;  %v757_v21 = vrot.slane %v755_v12, 4  ;;  %913 = vst [vmem:[#allocation2 + $0x300] sm:$0xf] %v5290_v17  ;;  %v398_v24 = vrot.slane %v396_v7, 5  ;;  %v6540_v27 = vld [vmem:[%s9537_s1 + $0x1c8] sm:$0xff]  }
  0x7c   :  { %v6538_v22 = vld [vmem:[%s9537_s1 + $0x190] sm:$0xff]   ;;  %v393_v23 = vor.u32 %v392_v16, %v388_v15  ;;  %847 = vst [vmem:[#allocation2 + $0x2d8] sm:$0xf] %v756_v20  ;;  %6119 = vmatprep.subr.bf16.mxu1 %v6533_v18  ;;  %v43_v37 = vld [vmem:[%s9538_s0 + $0x9c] sm:$0xf] }
  0x7d   :  { %v384_v25 = vrot.slane %v383_v19, 4  ;;  %v759_v26 = vsel %vm6823_vm4, %v757_v21, %v758_v13  ;;  %6120 = vmatpush3.bf16.msra.mxu1 %v6538_v22  ;;  %v2615_v28 = vld [vmem:[#allocation2 + $0x288] sm:$0xff]  ;;  %v6491_v33 = vld [vmem:[#allocation2 + $0x294] ss:$36 sps:$4 sm:$0xff]   ;;  %v44_v38 = vld [vmem:[%s9538_s0 + $0xa0] sm:$0xf] }
  0x7e   :  { %v394_v29 = vrot.slane %v393_v23, 4  ;;  %848 = vst [vmem:[#allocation2 + $0x2fc] sm:$0xf] %v759_v26  ;;  %v2620_v30 = vld [vmem:[#allocation2 + $0x2ac] sm:$0xff]  ;;  %6121 = vmatprep.subr.bf16.mxu1 %v6540_v27  ;;  %75 = vst [vmem:[#allocation2 + $0x318] sm:$0xf] %v43_v37  ;;  %4262 = vmatprep.mubr.bf16.mxu1 %v6491_v33 }
  0x7f   :  { %v6489_v31 = vld [vmem:[#allocation2 + $0x28c] ss:$36 sps:$4 sm:$0xff]   ;;  %v389_v32 = vsel %vm6832_vm5, %v384_v25, %v388_v15  ;;  %v5638_v34 = vcombine.low %v2615_v28, %v2620_v30  ;;  %v118_v39 = vld [vmem:[%s9538_s0 + $0x9c] sm:$0xf]  ;;  %v119_v40 = vld [vmem:[%s9538_s0 + $0xa0] sm:$0xf] }
  0x80   :  { %v6493_v35 = vld [vmem:[#allocation2 + $0x290] ss:$36 sps:$4 sm:$0xff]   ;;  %v399_v36 = vsel %vm6832_vm5, %v394_v29, %v398_v24  ;;  %572 = vst [vmem:[#allocation2 + $0x2d4] sm:$0xf] %v389_v32  ;;  %4101 = vmatprep.mubr.bf16.mxu0 %v6489_v31  ;;  %76 = vst [vmem:[#allocation2 + $0x33c] sm:$0xf] %v44_v38 }
  0x81   :  { %573 = vst [vmem:[#allocation2 + $0x2f8] sm:$0xf] %v399_v36  ;;  %4102 = vmatmul.mubr.bf16.gmra.mxu0 %v5638_v34  ;;  %v120_v41 = vld [vmem:[%s9538_s0 + $0xa4] sm:$0x1]  ;;  %v401_v42 = vshrl.u32 %v118_v39, 16  ;;  %v404_v43 = vshll.u32 %v118_v39, 16  ;;  %4263 = vmatmul.mubr.bf16.gmra.mxu1 %v6493_v35 }
  0x82   :  { %v410_v44 = vshll.u32 %v119_v40, 16  ;;  %v414_v45 = vshrl.u32 %v119_v40, 16  ;;  %v420_v46 = vshll.u32 %v120_v41, 16  ;;  %v617_v47 = vld [vmem:[%s9538_s0 + $0x9c] sm:$0xe]  ;;  %v6541_v21 = vld [vmem:[%s9537_s1 + $0x188] sm:$0xff]  }
  0x83   :  { %v618_v48 = vld [vmem:[%s9538_s0 + $0xa0] sm:$0xf]  ;;  %v403_v49 = vrot.slane %v401_v42, 4  ;;  %v406_v50 = vrot.slane %v404_v43, 5  ;;  %v619_v55 = vld [vmem:[%s9538_s0 + $0xa4] sm:$0x1]  ;;  %6122 = vmatpush3.bf16.msra.mxu1 %v6541_v21 }
  0x84   :  { %v412_v52 = vrot.slane %v410_v44, 5  ;;  %v416_v53 = vrot.slane %v414_v45, 4  ;;  %v6496_v56 = vld [vmem:[#allocation2 + $0x2dc] ss:$36 sps:$4 sm:$0xff]   ;;  %v422_v58 = vrot.slane %v420_v46, 5  ;;  %v5264_v61 = vrot.slane %v617_v47, 9 }
  0x85   :  { %v6498_v57 = vld [vmem:[#allocation2 + $0x2d8] ss:$36 sps:$4 sm:$0xff]   ;;  %v407_v59 = vor.u32 %v406_v50, %v403_v49  ;;  %v762_v62 = vrot.slane %v618_v48, 5  ;;  %v5291_v63 = vld [vmem:[%s9538_s0 + $0xa8] sm:$0xf]  ;;  %4270 = vmatprep.mubr.bf16.mxu1 %v6496_v56  ;;  %v765_v2 = vrot.slane %v619_v55, 5 }
  0x86   :  { %v417_v60 = vor.u32 %v416_v53, %v412_v52  ;;  %v5292_v0 = vld [vmem:[%s9538_s0 + $0xac] sm:$0xf]  ;;  %914 = vst [vmem:[#allocation2 + $0x324] sm:$0xf] %v5291_v63  ;;  %v45_v3 = vld [vmem:[%s9538_s0 + $0xa8] sm:$0xf] }
  0x87   :  { %v2625_v1 = vld [vmem:[#allocation2 + $0x2d0] sm:$0xff]  ;;  %915 = vst [vmem:[#allocation2 + $0x348] sm:$0xf] %v5292_v0  ;;  %v46_v4 = vld [vmem:[%s9538_s0 + $0xac] sm:$0xf]  ;;  %v408_v7 = vrot.slane %v407_v59, 4  ;;  %v763_v9 = vsel %vm6823_vm4, %v5264_v61, %v762_v62 }
  0x88   :  { %v2630_v5 = vld [vmem:[#allocation2 + $0x2f4] sm:$0xff]  ;;  %v418_v8 = vrot.slane %v417_v60, 4  ;;  %v764_v10 = vrot.slane %v762_v62, 4  ;;  %77 = vst [vmem:[#allocation2 + $0x360] sm:$0xf] %v45_v3  ;;  %v6542_v39 = vld [vmem:[%s9537_s1 + $0x1c0] sm:$0xff]  }
  0x89   :  { %v6494_v6 = vld [vmem:[#allocation2 + $0x2d4] ss:$36 sps:$4 sm:$0xff]   ;;  %78 = vst [vmem:[#allocation2 + $0x384] sm:$0xf] %v46_v4  ;;  %v5647_v11 = vcombine.low %v2625_v1, %v2630_v5  ;;  %849 = vst [vmem:[#allocation2 + $0x320] sm:$0xf] %v763_v9  ;;  %v413_v15 = vsel %vm6832_vm5, %v408_v7, %v412_v52  ;;  %4271 = vmatmul.mubr.bf16.gmra.mxu1 %v6498_v57  ;;  %6123 = vmatprep.subr.bf16.mxu1 %v6542_v39 }
  0x8a   :  { %v121_v12 = vld [vmem:[%s9538_s0 + $0xa8] sm:$0xf]  ;;  %v122_v13 = vld [vmem:[%s9538_s0 + $0xac] sm:$0xf]  ;;  %v123_v14 = vld [vmem:[%s9538_s0 + $0xb0] sm:$0x1]  ;;  %4109 = vmatprep.mubr.bf16.mxu0 %v6494_v6  ;;  %v423_v16 = vsel %vm6832_vm5, %v418_v8, %v422_v58  ;;  %v766_v17 = vsel %vm6823_vm4, %v764_v10, %v765_v2 }
  0x8b   :  { %v425_v18 = vshrl.u32 %v121_v12, 16  ;;  %v620_v19 = vld [vmem:[%s9538_s0 + $0xa8] sm:$0xe]  ;;  %v621_v20 = vld [vmem:[%s9538_s0 + $0xac] sm:$0xf]  ;;  %4110 = vmatmul.mubr.bf16.gmra.mxu0 %v5647_v11  ;;  %v428_v22 = vshll.u32 %v121_v12, 16 }
  0x8c   :  { %574 = vst [vmem:[#allocation2 + $0x31c] sm:$0xf] %v413_v15  ;;  %575 = vst [vmem:[#allocation2 + $0x340] sm:$0xf] %v423_v16  ;;  %v434_v23 = vshll.u32 %v122_v13, 16  ;;  %v438_v24 = vshrl.u32 %v122_v13, 16 }
  0x8d   :  { %850 = vst [vmem:[#allocation2 + $0x344] sm:$0xf] %v766_v17  ;;  %v444_v25 = vshll.u32 %v123_v14, 16  ;;  %v622_v26 = vld [vmem:[%s9538_s0 + $0xb0] sm:$0x1]  ;;  %v427_v27 = vrot.slane %v425_v18, 4 }
  0x8e   :  { %v5265_v28 = vrot.slane %v620_v19, 9  ;;  %v769_v29 = vrot.slane %v621_v20, 5  ;;  %v772_v30 = vrot.slane %v622_v26, 5  ;;  %v5293_v31 = vld [vmem:[%s9538_s0 + $0xb4] sm:$0xf]  ;;  %v430_v32 = vrot.slane %v428_v22, 5 }
  0x8f   :  { %v436_v33 = vrot.slane %v434_v23, 5  ;;  %v440_v34 = vrot.slane %v438_v24, 4  ;;  %v446_v35 = vrot.slane %v444_v25, 5  ;;  %v5294_v36 = vld [vmem:[%s9538_s0 + $0xb8] sm:$0xf]  ;;  %v6546_v18 = vld [vmem:[%s9537_s1 + $0x180] sm:$0xff]  }
  0x90   :  { %916 = vst [vmem:[#allocation2 + $0x36c] sm:$0xf] %v5293_v31  ;;  %v770_v37 = vsel %vm6823_vm4, %v5265_v28, %v769_v29  ;;  %v771_v38 = vrot.slane %v769_v29, 4  ;;  %917 = vst [vmem:[#allocation2 + $0x390] sm:$0xf] %v5294_v36  ;;  %v431_v40 = vor.u32 %v430_v32, %v427_v27  ;;  %6124 = vmatpush3.bf16.msra.mxu1 %v6546_v18  ;;  %v7437_v29 = vld [vmem:[%s9537_s1 + $0x238] sm:$0xff]  }
  0x91   :  { %v441_v41 = vor.u32 %v440_v34, %v436_v33  ;;  %851 = vst [vmem:[#allocation2 + $0x368] sm:$0xf] %v770_v37  ;;  %v47_v45 = vld [vmem:[%s9538_s0 + $0xb4] sm:$0xf]  ;;  %v6505_v49 = vld [vmem:[#allocation2 + $0x324] ss:$36 sps:$4 sm:$0xff]   ;;  %6279 = vmatprep.subr.bf16.mxu0 %v7437_v29 }
  0x92   :  { %v773_v42 = vsel %vm6823_vm4, %v771_v38, %v772_v30  ;;  %v432_v43 = vrot.slane %v431_v40, 4  ;;  %79 = vst [vmem:[#allocation2 + $0x3a8] sm:$0xf] %v47_v45  ;;  %v48_v56 = vld [vmem:[%s9538_s0 + $0xb8] sm:$0xf]  ;;  %4278 = vmatprep.mubr.bf16.mxu1 %v6505_v49 }
  0x93   :  { %v442_v44 = vrot.slane %v441_v41, 4  ;;  %852 = vst [vmem:[#allocation2 + $0x38c] sm:$0xf] %v773_v42  ;;  %v2635_v46 = vld [vmem:[#allocation2 + $0x318] sm:$0xff]  ;;  %v124_v57 = vld [vmem:[%s9538_s0 + $0xb4] sm:$0xf] }
  0x94   :  { %v2640_v47 = vld [vmem:[#allocation2 + $0x33c] sm:$0xff]  ;;  %v437_v53 = vsel %vm6832_vm5, %v432_v43, %v436_v33  ;;  %v125_v58 = vld [vmem:[%s9538_s0 + $0xb8] sm:$0xf]  ;;  %80 = vst [vmem:[#allocation2 + $0x3cc] sm:$0xf] %v48_v56  ;;  %v449_v60 = vshrl.u32 %v124_v57, 16 }
  0x95   :  { %v6503_v48 = vld [vmem:[#allocation2 + $0x31c] ss:$36 sps:$4 sm:$0xff]   ;;  %v5656_v50 = vcombine.low %v2635_v46, %v2640_v47  ;;  %v447_v55 = vsel %vm6832_vm5, %v442_v44, %v446_v35  ;;  %576 = vst [vmem:[#allocation2 + $0x364] sm:$0xf] %v437_v53  ;;  %v452_v61 = vshll.u32 %v124_v57, 16  ;;  %v458_v62 = vshll.u32 %v125_v58, 16 }
  0x96   :  { %v6507_v52 = vld [vmem:[#allocation2 + $0x320] ss:$36 sps:$4 sm:$0xff]   ;;  %4117 = vmatprep.mubr.bf16.mxu0 %v6503_v48  ;;  %577 = vst [vmem:[#allocation2 + $0x388] sm:$0xf] %v447_v55  ;;  %v126_v59 = vld [vmem:[%s9538_s0 + $0xbc] sm:$0x1] }
  0x97   :  { %4118 = vmatmul.mubr.bf16.gmra.mxu0 %v5656_v50  ;;  %v462_v63 = vshrl.u32 %v125_v58, 16  ;;  %4279 = vmatmul.mubr.bf16.gmra.mxu1 %v6507_v52  ;;  %v468_v0 = vshll.u32 %v126_v59, 16  ;;  %v623_v1 = vld [vmem:[%s9538_s0 + $0xb4] sm:$0xe]  ;;  %v624_v2 = vld [vmem:[%s9538_s0 + $0xb8] sm:$0xf] }
  0x98   :  { %v451_v3 = vrot.slane %v449_v60, 4  ;;  %v454_v4 = vrot.slane %v452_v61, 5  ;;  %v460_v5 = vrot.slane %v458_v62, 5  ;;  %v625_v7 = vld [vmem:[%s9538_s0 + $0xbc] sm:$0x1]  ;;  %v5266_v13 = vrot.slane %v623_v1, 9 }
  0x99   :  { %v464_v6 = vrot.slane %v462_v63, 4  ;;  %v6510_v8 = vld [vmem:[#allocation2 + $0x36c] ss:$36 sps:$4 sm:$0xff]   ;;  %v470_v10 = vrot.slane %v468_v0, 5  ;;  %v776_v14 = vrot.slane %v624_v2, 5  ;;  %v779_v17 = vrot.slane %v625_v7, 5 }
  0x9a   :  { %v6512_v9 = vld [vmem:[#allocation2 + $0x368] ss:$36 sps:$4 sm:$0xff]   ;;  %v455_v11 = vor.u32 %v454_v4, %v451_v3  ;;  %v5295_v15 = vld [vmem:[%s9538_s0 + $0xc0] sm:$0xf]  ;;  %v5296_v16 = vld [vmem:[%s9538_s0 + $0xc4] sm:$0xf]  ;;  %4286 = vmatprep.mubr.bf16.mxu1 %v6510_v8 }
  0x9b   :  { %v465_v12 = vor.u32 %v464_v6, %v460_v5  ;;  %918 = vst [vmem:[#allocation2 + $0x3b4] sm:$0xf] %v5295_v15  ;;  %919 = vst [vmem:[#allocation2 + $0x3d8] sm:$0xf] %v5296_v16  ;;  %v777_v24 = vsel %vm6823_vm4, %v5266_v13, %v776_v14  ;;  %v778_v26 = vrot.slane %v776_v14, 4 }
  0x9c   :  { %v2645_v19 = vld [vmem:[#allocation2 + $0x360] sm:$0xff]  ;;  %v456_v22 = vrot.slane %v455_v11, 4  ;;  %853 = vst [vmem:[#allocation2 + $0x3b0] sm:$0xf] %v777_v24  ;;  %v129_v34 = vld [vmem:[%s9538_s0 + $0xc8] sm:$0x1] }
  0x9d   :  { %v2650_v20 = vld [vmem:[#allocation2 + $0x384] sm:$0xff]  ;;  %v466_v23 = vrot.slane %v465_v12, 4  ;;  %v49_v27 = vld [vmem:[%s9538_s0 + $0xc0] sm:$0xf]  ;;  %v780_v35 = vsel %vm6823_vm4, %v778_v26, %v779_v17  ;;  %v492_v41 = vshll.u32 %v129_v34, 16 }
  0x9e   :  { %v6508_v21 = vld [vmem:[#allocation2 + $0x364] ss:$36 sps:$4 sm:$0xff]   ;;  %v5665_v25 = vcombine.low %v2645_v19, %v2650_v20  ;;  %v461_v30 = vsel %vm6832_vm5, %v456_v22, %v460_v5  ;;  %81 = vst [vmem:[#allocation2 + $0x3f0] sm:$0xf] %v49_v27  ;;  %v127_v32 = vld [vmem:[%s9538_s0 + $0xc0] sm:$0xf] }
  0x9f   :  { %v50_v28 = vld [vmem:[%s9538_s0 + $0xc4] sm:$0xf]  ;;  %4125 = vmatprep.mubr.bf16.mxu0 %v6508_v21  ;;  %v471_v31 = vsel %vm6832_vm5, %v466_v23, %v470_v10  ;;  %4287 = vmatmul.mubr.bf16.gmra.mxu1 %v6512_v9  ;;  %578 = vst [vmem:[#allocation2 + $0x3ac] sm:$0xf] %v461_v30  ;;  %v473_v36 = vshrl.u32 %v127_v32, 16  ;;  %v476_v37 = vshll.u32 %v127_v32, 16 }
  0xa0   :  { %82 = vst [vmem:[#allocation2 + $0x414] sm:$0xf] %v50_v28  ;;  %v128_v33 = vld [vmem:[%s9538_s0 + $0xc4] sm:$0xf]  ;;  %4126 = vmatmul.mubr.bf16.gmra.mxu0 %v5665_v25  ;;  %579 = vst [vmem:[#allocation2 + $0x3d0] sm:$0xf] %v471_v31 }
  0xa1   :  { %v482_v38 = vshll.u32 %v128_v33, 16  ;;  %v626_v39 = vld [vmem:[%s9538_s0 + $0xc0] sm:$0xe]  ;;  %854 = vst [vmem:[#allocation2 + $0x3d4] sm:$0xf] %v780_v35  ;;  %v486_v40 = vshrl.u32 %v128_v33, 16 }
  0xa2   :  { %v627_v42 = vld [vmem:[%s9538_s0 + $0xc4] sm:$0xf]  ;;  %v628_v43 = vld [vmem:[%s9538_s0 + $0xc8] sm:$0x1]  ;;  %v475_v44 = vrot.slane %v473_v36, 4  ;;  %v478_v45 = vrot.slane %v476_v37, 5 }
  0xa3   :  { %v484_v46 = vrot.slane %v482_v38, 5  ;;  %v5267_v47 = vrot.slane %v626_v39, 9  ;;  %v5297_v48 = vld [vmem:[%s9538_s0 + $0xcc] sm:$0xf]  ;;  %v488_v49 = vrot.slane %v486_v40, 4  ;;  %v494_v50 = vrot.slane %v492_v41, 5 }
  0xa4   :  { %v783_v52 = vrot.slane %v627_v42, 5  ;;  %v786_v53 = vrot.slane %v628_v43, 5  ;;  %v5298_v55 = vld [vmem:[%s9538_s0 + $0xd0] sm:$0xf]  ;;  %920 = vst [vmem:[#allocation2 + $0x3fc] sm:$0xf] %v5297_v48  ;;  %v479_v56 = vor.u32 %v478_v45, %v475_v44 }
  0xa5   :  { %921 = vst [vmem:[#allocation2 + $0x420] sm:$0xf] %v5298_v55  ;;  %v489_v57 = vor.u32 %v488_v49, %v484_v46  ;;  %v6519_v2 = vld [vmem:[#allocation2 + $0x3b4] ss:$36 sps:$4 sm:$0xff]   ;;  %v51_v7 = vld [vmem:[%s9538_s0 + $0xcc] sm:$0xf] }
  0xa6   :  { %v784_v58 = vsel %vm6823_vm4, %v5267_v47, %v783_v52  ;;  %v785_v59 = vrot.slane %v783_v52, 4  ;;  %v480_v60 = vrot.slane %v479_v56, 4  ;;  %v2655_v61 = vld [vmem:[#allocation2 + $0x3a8] sm:$0xff]  ;;  %4294 = vmatprep.mubr.bf16.mxu1 %v6519_v2  ;;  %v52_v8 = vld [vmem:[%s9538_s0 + $0xd0] sm:$0xf] }
  0xa7   :  { %855 = vst [vmem:[#allocation2 + $0x3f8] sm:$0xf] %v784_v58  ;;  %v2660_v62 = vld [vmem:[#allocation2 + $0x3cc] sm:$0xff]  ;;  %v490_v0 = vrot.slane %v489_v57, 4  ;;  %83 = vst [vmem:[#allocation2 + $0x438] sm:$0xf] %v51_v7 }
  0xa8   :  { %v6517_v63 = vld [vmem:[#allocation2 + $0x3ac] ss:$36 sps:$4 sm:$0xff]   ;;  %v787_v1 = vsel %vm6823_vm4, %v785_v59, %v786_v53  ;;  %v5674_v3 = vcombine.low %v2655_v61, %v2660_v62  ;;  %v485_v5 = vsel %vm6832_vm5, %v480_v60, %v484_v46  ;;  %84 = vst [vmem:[#allocation2 + $0x45c] sm:$0xf] %v52_v8  ;;  %v132_v11 = vld [vmem:[%s9538_s0 + $0xd4] sm:$0x1] }
  0xa9   :  { %v6521_v4 = vld [vmem:[#allocation2 + $0x3b0] ss:$36 sps:$4 sm:$0xff]   ;;  %856 = vst [vmem:[#allocation2 + $0x41c] sm:$0xf] %v787_v1  ;;  %4133 = vmatprep.mubr.bf16.mxu0 %v6517_v63  ;;  %v495_v6 = vsel %vm6832_vm5, %v490_v0, %v494_v50  ;;  %580 = vst [vmem:[#allocation2 + $0x3f4] sm:$0xf] %v485_v5 }
  0xaa   :  { %4134 = vmatmul.mubr.bf16.gmra.mxu0 %v5674_v3  ;;  %581 = vst [vmem:[#allocation2 + $0x418] sm:$0xf] %v495_v6  ;;  %4295 = vmatmul.mubr.bf16.gmra.mxu1 %v6521_v4  ;;  %v130_v9 = vld [vmem:[%s9538_s0 + $0xcc] sm:$0xf]  ;;  %v131_v10 = vld [vmem:[%s9538_s0 + $0xd0] sm:$0xf] }
  0xab   :  { %v497_v12 = vshrl.u32 %v130_v9, 16  ;;  %v500_v13 = vshll.u32 %v130_v9, 16  ;;  %v506_v14 = vshll.u32 %v131_v10, 16  ;;  %v510_v15 = vshrl.u32 %v131_v10, 16  ;;  %v629_v17 = vld [vmem:[%s9538_s0 + $0xcc] sm:$0xe] }
  0xac   :  { %v516_v16 = vshll.u32 %v132_v11, 16  ;;  %v630_v18 = vld [vmem:[%s9538_s0 + $0xd0] sm:$0xf]  ;;  %v631_v23 = vld [vmem:[%s9538_s0 + $0xd4] sm:$0x1]  ;;  %v5268_v31 = vrot.slane %v629_v17, 9 }
  0xad   :  { %v499_v19 = vrot.slane %v497_v12, 4  ;;  %v502_v20 = vrot.slane %v500_v13, 5  ;;  %v508_v21 = vrot.slane %v506_v14, 5  ;;  %v512_v22 = vrot.slane %v510_v15, 4  ;;  %v6525_v24 = vld [vmem:[#allocation2 + $0x3fc] ss:$36 sps:$4 sm:$0xff]  }
  0xae   :  { %v518_v26 = vrot.slane %v516_v16, 5  ;;  %v790_v32 = vrot.slane %v630_v18, 5  ;;  %v5299_v33 = vld [vmem:[%s9538_s0 + $0xd8] sm:$0xf]  ;;  %4302 = vmatprep.mubr.bf16.mxu1 %v6525_v24  ;;  %v793_v36 = vrot.slane %v631_v23, 5 }
  0xaf   :  { %v503_v28 = vor.u32 %v502_v20, %v499_v19  ;;  %v513_v30 = vor.u32 %v512_v22, %v508_v21  ;;  %v5300_v37 = vld [vmem:[%s9538_s0 + $0xdc] sm:$0xf]  ;;  %922 = vst [vmem:[#allocation2 + $0x444] sm:$0xf] %v5299_v33  ;;  %v5301_v46 = vld [vmem:[%s9538_s0 + $0xc] sm:$0xf] }
  0xb0   :  { %v6528_v25 = vld [vmem:[#allocation2 + $0x3f8] ss:$36 sps:$4 sm:$0xff]   ;;  %v2665_v27 = vld [vmem:[#allocation2 + $0x3f0] sm:$0xff]  ;;  %v791_v41 = vsel %vm6823_vm4, %v5268_v31, %v790_v32  ;;  %923 = vst [vmem:[#allocation2 + $0x468] sm:$0xf] %v5300_v37  ;;  %v792_v42 = vrot.slane %v790_v32, 4 }
  0xb1   :  { %v2670_v34 = vld [vmem:[#allocation2 + $0x414] sm:$0xff]  ;;  %v504_v39 = vrot.slane %v503_v28, 4  ;;  %v514_v40 = vrot.slane %v513_v30, 4  ;;  %857 = vst [vmem:[#allocation2 + $0x440] sm:$0xf] %v791_v41  ;;  %v973_v49 = vshrl.u32 %v5301_v46, 16 }
  0xb2   :  { %v6523_v35 = vld [vmem:[#allocation2 + $0x3f4] ss:$36 sps:$4 sm:$0xff]   ;;  %v5683_v38 = vcombine.low %v2665_v27, %v2670_v34  ;;  %4303 = vmatmul.mubr.bf16.gmra.mxu1 %v6528_v25  ;;  %v794_v45 = vsel %vm6823_vm4, %v792_v42, %v793_v36  ;;  %v5302_v47 = vld [vmem:[%s9538_s0 + $0x10] sm:$0xf]  ;;  %v976_v50 = vshll.u32 %v5301_v46, 16 }
  0xb3   :  { %4141 = vmatprep.mubr.bf16.mxu0 %v6523_v35  ;;  %v509_v43 = vsel %vm6832_vm5, %v504_v39, %v508_v21  ;;  %v519_v44 = vsel %vm6832_vm5, %v514_v40, %v518_v26  ;;  %858 = vst [vmem:[#allocation2 + $0x464] sm:$0xf] %v794_v45  ;;  %v5303_v48 = vld [vmem:[%s9538_s0 + $0x14] sm:$0x1]  ;;  %v982_v52 = vshll.u32 %v5302_v47, 16  ;;  %v986_v53 = vshrl.u32 %v5302_v47, 16 }
  0xb4   :  { %4142 = vmatmul.mubr.bf16.gmra.mxu0 %v5683_v38  ;;  %582 = vst [vmem:[#allocation2 + $0x43c] sm:$0xf] %v509_v43  ;;  %583 = vst [vmem:[#allocation2 + $0x460] sm:$0xf] %v519_v44  ;;  %v992_v55 = vshll.u32 %v5303_v48, 16  ;;  %v975_v58 = vrot.slane %v973_v49, 4 }
  0xb5   :  { %v5349_v56 = vld [vmem:[%s9538_s0 + $0xc] sm:$0xe]  ;;  %v5350_v57 = vld [vmem:[%s9538_s0 + $0x10] sm:$0xf]  ;;  %v978_v59 = vrot.slane %v976_v50, 5  ;;  %v984_v60 = vrot.slane %v982_v52, 5 }
  0xb6   :  { %v988_v61 = vrot.slane %v986_v53, 4  ;;  %v5351_v62 = vld [vmem:[%s9538_s0 + $0x14] sm:$0x1]  ;;  %v5397_v63 = vrot.slane %v5349_v56, 9  ;;  %v1518_v0 = vrot.slane %v5350_v57, 5  ;;  %v994_v4 = vrot.slane %v992_v55, 5 }
  0xb7   :  { %v1521_v1 = vrot.slane %v5351_v62, 5  ;;  %v979_v2 = vor.u32 %v978_v59, %v975_v58  ;;  %v5413_v7 = vld [vmem:[%s9538_s0 + $0x18] sm:$0xf]  ;;  %v6536_v13 = vld [vmem:[#allocation2 + $0x444] ss:$36 sps:$4 sm:$0xff]  }
  0xb8   :  { %v989_v3 = vor.u32 %v988_v61, %v984_v60  ;;  %v1519_v5 = vsel %vm6823_vm4, %v5397_v63, %v1518_v0  ;;  %v1520_v6 = vrot.slane %v1518_v0, 4  ;;  %1725 = vst [vmem:[#allocation2 + $0x18] sm:$0xf] %v5413_v7  ;;  %v5414_v19 = vld [vmem:[%s9538_s0 + $0x1c] sm:$0xf]  ;;  %4310 = vmatprep.mubr.bf16.mxu1 %v6536_v13 }
  0xb9   :  { %v980_v11 = vrot.slane %v979_v2, 4  ;;  %1660 = vst [vmem:[#allocation2 + $0x14] sm:$0xf] %v1519_v5  ;;  %v5445_v20 = vld [vmem:[%s9538_s0 + $0x18] sm:$0xf] }
  0xba   :  { %v990_v12 = vrot.slane %v989_v3, 4  ;;  %v6539_v15 = vld [vmem:[#allocation2 + $0x440] ss:$36 sps:$4 sm:$0xff]   ;;  %v1522_v16 = vsel %vm6823_vm4, %v1520_v6, %v1521_v1  ;;  %v5446_v21 = vld [vmem:[%s9538_s0 + $0x1c] sm:$0xf]  ;;  %v1806_v23 = vshrl.u32 %v5445_v20, 16 }
  0xbb   :  { %v2675_v8 = vld [vmem:[#allocation2 + $0x438] sm:$0xff]  ;;  %v985_v17 = vsel %vm6832_vm5, %v980_v11, %v984_v60  ;;  %1661 = vst [vmem:[#allocation2 + $0x38] sm:$0xf] %v1522_v16  ;;  %1726 = vst [vmem:[#allocation2 + $0x3c] sm:$0xf] %v5414_v19  ;;  %v1809_v24 = vshll.u32 %v5445_v20, 16  ;;  %4311 = vmatmul.mubr.bf16.gmra.mxu1 %v6539_v15 }
  0xbc   :  { %v2680_v9 = vld [vmem:[#allocation2 + $0x45c] sm:$0xff]  ;;  %v995_v18 = vsel %vm6832_vm5, %v990_v12, %v994_v4  ;;  %1388 = vst [vmem:[#allocation2 + $0x10] sm:$0xf] %v985_v17  ;;  %v1815_v25 = vshll.u32 %v5446_v21, 16  ;;  %v1819_v26 = vshrl.u32 %v5446_v21, 16  ;;  %v1808_v31 = vrot.slane %v1806_v23, 4 }
  0xbd   :  { %v6534_v10 = vld [vmem:[#allocation2 + $0x43c] ss:$36 sps:$4 sm:$0xff]   ;;  %v5692_v14 = vcombine.low %v2675_v8, %v2680_v9  ;;  %1389 = vst [vmem:[#allocation2 + $0x34] sm:$0xf] %v995_v18  ;;  %v5304_v28 = vld [vmem:[%s9538_s0 + $0x18] sm:$0xf] }
  0xbe   :  { %4149 = vmatprep.mubr.bf16.mxu0 %v6534_v10  ;;  %v5447_v22 = vld [vmem:[%s9538_s0 + $0x20] sm:$0x1]  ;;  %v5305_v30 = vld [vmem:[%s9538_s0 + $0x1c] sm:$0xf]  ;;  %v1811_v32 = vrot.slane %v1809_v24, 5  ;;  %v1817_v33 = vrot.slane %v1815_v25, 5 }
  0xbf   :  { %4150 = vmatmul.mubr.bf16.gmra.mxu0 %v5692_v14  ;;  %v1825_v27 = vshll.u32 %v5447_v22, 16  ;;  %v1821_v34 = vrot.slane %v1819_v26, 4  ;;  %v5306_v35 = vld [vmem:[%s9538_s0 + $0x20] sm:$0x1]  ;;  %v997_v37 = vshrl.u32 %v5304_v28, 16  ;;  %v1000_v38 = vshll.u32 %v5304_v28, 16 }
  0xc0   :  { %v1006_v39 = vshll.u32 %v5305_v30, 16  ;;  %v5352_v40 = vld [vmem:[%s9538_s0 + $0x18] sm:$0xe]  ;;  %v1812_v41 = vor.u32 %v1811_v32, %v1808_v31  ;;  %v1010_v43 = vshrl.u32 %v5305_v30, 16  ;;  %v1016_v44 = vshll.u32 %v5306_v35, 16  ;;  %v6560_v10 = vld [vmem:[%s9537_s1 + $0x230] sm:$0xff]  }
  0xc1   :  { %v1827_v36 = vrot.slane %v1825_v27, 5  ;;  %v1822_v42 = vor.u32 %v1821_v34, %v1817_v33  ;;  %v5353_v45 = vld [vmem:[%s9538_s0 + $0x1c] sm:$0xf]  ;;  %v5354_v46 = vld [vmem:[%s9538_s0 + $0x20] sm:$0x1]  ;;  %v999_v47 = vrot.slane %v997_v37, 4 }
  0xc2   :  { %v1002_v48 = vrot.slane %v1000_v38, 5  ;;  %v1008_v49 = vrot.slane %v1006_v39, 5  ;;  %v5398_v50 = vrot.slane %v5352_v40, 9  ;;  %v5415_v52 = vld [vmem:[%s9538_s0 + $0x24] sm:$0xf]  ;;  %v1813_v53 = vrot.slane %v1812_v41, 4 }
  0xc3   :  { %v1823_v55 = vrot.slane %v1822_v42, 4  ;;  %v1012_v56 = vrot.slane %v1010_v43, 4  ;;  %v1018_v57 = vrot.slane %v1016_v44, 5  ;;  %v5416_v58 = vld [vmem:[%s9538_s0 + $0x28] sm:$0xf]  ;;  %v1525_v61 = vrot.slane %v5353_v45, 5 }
  0xc4   :  { %1727 = vst [vmem:[#allocation2 + $0x60] sm:$0xf] %v5415_v52  ;;  %v6543_v59 = vld [vmem:[#allocation2 + $0x10] ss:$36 sps:$4 sm:$0xff]   ;;  %v1003_v60 = vor.u32 %v1002_v48, %v999_v47  ;;  %v1528_v62 = vrot.slane %v5354_v46, 5  ;;  %v1818_v0 = vsel %vm6832_vm5, %v1813_v53, %v1817_v33  ;;  %v6573_v27 = vld [vmem:[%s9537_s1 + $0x228] sm:$0xff]  }
  0xc5   :  { %1728 = vst [vmem:[#allocation2 + $0x84] sm:$0xf] %v5416_v58  ;;  %v6545_v63 = vld [vmem:[#allocation2 + $0x14] ss:$36 sps:$4 sm:$0xff]   ;;  %v1828_v1 = vsel %vm6832_vm5, %v1823_v55, %v1827_v36  ;;  %v1013_v2 = vor.u32 %v1012_v56, %v1008_v49  ;;  %v5448_v3 = vld [vmem:[%s9538_s0 + $0x24] sm:$0xf]  ;;  %v1526_v6 = vsel %vm6823_vm4, %v5398_v50, %v1525_v61 }
  0xc6   :  { %v5449_v4 = vld [vmem:[%s9538_s0 + $0x28] sm:$0xf]  ;;  %2221 = vst [vmem:[#allocation2 + $0x1c] sm:$0xf] %v1818_v0  ;;  %2222 = vst [vmem:[#allocation2 + $0x40] sm:$0xf] %v1828_v1  ;;  %4351 = vmatprep.mubr.bf16.mxu0 %v6545_v63 }
  0xc7   :  { %v1004_v5 = vrot.slane %v1003_v60, 4  ;;  %v1527_v7 = vrot.slane %v1525_v61, 4  ;;  %v5450_v8 = vld [vmem:[%s9538_s0 + $0x2c] sm:$0x1]  ;;  %v1830_v9 = vshrl.u32 %v5448_v3, 16  ;;  %v1014_v11 = vrot.slane %v1013_v2, 4  ;;  %4352 = vmatmul.mubr.bf16.vlgmr.msra.gmra.mxu0 %v6543_v59 }
  0xc8   :  { %1662 = vst [vmem:[#allocation2 + $0x5c] sm:$0xf] %v1526_v6  ;;  %v1833_v12 = vshll.u32 %v5448_v3, 16  ;;  %v1839_v13 = vshll.u32 %v5449_v4, 16  ;;  %v1843_v14 = vshrl.u32 %v5449_v4, 16  ;;  %v1849_v19 = vshll.u32 %v5450_v8, 16  ;;  %6280 = vmatpush3.bf16.msra.mxu0 %v7437_v29 }
  0xc9   :  { %v5307_v15 = vld [vmem:[%s9538_s0 + $0x24] sm:$0xf]  ;;  %v1009_v16 = vsel %vm6832_vm5, %v1004_v5, %v1008_v49  ;;  %v1529_v17 = vsel %vm6823_vm4, %v1527_v7, %v1528_v62  ;;  %v1832_v18 = vrot.slane %v1830_v9, 4  ;;  %v5308_v20 = vld [vmem:[%s9538_s0 + $0x28] sm:$0xf]  ;;  %v1019_v22 = vsel %vm6832_vm5, %v1014_v11, %v1018_v57  ;;  %6281 = vmatprep.subr.bf16.mxu0 %v6560_v10  ;;  %v6599_v63 = vld [vmem:[%s9537_s1 + $0x218] sm:$0xff]  }
  0xca   :  { %v5309_v21 = vld [vmem:[%s9538_s0 + $0x2c] sm:$0x1]  ;;  %1390 = vst [vmem:[#allocation2 + $0x58] sm:$0xf] %v1009_v16  ;;  %1663 = vst [vmem:[#allocation2 + $0x80] sm:$0xf] %v1529_v17 }
  0xcb   :  { %v1835_v23 = vrot.slane %v1833_v12, 5  ;;  %v1841_v24 = vrot.slane %v1839_v13, 5  ;;  %v1845_v25 = vrot.slane %v1843_v14, 4  ;;  %v5355_v26 = vld [vmem:[%s9538_s0 + $0x24] sm:$0xe]  ;;  %v1851_v28 = vrot.slane %v1849_v19, 5 }
  0xcc   :  { %1391 = vst [vmem:[#allocation2 + $0x7c] sm:$0xf] %v1019_v22  ;;  %v1021_v30 = vshrl.u32 %v5307_v15, 16  ;;  %v1024_v29 = vshll.u32 %v5307_v15, 16  ;;  %v1030_v31 = vshll.u32 %v5308_v20, 16  ;;  %v1034_v35 = vshrl.u32 %v5308_v20, 16  ;;  %6282 = vmatpush3.bf16.msra.mxu0 %v6560_v10 }
  0xcd   :  { %v5356_v32 = vld [vmem:[%s9538_s0 + $0x28] sm:$0xf]  ;;  %v1836_v33 = vor.u32 %v1835_v23, %v1832_v18  ;;  %v1846_v34 = vor.u32 %v1845_v25, %v1841_v24  ;;  %v1040_v36 = vshll.u32 %v5309_v21, 16  ;;  %v5357_v37 = vld [vmem:[%s9538_s0 + $0x2c] sm:$0x1]  ;;  %v5399_v41 = vrot.slane %v5355_v26, 9  ;;  %6283 = vmatprep.subr.bf16.mxu0 %v6573_v27 }
  0xce   :  { %v1023_v38 = vrot.slane %v1021_v30, 4  ;;  %v1026_v39 = vrot.slane %v1024_v29, 5  ;;  %v1032_v40 = vrot.slane %v1030_v31, 5  ;;  %v6548_v42 = vld [vmem:[#allocation2 + $0x18] ss:$36 sps:$4 sm:$0xff]   ;;  %v1036_v47 = vrot.slane %v1034_v35, 4 }
  0xcf   :  { %v1837_v43 = vrot.slane %v1836_v33, 4  ;;  %v1847_v44 = vrot.slane %v1846_v34, 4  ;;  %v6550_v45 = vld [vmem:[#allocation2 + $0x1c] ss:$36 sps:$4 sm:$0xff]   ;;  %v1532_v48 = vrot.slane %v5356_v32, 5  ;;  %v1042_v53 = vrot.slane %v1040_v36, 5 }
  0xd0   :  { %v1027_v46 = vor.u32 %v1026_v39, %v1023_v38  ;;  %v6586_v49 = vld [vmem:[%s9537_s1 + $0x220] sm:$0xff]   ;;  %v1535_v55 = vrot.slane %v5357_v37, 5  ;;  %v5417_v56 = vld [vmem:[%s9538_s0 + $0x30] sm:$0xf]  ;;  %v5418_v57 = vld [vmem:[%s9538_s0 + $0x34] sm:$0xf]  ;;  %4512 = vmatprep.mubr.bf16.mxu1 %v6550_v45  ;;  %v1037_v59 = vor.u32 %v1036_v47, %v1032_v40  ;;  %6284 = vmatpush3.bf16.msra.mxu0 %v6573_v27 }
  0xd1   :  { %v1842_v50 = vsel %vm6832_vm5, %v1837_v43, %v1841_v24  ;;  %v1852_v52 = vsel %vm6832_vm5, %v1847_v44, %v1851_v28  ;;  %v1533_v60 = vsel %vm6823_vm4, %v5399_v41, %v1532_v48  ;;  %v1534_v61 = vrot.slane %v1532_v48, 4  ;;  %1729 = vst [vmem:[#allocation2 + $0xa8] sm:$0xf] %v5417_v56  ;;  %1730 = vst [vmem:[#allocation2 + $0xcc] sm:$0xf] %v5418_v57  ;;  %v6612_v30 = vld [vmem:[%s9537_s1 + $0x210] sm:$0xff]  }
  0xd2   :  { %2223 = vst [vmem:[#allocation2 + $0x64] sm:$0xf] %v1842_v50  ;;  %2224 = vst [vmem:[#allocation2 + $0x88] sm:$0xf] %v1852_v52  ;;  %v1028_v58 = vrot.slane %v1027_v46, 4  ;;  %4513 = vmatmul.mubr.bf16.vlgmr.msra.gmra.mxu1 %v6548_v42  ;;  %v1038_v4 = vrot.slane %v1037_v59, 4  ;;  %6285 = vmatprep.subr.bf16.mxu0 %v6586_v49 }
  0xd3   :  { %v5451_v62 = vld [vmem:[%s9538_s0 + $0x30] sm:$0xf]  ;;  %v6551_v0 = vld [vmem:[#allocation2 + $0x5c] ss:$36 sps:$4 sm:$0xff]   ;;  %1664 = vst [vmem:[#allocation2 + $0xa4] sm:$0xf] %v1533_v60  ;;  %v1536_v5 = vsel %vm6823_vm4, %v1534_v61, %v1535_v55 }
  0xd4   :  { %v6553_v1 = vld [vmem:[#allocation2 + $0x58] ss:$36 sps:$4 sm:$0xff]   ;;  %v1854_v2 = vshrl.u32 %v5451_v62, 16  ;;  %v1033_v3 = vsel %vm6832_vm5, %v1028_v58, %v1032_v40  ;;  %v5452_v6 = vld [vmem:[%s9538_s0 + $0x34] sm:$0xf]  ;;  %v1857_v8 = vshll.u32 %v5451_v62, 16  ;;  %4359 = vmatprep.mubr.bf16.mxu0 %v6551_v0  ;;  %v1043_v14 = vsel %vm6832_vm5, %v1038_v4, %v1042_v53  ;;  %6286 = vmatpush3.bf16.msra.mxu0 %v6586_v49 }
  0xd5   :  { %v5453_v7 = vld [vmem:[%s9538_s0 + $0x38] sm:$0x1]  ;;  %1392 = vst [vmem:[#allocation2 + $0xa0] sm:$0xf] %v1033_v3  ;;  %1665 = vst [vmem:[#allocation2 + $0xc8] sm:$0xf] %v1536_v5  ;;  %4360 = vmatmul.mubr.bf16.gmra.mxu0 %v6553_v1  ;;  %6287 = vmatprep.subr.bf16.mxu0 %v6599_v63 }
  0xd6   :  { %v1856_v9 = vrot.slane %v1854_v2, 4  ;;  %v1863_v10 = vshll.u32 %v5452_v6, 16  ;;  %v1867_v11 = vshrl.u32 %v5452_v6, 16  ;;  %v1873_v12 = vshll.u32 %v5453_v7, 16  ;;  %v5310_v13 = vld [vmem:[%s9538_s0 + $0x30] sm:$0xf] }
  0xd7   :  { %v1859_v15 = vrot.slane %v1857_v8, 5  ;;  %v5311_v16 = vld [vmem:[%s9538_s0 + $0x34] sm:$0xf]  ;;  %v5312_v17 = vld [vmem:[%s9538_s0 + $0x38] sm:$0x1]  ;;  %v1045_v18 = vshrl.u32 %v5310_v13, 16 }
  0xd8   :  { %1393 = vst [vmem:[#allocation2 + $0xc4] sm:$0xf] %v1043_v14  ;;  %v1865_v19 = vrot.slane %v1863_v10, 5  ;;  %v1869_v20 = vrot.slane %v1867_v11, 4  ;;  %v1875_v21 = vrot.slane %v1873_v12, 5  ;;  %v1048_v22 = vshll.u32 %v5310_v13, 16  ;;  %6288 = vmatpush3.bf16.msra.mxu0 %v6599_v63 }
  0xd9   :  { %v5358_v23 = vld [vmem:[%s9538_s0 + $0x30] sm:$0xe]  ;;  %v1860_v24 = vor.u32 %v1859_v15, %v1856_v9  ;;  %v1047_v25 = vrot.slane %v1045_v18, 4  ;;  %v1054_v26 = vshll.u32 %v5311_v16, 16  ;;  %v1058_v27 = vshrl.u32 %v5311_v16, 16  ;;  %v6625_v44 = vld [vmem:[%s9537_s1 + $0x208] sm:$0xff]   ;;  %6289 = vmatprep.subr.bf16.mxu0 %v6612_v30 }
  0xda   :  { %v5359_v28 = vld [vmem:[%s9538_s0 + $0x34] sm:$0xf]  ;;  %v6554_v29 = vld [vmem:[#allocation2 + $0x64] ss:$36 sps:$4 sm:$0xff]   ;;  %v1870_v31 = vor.u32 %v1869_v20, %v1865_v19  ;;  %v1050_v32 = vrot.slane %v1048_v22, 5  ;;  %v1064_v33 = vshll.u32 %v5312_v17, 16 }
  0xdb   :  { %v6556_v34 = vld [vmem:[#allocation2 + $0x60] ss:$36 sps:$4 sm:$0xff]   ;;  %v1861_v35 = vrot.slane %v1860_v24, 4  ;;  %v1056_v36 = vrot.slane %v1054_v26, 5  ;;  %v1060_v37 = vrot.slane %v1058_v27, 4  ;;  %v5400_v38 = vrot.slane %v5358_v23, 9  ;;  %4520 = vmatprep.mubr.bf16.mxu1 %v6554_v29 }
  0xdc   :  { %v1871_v39 = vrot.slane %v1870_v31, 4  ;;  %v1051_v40 = vor.u32 %v1050_v32, %v1047_v25  ;;  %v1066_v41 = vrot.slane %v1064_v33, 5  ;;  %v5360_v42 = vld [vmem:[%s9538_s0 + $0x38] sm:$0x1]  ;;  %v1539_v43 = vrot.slane %v5359_v28, 5  ;;  %4521 = vmatmul.mubr.bf16.gmra.mxu1 %v6556_v34  ;;  %6290 = vmatpush3.bf16.msra.mxu0 %v6612_v30 }
  0xdd   :  { %v1866_v45 = vsel %vm6832_vm5, %v1861_v35, %v1865_v19  ;;  %v1061_v46 = vor.u32 %v1060_v37, %v1056_v36  ;;  %v1542_v47 = vrot.slane %v5360_v42, 5  ;;  %v5419_v48 = vld [vmem:[%s9538_s0 + $0x3c] sm:$0xf]  ;;  %v5420_v49 = vld [vmem:[%s9538_s0 + $0x40] sm:$0xf]  ;;  %6291 = vmatprep.subr.bf16.mxu0 %v6625_v44 }
  0xde   :  { %v1876_v50 = vsel %vm6832_vm5, %v1871_v39, %v1875_v21  ;;  %2225 = vst [vmem:[#allocation2 + $0xac] sm:$0xf] %v1866_v45  ;;  %v1052_v52 = vrot.slane %v1051_v40, 4  ;;  %v1540_v53 = vsel %vm6823_vm4, %v5400_v38, %v1539_v43  ;;  %v1541_v55 = vrot.slane %v1539_v43, 4  ;;  %1731 = vst [vmem:[#allocation2 + $0xf0] sm:$0xf] %v5419_v48 }
  0xdf   :  { %1732 = vst [vmem:[#allocation2 + $0x114] sm:$0xf] %v5420_v49  ;;  %v5454_v56 = vld [vmem:[%s9538_s0 + $0x3c] sm:$0xf]  ;;  %v5455_v57 = vld [vmem:[%s9538_s0 + $0x40] sm:$0xf] }
  0xe0   :  { %v6557_v58 = vld [vmem:[#allocation2 + $0xa4] ss:$36 sps:$4 sm:$0xff]   ;;  %2226 = vst [vmem:[#allocation2 + $0xd0] sm:$0xf] %v1876_v50  ;;  %v1062_v60 = vrot.slane %v1061_v46, 4  ;;  %v1057_v61 = vsel %vm6832_vm5, %v1052_v52, %v1056_v36  ;;  %v1543_v62 = vsel %vm6823_vm4, %v1541_v55, %v1542_v47  ;;  %v1878_v0 = vshrl.u32 %v5454_v56, 16  ;;  %6292 = vmatpush3.bf16.msra.mxu0 %v6625_v44 }
  0xe1   :  { %v6559_v59 = vld [vmem:[#allocation2 + $0xa0] ss:$36 sps:$4 sm:$0xff]   ;;  %1666 = vst [vmem:[#allocation2 + $0xec] sm:$0xf] %v1540_v53  ;;  %v1881_v1 = vshll.u32 %v5454_v56, 16  ;;  %4367 = vmatprep.mubr.bf16.mxu0 %v6557_v58  ;;  %v1887_v4 = vshll.u32 %v5455_v57, 16 }
  0xe2   :  { %v5456_v63 = vld [vmem:[%s9538_s0 + $0x44] sm:$0x1]  ;;  %v5313_v2 = vld [vmem:[%s9538_s0 + $0x3c] sm:$0xf]  ;;  %v1067_v3 = vsel %vm6832_vm5, %v1062_v60, %v1066_v41  ;;  %1394 = vst [vmem:[#allocation2 + $0xe8] sm:$0xf] %v1057_v61  ;;  %4368 = vmatmul.mubr.bf16.gmra.mxu0 %v6559_v59 }
  0xe3   :  { %1667 = vst [vmem:[#allocation2 + $0x110] sm:$0xf] %v1543_v62  ;;  %v1891_v5 = vshrl.u32 %v5455_v57, 16  ;;  %v1897_v6 = vshll.u32 %v5456_v63, 16  ;;  %v5314_v7 = vld [vmem:[%s9538_s0 + $0x40] sm:$0xf] }
  0xe4   :  { %1395 = vst [vmem:[#allocation2 + $0x10c] sm:$0xf] %v1067_v3  ;;  %v1880_v8 = vrot.slane %v1878_v0, 4  ;;  %v1883_v9 = vrot.slane %v1881_v1, 5  ;;  %v5315_v10 = vld [vmem:[%s9538_s0 + $0x44] sm:$0x1] }
  0xe5   :  { %v1069_v11 = vshrl.u32 %v5313_v2, 16  ;;  %v1072_v12 = vshll.u32 %v5313_v2, 16  ;;  %v1889_v13 = vrot.slane %v1887_v4, 5  ;;  %v1893_v14 = vrot.slane %v1891_v5, 4  ;;  %v5361_v17 = vld [vmem:[%s9538_s0 + $0x3c] sm:$0xe] }
  0xe6   :  { %v1899_v15 = vrot.slane %v1897_v6, 5  ;;  %v1078_v16 = vshll.u32 %v5314_v7, 16  ;;  %v1884_v18 = vor.u32 %v1883_v9, %v1880_v8  ;;  %v1082_v21 = vshrl.u32 %v5314_v7, 16  ;;  %v5362_v22 = vld [vmem:[%s9538_s0 + $0x40] sm:$0xf] }
  0xe7   :  { %v1071_v19 = vrot.slane %v1069_v11, 4  ;;  %v1074_v20 = vrot.slane %v1072_v12, 5  ;;  %v1894_v23 = vor.u32 %v1893_v14, %v1889_v13  ;;  %v1088_v25 = vshll.u32 %v5315_v10, 16  ;;  %v5363_v26 = vld [vmem:[%s9538_s0 + $0x44] sm:$0x1] }
  0xe8   :  { %v1080_v24 = vrot.slane %v1078_v16, 5  ;;  %v5401_v27 = vrot.slane %v5361_v17, 9  ;;  %v6561_v28 = vld [vmem:[#allocation2 + $0xac] ss:$36 sps:$4 sm:$0xff]   ;;  %v1885_v29 = vrot.slane %v1884_v18, 4  ;;  %v1084_v33 = vrot.slane %v1082_v21, 4 }
  0xe9   :  { %v6563_v30 = vld [vmem:[#allocation2 + $0xa8] ss:$36 sps:$4 sm:$0xff]   ;;  %v1075_v31 = vor.u32 %v1074_v20, %v1071_v19  ;;  %v1895_v32 = vrot.slane %v1894_v23, 4  ;;  %v1090_v34 = vrot.slane %v1088_v25, 5  ;;  %v1546_v35 = vrot.slane %v5362_v22, 5  ;;  %4528 = vmatprep.mubr.bf16.mxu1 %v6561_v28  ;;  %v6638_v39 = vld [vmem:[%s9537_s1 + $0x200] sm:$0xff]  }
  0xea   :  { %v1890_v36 = vsel %vm6832_vm5, %v1885_v29, %v1889_v13  ;;  %v1549_v38 = vrot.slane %v5363_v26, 5  ;;  %4529 = vmatmul.mubr.bf16.gmra.mxu1 %v6563_v30  ;;  %v6564_v40 = vld [vmem:[#allocation2 + $0xec] ss:$36 sps:$4 sm:$0xff]   ;;  %v1085_v43 = vor.u32 %v1084_v33, %v1080_v24  ;;  %v5421_v47 = vld [vmem:[%s9538_s0 + $0x48] sm:$0xf]  ;;  %6293 = vmatprep.subr.bf16.mxu0 %v6638_v39 }
  0xeb   :  { %v1076_v37 = vrot.slane %v1075_v31, 4  ;;  %v6566_v41 = vld [vmem:[#allocation2 + $0xe8] ss:$36 sps:$4 sm:$0xff]   ;;  %v1900_v42 = vsel %vm6832_vm5, %v1895_v32, %v1899_v15  ;;  %2227 = vst [vmem:[#allocation2 + $0xf4] sm:$0xf] %v1890_v36  ;;  %v1547_v44 = vsel %vm6823_vm4, %v5401_v27, %v1546_v35  ;;  %v1548_v45 = vrot.slane %v1546_v35, 4  ;;  %4375 = vmatprep.mubr.bf16.mxu0 %v6564_v40  ;;  %6294 = vmatpush3.bf16.msra.mxu0 %v6638_v39  ;;  %v5789_v36 = vpop.f32.mrf.mxu0 }
  0xec   :  { %2228 = vst [vmem:[#allocation2 + $0x118] sm:$0xf] %v1900_v42  ;;  %1668 = vst [vmem:[#allocation2 + $0x134] sm:$0xf] %v1547_v44  ;;  %v5422_v48 = vld [vmem:[%s9538_s0 + $0x4c] sm:$0xf]  ;;  %4376 = vmatmul.mubr.bf16.gmra.mxu0 %v6566_v41  ;;  %v5901_v41 = vpop.f32.mrf.mxu1 }
  0xed   :  { %v1081_v46 = vsel %vm6832_vm5, %v1076_v37, %v1080_v24  ;;  %v5457_v49 = vld [vmem:[%s9538_s0 + $0x48] sm:$0xf]  ;;  %v1086_v50 = vrot.slane %v1085_v43, 4  ;;  %v1550_v52 = vsel %vm6823_vm4, %v1548_v45, %v1549_v38  ;;  %1733 = vst [vmem:[#allocation2 + $0x138] sm:$0xf] %v5421_v47  ;;  %v5790_v47 = vpop.f32.mrf.mxu0 }
  0xee   :  { %1396 = vst [vmem:[#allocation2 + $0x130] sm:$0xf] %v1081_v46  ;;  %1734 = vst [vmem:[#allocation2 + $0x15c] sm:$0xf] %v5422_v48  ;;  %v5458_v53 = vld [vmem:[%s9538_s0 + $0x4c] sm:$0xf] }
  0xef   :  { %v5459_v55 = vld [vmem:[%s9538_s0 + $0x50] sm:$0x1]  ;;  %v1902_v56 = vshrl.u32 %v5457_v49, 16  ;;  %1669 = vst [vmem:[#allocation2 + $0x158] sm:$0xf] %v1550_v52  ;;  %v1905_v57 = vshll.u32 %v5457_v49, 16  ;;  %v1091_v62 = vsel %vm6832_vm5, %v1086_v50, %v1090_v34 }
  0xf0   :  { %v1911_v58 = vshll.u32 %v5458_v53, 16  ;;  %v1915_v59 = vshrl.u32 %v5458_v53, 16  ;;  %v1921_v60 = vshll.u32 %v5459_v55, 16  ;;  %v5316_v61 = vld [vmem:[%s9538_s0 + $0x48] sm:$0xf]  ;;  %v5902_v55 = vpop.f32.mrf.mxu1 }
  0xf1   :  { %v1904_v63 = vrot.slane %v1902_v56, 4  ;;  %v5317_v0 = vld [vmem:[%s9538_s0 + $0x4c] sm:$0xf]  ;;  %v5318_v1 = vld [vmem:[%s9538_s0 + $0x50] sm:$0x1]  ;;  %v1093_v2 = vshrl.u32 %v5316_v61, 16 }
  0xf2   :  { %1397 = vst [vmem:[#allocation2 + $0x154] sm:$0xf] %v1091_v62  ;;  %v1907_v3 = vrot.slane %v1905_v57, 5  ;;  %v1913_v4 = vrot.slane %v1911_v58, 5  ;;  %v1917_v5 = vrot.slane %v1915_v59, 4  ;;  %v1923_v6 = vrot.slane %v1921_v60, 5  ;;  %v5792_v62 = vpop.f32.mrf.mxu0 }
  0xf3   :  { %v5364_v7 = vld [vmem:[%s9538_s0 + $0x48] sm:$0xe]  ;;  %v1095_v8 = vrot.slane %v1093_v2, 4  ;;  %v1096_v9 = vshll.u32 %v5316_v61, 16  ;;  %v1102_v10 = vshll.u32 %v5317_v0, 16  ;;  %v1106_v11 = vshrl.u32 %v5317_v0, 16 }
  0xf4   :  { %v5365_v12 = vld [vmem:[%s9538_s0 + $0x4c] sm:$0xf]  ;;  %v1908_v13 = vor.u32 %v1907_v3, %v1904_v63  ;;  %v1918_v14 = vor.u32 %v1917_v5, %v1913_v4  ;;  %v1112_v15 = vshll.u32 %v5318_v1, 16  ;;  %v5366_v16 = vld [vmem:[%s9538_s0 + $0x50] sm:$0x1]  ;;  %v5402_v17 = vrot.slane %v5364_v7, 9 }
  0xf5   :  { %v6567_v18 = vld [vmem:[#allocation2 + $0xf4] ss:$36 sps:$4 sm:$0xff]   ;;  %v1098_v20 = vrot.slane %v1096_v9, 5  ;;  %v1104_v23 = vrot.slane %v1102_v10, 5  ;;  %v1108_v24 = vrot.slane %v1106_v11, 4  ;;  %v1553_v27 = vrot.slane %v5365_v12, 5  ;;  %v5793_v10 = vpop.f32.mrf.mxu0 }
  0xf6   :  { %v6569_v19 = vld [vmem:[#allocation2 + $0xf0] ss:$36 sps:$4 sm:$0xff]   ;;  %v1909_v21 = vrot.slane %v1908_v13, 4  ;;  %v1919_v22 = vrot.slane %v1918_v14, 4  ;;  %4536 = vmatprep.mubr.bf16.mxu1 %v6567_v18  ;;  %v1114_v26 = vrot.slane %v1112_v15, 5  ;;  %v1556_v28 = vrot.slane %v5366_v16, 5 }
  0xf7   :  { %v1099_v25 = vor.u32 %v1098_v20, %v1095_v8  ;;  %v5423_v30 = vld [vmem:[%s9538_s0 + $0x54] sm:$0xf]  ;;  %4537 = vmatmul.mubr.bf16.gmra.mxu1 %v6569_v19  ;;  %v1109_v32 = vor.u32 %v1108_v24, %v1104_v23  ;;  %v5424_v33 = vld [vmem:[%s9538_s0 + $0x58] sm:$0xf]  ;;  %v1554_v40 = vsel %vm6823_vm4, %v5402_v17, %v1553_v27  ;;  %v1555_v43 = vrot.slane %v1553_v27, 4 }
  0xf8   :  { %v1914_v29 = vsel %vm6832_vm5, %v1909_v21, %v1913_v4  ;;  %v1924_v31 = vsel %vm6832_vm5, %v1919_v22, %v1923_v6  ;;  %1735 = vst [vmem:[#allocation2 + $0x180] sm:$0xf] %v5423_v30  ;;  %v5460_v34 = vld [vmem:[%s9538_s0 + $0x54] sm:$0xf]  ;;  %v5461_v35 = vld [vmem:[%s9538_s0 + $0x58] sm:$0xf]  ;;  %v5904_v4 = vpop.f32.mrf.mxu1  ;;  %v5791_v20 = vadd.f32 %v5790_v47, %v5789_v36  ;;  %v5903_v21 = vadd.f32 %v5902_v55, %v5901_v41  ;;  %v5795_v22 = vpop.f32.mrf.mxu0 }
  0xf9   :  { %v6570_v37 = vld [vmem:[#allocation2 + $0x134] ss:$36 sps:$4 sm:$0xff]   ;;  %2229 = vst [vmem:[#allocation2 + $0x13c] sm:$0xf] %v1914_v29  ;;  %2230 = vst [vmem:[#allocation2 + $0x160] sm:$0xf] %v1924_v31  ;;  %v1557_v57 = vsel %vm6823_vm4, %v1555_v43, %v1556_v28 }
  0xfa   :  { %v6572_v38 = vld [vmem:[#allocation2 + $0x130] ss:$36 sps:$4 sm:$0xff]   ;;  %v1100_v39 = vrot.slane %v1099_v25, 4  ;;  %1736 = vst [vmem:[#allocation2 + $0x1a4] sm:$0xf] %v5424_v33  ;;  %v1110_v42 = vrot.slane %v1109_v32, 4  ;;  %4383 = vmatprep.mubr.bf16.mxu0 %v6570_v37  ;;  %v5905_v16 = vpop.f32.mrf.mxu1  ;;  %v5796_v32 = vpop.f32.mrf.mxu0 }
  0xfb   :  { %1670 = vst [vmem:[#allocation2 + $0x17c] sm:$0xf] %v1554_v40  ;;  %v5462_v44 = vld [vmem:[%s9538_s0 + $0x5c] sm:$0x1]  ;;  %v1926_v45 = vshrl.u32 %v5460_v34, 16  ;;  %v1929_v46 = vshll.u32 %v5460_v34, 16  ;;  %4384 = vmatmul.mubr.bf16.gmra.mxu0 %v6572_v38  ;;  %v7832_v38 = vadd.f32 %v5903_v21, %v5791_v20 }
  0xfc   :  { %v1105_v48 = vsel %vm6832_vm5, %v1100_v39, %v1104_v23  ;;  %v1935_v49 = vshll.u32 %v5461_v35, 16  ;;  %v1939_v50 = vshrl.u32 %v5461_v35, 16  ;;  %v1945_v52 = vshll.u32 %v5462_v44, 16  ;;  %v5319_v53 = vld [vmem:[%s9538_s0 + $0x54] sm:$0xf]  ;;  %v5907_v27 = vpop.f32.mrf.mxu1 }
  0xfd   :  { %v1115_v56 = vsel %vm6832_vm5, %v1110_v42, %v1114_v26  ;;  %1398 = vst [vmem:[#allocation2 + $0x178] sm:$0xf] %v1105_v48  ;;  %v1928_v58 = vrot.slane %v1926_v45, 4  ;;  %v1931_v59 = vrot.slane %v1929_v46, 5  ;;  %v5320_v60 = vld [vmem:[%s9538_s0 + $0x58] sm:$0xf]  ;;  %v5794_v44 = vadd.f32 %v5793_v10, %v5792_v62  ;;  %v7836_v46 = vpop.f32.mrf.mxu0 }
  0xfe   :  { %v5321_v61 = vld [vmem:[%s9538_s0 + $0x5c] sm:$0x1]  ;;  %1399 = vst [vmem:[#allocation2 + $0x19c] sm:$0xf] %v1115_v56  ;;  %1671 = vst [vmem:[#allocation2 + $0x1a0] sm:$0xf] %v1557_v57  ;;  %v5908_v39 = vpop.f32.mrf.mxu1  ;;  %v5797_v45 = vadd.f32 %v5796_v32, %v5795_v22 }
  0xff   :  { %v1937_v63 = vrot.slane %v1935_v49, 5  ;;  %v1941_v0 = vrot.slane %v1939_v50, 4  ;;  %v1947_v1 = vrot.slane %v1945_v52, 5  ;;  %v1117_v2 = vshrl.u32 %v5319_v53, 16  ;;  %v5367_v3 = vld [vmem:[%s9538_s0 + $0x54] sm:$0xe] }
 0x100   :  { %v1932_v5 = vor.u32 %v1931_v59, %v1928_v58  ;;  %v1120_v6 = vshll.u32 %v5319_v53, 16  ;;  %v1126_v7 = vshll.u32 %v5320_v60, 16  ;;  %v1130_v8 = vshrl.u32 %v5320_v60, 16  ;;  %v5368_v9 = vld [vmem:[%s9538_s0 + $0x58] sm:$0xf]  ;;  %v7844_v55 = vpop.f32.mrf.mxu1 }
 0x101   :  { %v1942_v11 = vor.u32 %v1941_v0, %v1937_v63  ;;  %v1119_v12 = vrot.slane %v1117_v2, 4  ;;  %v1136_v13 = vshll.u32 %v5321_v61, 16  ;;  %v5369_v14 = vld [vmem:[%s9538_s0 + $0x5c] sm:$0x1]  ;;  %v5403_v15 = vrot.slane %v5367_v3, 9  ;;  %v5799_v61 = vpop.f32.mrf.mxu0 }
 0x102   :  { %v6574_v17 = vld [vmem:[#allocation2 + $0x13c] ss:$36 sps:$4 sm:$0xff]   ;;  %v1933_v18 = vrot.slane %v1932_v5, 4  ;;  %v1122_v19 = vrot.slane %v1120_v6, 5  ;;  %v1128_v25 = vrot.slane %v1126_v7, 5  ;;  %v1132_v26 = vrot.slane %v1130_v8, 4 }
 0x103   :  { %v6576_v23 = vld [vmem:[#allocation2 + $0x138] ss:$36 sps:$4 sm:$0xff]   ;;  %v1943_v24 = vrot.slane %v1942_v11, 4  ;;  %4544 = vmatprep.mubr.bf16.mxu1 %v6574_v17  ;;  %v1138_v29 = vrot.slane %v1136_v13, 5  ;;  %v1560_v31 = vrot.slane %v5368_v9, 5  ;;  %v1563_v35 = vrot.slane %v5369_v14, 5  ;;  %v5801_v10 = vpop.f32.mrf.mxu0 }
 0x104   :  { %v1938_v28 = vsel %vm6832_vm5, %v1933_v18, %v1937_v63  ;;  %v1123_v30 = vor.u32 %v1122_v19, %v1119_v12  ;;  %4545 = vmatmul.mubr.bf16.gmra.mxu1 %v6576_v23  ;;  %v1133_v34 = vor.u32 %v1132_v26, %v1128_v25  ;;  %v5425_v36 = vld [vmem:[%s9538_s0 + $0x60] sm:$0xf]  ;;  %v5426_v37 = vld [vmem:[%s9538_s0 + $0x64] sm:$0xf]  ;;  %v5906_v52 = vadd.f32 %v5905_v16, %v5904_v4  ;;  %v5465_v57 = vld [vmem:[%s9538_s0 + $0x68] sm:$0x1]  ;;  %v5911_v4 = vpop.f32.mrf.mxu1 }
 0x105   :  { %v1948_v33 = vsel %vm6832_vm5, %v1943_v24, %v1947_v1  ;;  %2231 = vst [vmem:[#allocation2 + $0x184] sm:$0xf] %v1938_v28  ;;  %v6577_v40 = vld [vmem:[#allocation2 + $0x17c] ss:$36 sps:$4 sm:$0xff]   ;;  %v1561_v43 = vsel %vm6823_vm4, %v5403_v15, %v1560_v31  ;;  %1737 = vst [vmem:[#allocation2 + $0x1c8] sm:$0xf] %v5425_v36  ;;  %v5909_v53 = vadd.f32 %v5908_v39, %v5907_v27  ;;  %v5802_v22 = vpop.f32.mrf.mxu0 }
 0x106   :  { %v6579_v41 = vld [vmem:[#allocation2 + $0x178] ss:$36 sps:$4 sm:$0xff]   ;;  %2232 = vst [vmem:[#allocation2 + $0x1a8] sm:$0xf] %v1948_v33  ;;  %v1124_v42 = vrot.slane %v1123_v30, 4  ;;  %v1134_v47 = vrot.slane %v1133_v34, 4  ;;  %4391 = vmatprep.mubr.bf16.mxu0 %v6577_v40  ;;  %v5913_v16 = vpop.f32.mrf.mxu1  ;;  %v7870_v27 = vadd.f32 %v5906_v52, %v5794_v44 }
 0x107   :  { %1738 = vst [vmem:[#allocation2 + $0x1ec] sm:$0xf] %v5426_v37  ;;  %v1562_v48 = vrot.slane %v1560_v31, 4  ;;  %1672 = vst [vmem:[#allocation2 + $0x1c4] sm:$0xf] %v1561_v43  ;;  %4392 = vmatmul.mubr.bf16.gmra.mxu0 %v6579_v41  ;;  %v1969_v1 = vshll.u32 %v5465_v57, 16  ;;  %v7872_v28 = vadd.f32 %v5909_v53, %v5797_v45 }
 0x108   :  { %v5463_v49 = vld [vmem:[%s9538_s0 + $0x60] sm:$0xf]  ;;  %v5464_v50 = vld [vmem:[%s9538_s0 + $0x64] sm:$0xf]  ;;  %v1129_v56 = vsel %vm6832_vm5, %v1124_v42, %v1128_v25  ;;  %v1139_v62 = vsel %vm6832_vm5, %v1134_v47, %v1138_v29  ;;  %v5324_v8 = vld [vmem:[%s9538_s0 + $0x68] sm:$0x1]  ;;  %v5914_v30 = vpop.f32.mrf.mxu1 }
 0x109   :  { %v1950_v58 = vshrl.u32 %v5463_v49, 16  ;;  %v1953_v59 = vshll.u32 %v5463_v49, 16  ;;  %v1959_v60 = vshll.u32 %v5464_v50, 16  ;;  %1400 = vst [vmem:[#allocation2 + $0x1c0] sm:$0xf] %v1129_v56  ;;  %v1564_v63 = vsel %vm6823_vm4, %v1562_v48, %v1563_v35  ;;  %v7877_v35 = vpop.f32.mrf.mxu0 }
 0x10a   :  { %v1963_v0 = vshrl.u32 %v5464_v50, 16  ;;  %v5322_v2 = vld [vmem:[%s9538_s0 + $0x60] sm:$0xf]  ;;  %v5323_v3 = vld [vmem:[%s9538_s0 + $0x64] sm:$0xf]  ;;  %v1971_v12 = vrot.slane %v1969_v1, 5  ;;  %v7882_v42 = vpop.f32.mrf.mxu1  ;;  %v7893_v49 = vadd.f32 %v5799_v61, %v7836_v46  ;;  %v5915_v1 = vadd.f32 %v5914_v30, %v5913_v16 }
 0x10b   :  { %1401 = vst [vmem:[#allocation2 + $0x1e4] sm:$0xf] %v1139_v62  ;;  %1673 = vst [vmem:[#allocation2 + $0x1e8] sm:$0xf] %v1564_v63  ;;  %v1952_v5 = vrot.slane %v1950_v58, 4  ;;  %v1955_v6 = vrot.slane %v1953_v59, 5  ;;  %v7895_v50 = vpop.f32.mrf.mxu0  ;;  %v5912_v59 = vadd.f32 %v5911_v4, %v7844_v55 }
 0x10c   :  { %v1961_v7 = vrot.slane %v1959_v60, 5  ;;  %v1141_v9 = vshrl.u32 %v5322_v2, 16  ;;  %v1965_v11 = vrot.slane %v1963_v0, 4  ;;  %v1144_v13 = vshll.u32 %v5322_v2, 16  ;;  %v5370_v15 = vld [vmem:[%s9538_s0 + $0x60] sm:$0xe]  ;;  %v7902_v60 = vpop.f32.mrf.mxu1 }
 0x10d   :  { %v1150_v14 = vshll.u32 %v5323_v3, 16  ;;  %v1956_v17 = vor.u32 %v1955_v6, %v1952_v5  ;;  %v1154_v19 = vshrl.u32 %v5323_v3, 16  ;;  %v1160_v20 = vshll.u32 %v5324_v8, 16  ;;  %v5371_v21 = vld [vmem:[%s9538_s0 + $0x64] sm:$0xf] }
 0x10e   :  { %v1143_v18 = vrot.slane %v1141_v9, 4  ;;  %v6580_v23 = vld [vmem:[#allocation2 + $0x184] ss:$36 sps:$4 sm:$0xff]   ;;  %v1966_v25 = vor.u32 %v1965_v11, %v1961_v7  ;;  %v1146_v26 = vrot.slane %v1144_v13, 5  ;;  %v5404_v39 = vrot.slane %v5370_v15, 9  ;;  %v7915_v6 = vpop.f32.mrf.mxu1  ;;  %v5807_v13 = vpop.f32.mrf.mxu0 }
 0x10f   :  { %v6582_v24 = vld [vmem:[#allocation2 + $0x180] ss:$36 sps:$4 sm:$0xff]   ;;  %v1957_v29 = vrot.slane %v1956_v17, 4  ;;  %v1152_v31 = vrot.slane %v1150_v14, 5  ;;  %v1156_v32 = vrot.slane %v1154_v19, 4  ;;  %v1162_v33 = vrot.slane %v1160_v20, 5  ;;  %4552 = vmatprep.mubr.bf16.mxu1 %v6580_v23 }
 0x110   :  { %v5372_v34 = vld [vmem:[%s9538_s0 + $0x68] sm:$0x1]  ;;  %v1967_v36 = vrot.slane %v1966_v25, 4  ;;  %v1147_v37 = vor.u32 %v1146_v26, %v1143_v18  ;;  %v1567_v40 = vrot.slane %v5371_v21, 5  ;;  %v5427_v41 = vld [vmem:[%s9538_s0 + $0x6c] sm:$0xf]  ;;  %4553 = vmatmul.mubr.bf16.gmra.mxu1 %v6582_v24  ;;  %v5803_v0 = vadd.f32 %v5802_v22, %v5801_v10  ;;  %v5920_v19 = vpop.f32.mrf.mxu1  ;;  %v5808_v25 = vpop.f32.mrf.mxu0 }
 0x111   :  { %v1962_v43 = vsel %vm6832_vm5, %v1957_v29, %v1961_v7  ;;  %v1157_v44 = vor.u32 %v1156_v32, %v1152_v31  ;;  %v1570_v45 = vrot.slane %v5372_v34, 5  ;;  %v5428_v47 = vld [vmem:[%s9538_s0 + $0x70] sm:$0xf]  ;;  %1739 = vst [vmem:[#allocation2 + $0x210] sm:$0xf] %v5427_v41 }
 0x112   :  { %v5466_v48 = vld [vmem:[%s9538_s0 + $0x6c] sm:$0xf]  ;;  %v6583_v52 = vld [vmem:[#allocation2 + $0x1c4] ss:$36 sps:$4 sm:$0xff]   ;;  %v1972_v56 = vsel %vm6832_vm5, %v1967_v36, %v1971_v12  ;;  %2233 = vst [vmem:[#allocation2 + $0x1cc] sm:$0xf] %v1962_v43  ;;  %v1568_v58 = vsel %vm6823_vm4, %v5404_v39, %v1567_v40 }
 0x113   :  { %v6585_v53 = vld [vmem:[#allocation2 + $0x1c0] ss:$36 sps:$4 sm:$0xff]   ;;  %v1148_v57 = vrot.slane %v1147_v37, 4  ;;  %1740 = vst [vmem:[#allocation2 + $0x234] sm:$0xf] %v5428_v47  ;;  %v1158_v46 = vrot.slane %v1157_v44, 4  ;;  %4399 = vmatprep.mubr.bf16.mxu0 %v6583_v52  ;;  %v7941_v47 = vadd.f32 %v5915_v1, %v5803_v0 }
 0x114   :  { %2234 = vst [vmem:[#allocation2 + $0x1f0] sm:$0xf] %v1972_v56  ;;  %v1569_v61 = vrot.slane %v1567_v40, 4  ;;  %1674 = vst [vmem:[#allocation2 + $0x20c] sm:$0xf] %v1568_v58  ;;  %v1974_v2 = vshrl.u32 %v5466_v48, 16  ;;  %4400 = vmatmul.mubr.bf16.gmra.mxu0 %v6585_v53  ;;  %v5810_v40 = vpop.f32.mrf.mxu0 }
 0x115   :  { %v5467_v62 = vld [vmem:[%s9538_s0 + $0x70] sm:$0xf]  ;;  %v5468_v63 = vld [vmem:[%s9538_s0 + $0x74] sm:$0x1]  ;;  %v1153_v55 = vsel %vm6832_vm5, %v1148_v57, %v1152_v31  ;;  %v1977_v3 = vshll.u32 %v5466_v48, 16  ;;  %v1163_v7 = vsel %vm6832_vm5, %v1158_v46, %v1162_v33  ;;  %v7936_v33 = vpop.f32.mrf.mxu1  ;;  %v5806_v48 = vadd.f32 %v7895_v50, %v7877_v35 }
 0x116   :  { %v1983_v4 = vshll.u32 %v5467_v62, 16  ;;  %v5325_v5 = vld [vmem:[%s9538_s0 + $0x84] sm:$0xf]  ;;  %1402 = vst [vmem:[#allocation2 + $0x208] sm:$0xf] %v1153_v55  ;;  %v1571_v8 = vsel %vm6823_vm4, %v1569_v61, %v1570_v45  ;;  %v1987_v9 = vshrl.u32 %v5467_v62, 16  ;;  %v7939_v45 = vadd.f32 %v5912_v59, %v7893_v49  ;;  %v5811_v46 = vpop.f32.mrf.mxu0 }
 0x117   :  { %v1993_v10 = vshll.u32 %v5468_v63, 16  ;;  %v5326_v11 = vld [vmem:[%s9538_s0 + $0x88] sm:$0xf]  ;;  %v5327_v12 = vld [vmem:[%s9538_s0 + $0x8c] sm:$0x1]  ;;  %v1976_v14 = vrot.slane %v1974_v2, 4  ;;  %v7945_v52 = vpop.f32.mrf.mxu1  ;;  %v5918_v35 = vadd.f32 %v7902_v60, %v7882_v42 }
 0x118   :  { %1403 = vst [vmem:[#allocation2 + $0x22c] sm:$0xf] %v1163_v7  ;;  %1675 = vst [vmem:[#allocation2 + $0x230] sm:$0xf] %v1571_v8  ;;  %v1979_v15 = vrot.slane %v1977_v3, 5  ;;  %v1985_v16 = vrot.slane %v1983_v4, 5  ;;  %v5809_v3 = vadd.f32 %v5808_v25, %v5807_v13  ;;  %v5921_v8 = vadd.f32 %v5920_v19, %v7915_v6 }
 0x119   :  { %v1165_v17 = vshrl.u32 %v5325_v5, 16  ;;  %v5373_v18 = vld [vmem:[%s9538_s0 + $0x84] sm:$0xe]  ;;  %v1989_v20 = vrot.slane %v1987_v9, 4  ;;  %v1995_v21 = vrot.slane %v1993_v10, 5  ;;  %v1168_v22 = vshll.u32 %v5325_v5, 16  ;;  %v7954_v50 = vpop.f32.mrf.mxu1  ;;  %v5813_v9 = vpop.f32.mrf.mxu0 }
 0x11a   :  { %v1174_v23 = vshll.u32 %v5326_v11, 16  ;;  %v5374_v24 = vld [vmem:[%s9538_s0 + $0x88] sm:$0xf]  ;;  %v1980_v26 = vor.u32 %v1979_v15, %v1976_v14  ;;  %v1178_v29 = vshrl.u32 %v5326_v11, 16  ;;  %v1184_v31 = vshll.u32 %v5327_v12, 16 }
 0x11b   :  { %v1167_v30 = vrot.slane %v1165_v17, 4  ;;  %v5375_v32 = vld [vmem:[%s9538_s0 + $0x8c] sm:$0x1]  ;;  %v1990_v34 = vor.u32 %v1989_v20, %v1985_v16  ;;  %v1170_v36 = vrot.slane %v1168_v22, 5  ;;  %v5405_v39 = vrot.slane %v5373_v18, 9  ;;  %v5926_v10 = vpop.f32.mrf.mxu1 }
 0x11c   :  { %v1176_v37 = vrot.slane %v1174_v23, 5  ;;  %v6587_v41 = vld [vmem:[#allocation2 + $0x1cc] ss:$36 sps:$4 sm:$0xff]   ;;  %v1981_v44 = vrot.slane %v1980_v26, 4  ;;  %v1180_v57 = vrot.slane %v1178_v29, 4  ;;  %v1186_v58 = vrot.slane %v1184_v31, 5 }
 0x11d   :  { %v6589_v43 = vld [vmem:[#allocation2 + $0x1c8] ss:$36 sps:$4 sm:$0xff]   ;;  %v1991_v53 = vrot.slane %v1990_v34, 4  ;;  %v1171_v56 = vor.u32 %v1170_v36, %v1167_v30  ;;  %4560 = vmatprep.mubr.bf16.mxu1 %v6587_v41  ;;  %v1574_v62 = vrot.slane %v5374_v24, 5  ;;  %v1577_v63 = vrot.slane %v5375_v32, 5  ;;  %v7984_v22 = vpop.f32.mrf.mxu1 }
 0x11e   :  { %v1986_v61 = vsel %vm6832_vm5, %v1981_v44, %v1985_v16  ;;  %v5429_v49 = vld [vmem:[%s9538_s0 + $0x90] sm:$0xf]  ;;  %4561 = vmatmul.mubr.bf16.gmra.mxu1 %v6589_v43  ;;  %v1181_v2 = vor.u32 %v1180_v57, %v1176_v37  ;;  %v5430_v42 = vld [vmem:[%s9538_s0 + $0x94] sm:$0xf]  ;;  %v7966_v7 = vadd.f32 %v5918_v35, %v5806_v48  ;;  %v5471_v14 = vld [vmem:[%s9538_s0 + $0x98] sm:$0x1]  ;;  %v7977_v16 = vadd.f32 %v5811_v46, %v5810_v40 }
 0x11f   :  { %v6590_v59 = vld [vmem:[#allocation2 + $0x20c] ss:$36 sps:$4 sm:$0xff]   ;;  %v1996_v1 = vsel %vm6832_vm5, %v1991_v53, %v1995_v21  ;;  %2235 = vst [vmem:[#allocation2 + $0x214] sm:$0xf] %v1986_v61  ;;  %v1172_v55 = vrot.slane %v1171_v56, 4  ;;  %v1575_v4 = vsel %vm6823_vm4, %v5405_v39, %v1574_v62  ;;  %v1576_v5 = vrot.slane %v1574_v62, 4  ;;  %v5814_v21 = vpop.f32.mrf.mxu0  ;;  %v8009_v62 = vpop.f32.mrf.mxu1 }
 0x120   :  { %v6592_v0 = vld [vmem:[#allocation2 + $0x208] ss:$36 sps:$4 sm:$0xff]   ;;  %1741 = vst [vmem:[#allocation2 + $0x258] sm:$0xf] %v5429_v49  ;;  %2236 = vst [vmem:[#allocation2 + $0x238] sm:$0xf] %v1996_v1  ;;  %4407 = vmatprep.mubr.bf16.mxu0 %v6590_v59  ;;  %v7994_v29 = vadd.f32 %v5921_v8, %v5809_v3  ;;  %v5924_v59 = vadd.f32 %v7945_v52, %v7936_v33  ;;  %v5927_v1 = vadd.f32 %v5926_v10, %v7954_v50 }
 0x121   :  { %v5469_v60 = vld [vmem:[%s9538_s0 + $0x90] sm:$0xf]  ;;  %v1177_v11 = vsel %vm6832_vm5, %v1172_v55, %v1176_v37  ;;  %v1182_v12 = vrot.slane %v1181_v2, 4  ;;  %1676 = vst [vmem:[#allocation2 + $0x254] sm:$0xf] %v1575_v4  ;;  %4408 = vmatmul.mubr.bf16.gmra.mxu0 %v6592_v0  ;;  %v1578_v6 = vsel %vm6823_vm4, %v1576_v5, %v1577_v63  ;;  %v2017_v25 = vshll.u32 %v5471_v14, 16  ;;  %v7999_v39 = vpop.f32.mrf.mxu0 }
 0x122   :  { %1742 = vst [vmem:[#allocation2 + $0x27c] sm:$0xf] %v5430_v42  ;;  %v5470_v13 = vld [vmem:[%s9538_s0 + $0x94] sm:$0xf]  ;;  %v1998_v15 = vshrl.u32 %v5469_v60, 16  ;;  %v2001_v17 = vshll.u32 %v5469_v60, 16  ;;  %v5815_v0 = vadd.f32 %v5814_v21, %v5813_v9 }
 0x123   :  { %1404 = vst [vmem:[#allocation2 + $0x250] sm:$0xf] %v1177_v11  ;;  %v2007_v18 = vshll.u32 %v5470_v13, 16  ;;  %v2011_v19 = vshrl.u32 %v5470_v13, 16  ;;  %v5328_v20 = vld [vmem:[%s9538_s0 + $0x90] sm:$0xf]  ;;  %v1187_v23 = vsel %vm6832_vm5, %v1182_v12, %v1186_v58  ;;  %v8007_v61 = vpop.f32.mrf.mxu0 }
 0x124   :  { %1677 = vst [vmem:[#allocation2 + $0x278] sm:$0xf] %v1578_v6  ;;  %v2000_v24 = vrot.slane %v1998_v15, 4  ;;  %v5329_v26 = vld [vmem:[%s9538_s0 + $0x94] sm:$0xf]  ;;  %v2003_v31 = vrot.slane %v2001_v17, 5  ;;  %v8032_v15 = vpop.f32.mrf.mxu1  ;;  %v8039_v21 = vadd.f32 %v5927_v1, %v5815_v0 }
 0x125   :  { %v5330_v30 = vld [vmem:[%s9538_s0 + $0x98] sm:$0x1]  ;;  %1405 = vst [vmem:[#allocation2 + $0x274] sm:$0xf] %v1187_v23  ;;  %v2009_v32 = vrot.slane %v2007_v18, 5  ;;  %v2013_v34 = vrot.slane %v2011_v19, 4  ;;  %v8020_v52 = vpop.f32.mrf.mxu0 }
 0x126   :  { %v1189_v36 = vshrl.u32 %v5328_v20, 16  ;;  %v5376_v37 = vld [vmem:[%s9538_s0 + $0x90] sm:$0xe]  ;;  %v2019_v40 = vrot.slane %v2017_v25, 5  ;;  %v1192_v41 = vshll.u32 %v5328_v20, 16  ;;  %v1198_v43 = vshll.u32 %v5329_v26, 16 }
 0x127   :  { %v1202_v44 = vshrl.u32 %v5329_v26, 16  ;;  %v5377_v48 = vld [vmem:[%s9538_s0 + $0x94] sm:$0xf]  ;;  %v2004_v53 = vor.u32 %v2003_v31, %v2000_v24  ;;  %v2014_v56 = vor.u32 %v2013_v34, %v2009_v32  ;;  %v1208_v58 = vshll.u32 %v5330_v30, 16  ;;  %v5378_v46 = vld [vmem:[%s9538_s0 + $0x98] sm:$0x1]  ;;  %v8041_v23 = vpop.f32.mrf.mxu0 }
 0x128   :  { %v1191_v57 = vrot.slane %v1189_v36, 4  ;;  %v6593_v63 = vld [vmem:[#allocation2 + $0x214] ss:$36 sps:$4 sm:$0xff]   ;;  %v1194_v35 = vrot.slane %v1192_v41, 5  ;;  %v1200_v3 = vrot.slane %v1198_v43, 5  ;;  %v5406_v8 = vrot.slane %v5376_v37, 9 }
 0x129   :  { %v6595_v49 = vld [vmem:[#allocation2 + $0x210] ss:$36 sps:$4 sm:$0xff]   ;;  %v2005_v55 = vrot.slane %v2004_v53, 4  ;;  %v2015_v2 = vrot.slane %v2014_v56, 4  ;;  %v1204_v4 = vrot.slane %v1202_v44, 4  ;;  %4568 = vmatprep.mubr.bf16.mxu1 %v6593_v63  ;;  %v1210_v60 = vrot.slane %v1208_v58, 5  ;;  %v8053_v41 = vpop.f32.mrf.mxu0 }
 0x12a   :  { %v5431_v5 = vld [vmem:[%s9538_s0 + $0x9c] sm:$0xf]  ;;  %v1195_v42 = vor.u32 %v1194_v35, %v1191_v57  ;;  %v1581_v11 = vrot.slane %v5377_v48, 5  ;;  %v5432_v33 = vld [vmem:[%s9538_s0 + $0xa0] sm:$0xf]  ;;  %4569 = vmatmul.mubr.bf16.gmra.mxu1 %v6595_v49  ;;  %v1584_v12 = vrot.slane %v5378_v46, 5  ;;  %v8037_v20 = vadd.f32 %v5924_v59, %v7977_v16 }
 0x12b   :  { %1743 = vst [vmem:[#allocation2 + $0x2a0] sm:$0xf] %v5431_v5  ;;  %v2010_v50 = vsel %vm6832_vm5, %v2005_v55, %v2009_v32  ;;  %v2020_v9 = vsel %vm6832_vm5, %v2015_v2, %v2019_v40  ;;  %v1205_v10 = vor.u32 %v1204_v4, %v1200_v3  ;;  %1744 = vst [vmem:[#allocation2 + $0x2c4] sm:$0xf] %v5432_v33  ;;  %v5472_v13 = vld [vmem:[%s9538_s0 + $0x9c] sm:$0xf]  ;;  %v8046_v32 = vpop.f32.mrf.mxu1  ;;  %v5823_v0 = vpop.f32.mrf.mxu0 }
 0x12c   :  { %v5473_v14 = vld [vmem:[%s9538_s0 + $0xa0] sm:$0xf]  ;;  %v6596_v6 = vld [vmem:[#allocation2 + $0x254] ss:$36 sps:$4 sm:$0xff]   ;;  %2237 = vst [vmem:[#allocation2 + $0x25c] sm:$0xf] %v2010_v50  ;;  %v1582_v19 = vsel %vm6823_vm4, %v5406_v8, %v1581_v11 }
 0x12d   :  { %v6598_v17 = vld [vmem:[#allocation2 + $0x250] ss:$36 sps:$4 sm:$0xff]   ;;  %2238 = vst [vmem:[#allocation2 + $0x280] sm:$0xf] %v2020_v9  ;;  %v1196_v18 = vrot.slane %v1195_v42, 4  ;;  %v1206_v24 = vrot.slane %v1205_v10, 4  ;;  %4415 = vmatprep.mubr.bf16.mxu0 %v6596_v6  ;;  %v8065_v58 = vpop.f32.mrf.mxu1 }
 0x12e   :  { %v1583_v25 = vrot.slane %v1581_v11, 4  ;;  %1678 = vst [vmem:[#allocation2 + $0x29c] sm:$0xf] %v1582_v19  ;;  %v5474_v26 = vld [vmem:[%s9538_s0 + $0xa4] sm:$0x1]  ;;  %v2022_v30 = vshrl.u32 %v5472_v13, 16  ;;  %4416 = vmatmul.mubr.bf16.gmra.mxu0 %v6598_v17 }
 0x12f   :  { %v2025_v31 = vshll.u32 %v5472_v13, 16  ;;  %v1201_v16 = vsel %vm6832_vm5, %v1196_v18, %v1200_v3  ;;  %v2031_v34 = vshll.u32 %v5473_v14, 16  ;;  %v2035_v36 = vshrl.u32 %v5473_v14, 16  ;;  %v5331_v40 = vld [vmem:[%s9538_s0 + $0x9c] sm:$0xf]  ;;  %v5935_v5 = vpop.f32.mrf.mxu1  ;;  %v5825_v14 = vpop.f32.mrf.mxu0 }
 0x130   :  { %v2041_v37 = vshll.u32 %v5474_v26, 16  ;;  %v1211_v43 = vsel %vm6832_vm5, %v1206_v24, %v1210_v60  ;;  %1406 = vst [vmem:[#allocation2 + $0x298] sm:$0xf] %v1201_v16  ;;  %v1585_v44 = vsel %vm6823_vm4, %v1583_v25, %v1584_v12  ;;  %v2024_v48 = vrot.slane %v2022_v30, 4  ;;  %v5332_v56 = vld [vmem:[%s9538_s0 + $0xa0] sm:$0xf] }
 0x131   :  { %v2027_v53 = vrot.slane %v2025_v31, 5  ;;  %v5333_v57 = vld [vmem:[%s9538_s0 + $0xa4] sm:$0x1]  ;;  %1407 = vst [vmem:[#allocation2 + $0x2bc] sm:$0xf] %v1211_v43  ;;  %v2033_v46 = vrot.slane %v2031_v34, 5  ;;  %v5818_v12 = vadd.f32 %v8007_v61, %v7999_v39  ;;  %v5930_v13 = vadd.f32 %v8009_v62, %v7984_v22  ;;  %v8080_v6 = vpop.f32.mrf.mxu1  ;;  %v5826_v34 = vpop.f32.mrf.mxu0 }
 0x132   :  { %1679 = vst [vmem:[#allocation2 + $0x2c0] sm:$0xf] %v1585_v44  ;;  %v2037_v63 = vrot.slane %v2035_v36, 4  ;;  %v2043_v49 = vrot.slane %v2041_v37, 5  ;;  %v1213_v35 = vshrl.u32 %v5331_v40, 16  ;;  %v1216_v55 = vshll.u32 %v5331_v40, 16 }
 0x133   :  { %v5379_v59 = vld [vmem:[%s9538_s0 + $0x9c] sm:$0xe]  ;;  %v2028_v1 = vor.u32 %v2027_v53, %v2024_v48  ;;  %v1222_v2 = vshll.u32 %v5332_v56, 16  ;;  %v1226_v3 = vshrl.u32 %v5332_v56, 16  ;;  %v5380_v4 = vld [vmem:[%s9538_s0 + $0xa0] sm:$0xf]  ;;  %v8084_v39 = vpop.f32.mrf.mxu1  ;;  %v8094_v37 = vadd.f32 %v5930_v13, %v5818_v12 }
 0x134   :  { %v2038_v42 = vor.u32 %v2037_v63, %v2033_v46  ;;  %v1215_v60 = vrot.slane %v1213_v35, 4  ;;  %v1232_v8 = vshll.u32 %v5333_v57, 16  ;;  %v5381_v11 = vld [vmem:[%s9538_s0 + $0xa4] sm:$0x1]  ;;  %v5407_v33 = vrot.slane %v5379_v59, 9 }
 0x135   :  { %v6600_v50 = vld [vmem:[#allocation2 + $0x25c] ss:$36 sps:$4 sm:$0xff]   ;;  %v2029_v9 = vrot.slane %v2028_v1, 4  ;;  %v1218_v10 = vrot.slane %v1216_v55, 5  ;;  %v1224_v19 = vrot.slane %v1222_v2, 5  ;;  %v1228_v24 = vrot.slane %v1226_v3, 4  ;;  %v8105_v63 = vpop.f32.mrf.mxu1 }
 0x136   :  { %v6602_v17 = vld [vmem:[#allocation2 + $0x258] ss:$36 sps:$4 sm:$0xff]   ;;  %v2039_v18 = vrot.slane %v2038_v42, 4  ;;  %v1234_v25 = vrot.slane %v1232_v8, 5  ;;  %4576 = vmatprep.mubr.bf16.mxu1 %v6600_v50  ;;  %v1588_v31 = vrot.slane %v5380_v4, 5  ;;  %v1591_v16 = vrot.slane %v5381_v11, 5 }
 0x137   :  { %v2034_v26 = vsel %vm6832_vm5, %v2029_v9, %v2033_v46  ;;  %v1219_v30 = vor.u32 %v1218_v10, %v1215_v60  ;;  %4577 = vmatmul.mubr.bf16.gmra.mxu1 %v6602_v17  ;;  %v1229_v61 = vor.u32 %v1228_v24, %v1224_v19  ;;  %v5433_v62 = vld [vmem:[%s9538_s0 + $0xa8] sm:$0xf]  ;;  %v5434_v36 = vld [vmem:[%s9538_s0 + $0xac] sm:$0xf]  ;;  %v5821_v40 = vadd.f32 %v8041_v23, %v8020_v52  ;;  %v8103_v46 = vpop.f32.mrf.mxu0  ;;  %v8123_v3 = vpop.f32.mrf.mxu1  ;;  %v5336_v9 = vld [vmem:[%s9538_s0 + $0xb0] sm:$0x1] }
 0x138   :  { %v2044_v22 = vsel %vm6832_vm5, %v2039_v18, %v2043_v49  ;;  %2239 = vst [vmem:[#allocation2 + $0x2a4] sm:$0xf] %v2034_v26  ;;  %v6605_v44 = vld [vmem:[#allocation2 + $0x298] ss:$36 sps:$4 sm:$0xff]   ;;  %v1589_v53 = vsel %vm6823_vm4, %v5407_v33, %v1588_v31  ;;  %1745 = vst [vmem:[#allocation2 + $0x2e8] sm:$0xf] %v5433_v62  ;;  %v5933_v56 = vadd.f32 %v8046_v32, %v8032_v15 }
 0x139   :  { %v6603_v43 = vld [vmem:[#allocation2 + $0x29c] ss:$36 sps:$4 sm:$0xff]   ;;  %2240 = vst [vmem:[#allocation2 + $0x2c8] sm:$0xf] %v2044_v22  ;;  %v1220_v48 = vrot.slane %v1219_v30, 4  ;;  %v5824_v57 = vadd.f32 %v5823_v0, %v8053_v41  ;;  %v1230_v49 = vrot.slane %v1229_v61, 4  ;;  %v5936_v59 = vadd.f32 %v5935_v5, %v8065_v58  ;;  %v8121_v2 = vpop.f32.mrf.mxu0  ;;  %v8143_v24 = vpop.f32.mrf.mxu1 }
 0x13a   :  { %1746 = vst [vmem:[#allocation2 + $0x30c] sm:$0xf] %v5434_v36  ;;  %v1590_v52 = vrot.slane %v1588_v31, 4  ;;  %1680 = vst [vmem:[#allocation2 + $0x2e4] sm:$0xf] %v1589_v53  ;;  %v8114_v15 = vadd.f32 %v5826_v34, %v5825_v14  ;;  %4423 = vmatprep.mubr.bf16.mxu0 %v6603_v43  ;;  %v1256_v31 = vshll.u32 %v5336_v9, 16  ;;  %v8150_v43 = vadd.f32 %v5933_v56, %v5821_v40 }
 0x13b   :  { %v5475_v23 = vld [vmem:[%s9538_s0 + $0xa8] sm:$0xf]  ;;  %v5476_v35 = vld [vmem:[%s9538_s0 + $0xac] sm:$0xf]  ;;  %v1225_v32 = vsel %vm6832_vm5, %v1220_v48, %v1224_v19  ;;  %v5477_v41 = vld [vmem:[%s9538_s0 + $0xb0] sm:$0x1]  ;;  %4424 = vmatmul.mubr.bf16.gmra.mxu0 %v6605_v44  ;;  %v1235_v58 = vsel %vm6832_vm5, %v1230_v49, %v1234_v25  ;;  %v8138_v12 = vpop.f32.mrf.mxu0  ;;  %v8152_v44 = vadd.f32 %v5936_v59, %v5824_v57  ;;  %v8154_v48 = vpop.f32.mrf.mxu1 }
 0x13c   :  { %v2046_v0 = vshrl.u32 %v5475_v23, 16  ;;  %v2049_v1 = vshll.u32 %v5475_v23, 16  ;;  %v2055_v55 = vshll.u32 %v5476_v35, 16  ;;  %1408 = vst [vmem:[#allocation2 + $0x2e0] sm:$0xf] %v1225_v32  ;;  %v1592_v4 = vsel %vm6823_vm4, %v1590_v52, %v1591_v16 }
 0x13d   :  { %v2059_v5 = vshrl.u32 %v5476_v35, 16  ;;  %v2065_v42 = vshll.u32 %v5477_v41, 16  ;;  %v5334_v60 = vld [vmem:[%s9538_s0 + $0xa8] sm:$0xf]  ;;  %v5335_v8 = vld [vmem:[%s9538_s0 + $0xac] sm:$0xf]  ;;  %v8148_v34 = vpop.f32.mrf.mxu0  ;;  %v8164_v57 = vpop.f32.mrf.mxu1 }
 0x13e   :  { %1409 = vst [vmem:[#allocation2 + $0x304] sm:$0xf] %v1235_v58  ;;  %1681 = vst [vmem:[#allocation2 + $0x308] sm:$0xf] %v1592_v4  ;;  %v2048_v11 = vrot.slane %v2046_v0, 4  ;;  %v2051_v33 = vrot.slane %v2049_v1, 5 }
 0x13f   :  { %v2057_v50 = vrot.slane %v2055_v55, 5  ;;  %v1237_v10 = vshrl.u32 %v5334_v60, 16  ;;  %v2061_v13 = vrot.slane %v2059_v5, 4  ;;  %v2067_v14 = vrot.slane %v2065_v42, 5  ;;  %v5382_v19 = vld [vmem:[%s9538_s0 + $0xa8] sm:$0xe]  ;;  %v8159_v32 = vpop.f32.mrf.mxu0 }
 0x140   :  { %v1240_v17 = vshll.u32 %v5334_v60, 16  ;;  %v1246_v18 = vshll.u32 %v5335_v8, 16  ;;  %v2052_v25 = vor.u32 %v2051_v33, %v2048_v11  ;;  %v1250_v30 = vshrl.u32 %v5335_v8, 16  ;;  %v5383_v16 = vld [vmem:[%s9538_s0 + $0xac] sm:$0xf] }
 0x141   :  { %v1239_v26 = vrot.slane %v1237_v10, 4  ;;  %v6606_v22 = vld [vmem:[#allocation2 + $0x2a4] ss:$36 sps:$4 sm:$0xff]   ;;  %v2062_v62 = vor.u32 %v2061_v13, %v2057_v50  ;;  %v1258_v23 = vrot.slane %v1256_v31, 5  ;;  %v5384_v35 = vld [vmem:[%s9538_s0 + $0xb0] sm:$0x1]  ;;  %v5939_v42 = vadd.f32 %v8084_v39, %v8080_v6  ;;  %v8176_v60 = vpop.f32.mrf.mxu0  ;;  %v8184_v13 = vpop.f32.mrf.mxu1 }
 0x142   :  { %v6608_v61 = vld [vmem:[#allocation2 + $0x2a0] ss:$36 sps:$4 sm:$0xff]   ;;  %v1242_v36 = vrot.slane %v1240_v17, 5  ;;  %v2053_v53 = vrot.slane %v2052_v25, 4  ;;  %v1248_v49 = vrot.slane %v1246_v18, 5  ;;  %v1252_v52 = vrot.slane %v1250_v30, 4  ;;  %4584 = vmatprep.mubr.bf16.mxu1 %v6606_v22 }
 0x143   :  { %v2063_v41 = vrot.slane %v2062_v62, 4  ;;  %v5408_v1 = vrot.slane %v5382_v19, 9  ;;  %v1595_v40 = vrot.slane %v5383_v16, 5  ;;  %v5435_v56 = vld [vmem:[%s9538_s0 + $0xb4] sm:$0xf]  ;;  %4585 = vmatmul.mubr.bf16.gmra.mxu1 %v6608_v61  ;;  %v1598_v58 = vrot.slane %v5384_v35, 5  ;;  %v8202_v31 = vpop.f32.mrf.mxu0  ;;  %v8204_v16 = vpop.f32.mrf.mxu1 }
 0x144   :  { %v1243_v0 = vor.u32 %v1242_v36, %v1239_v26  ;;  %v2058_v59 = vsel %vm6832_vm5, %v2053_v53, %v2057_v50  ;;  %v1253_v55 = vor.u32 %v1252_v52, %v1248_v49  ;;  %v5436_v4 = vld [vmem:[%s9538_s0 + $0xb8] sm:$0xf]  ;;  %1747 = vst [vmem:[#allocation2 + $0x330] sm:$0xf] %v5435_v56  ;;  %v5478_v5 = vld [vmem:[%s9538_s0 + $0xb4] sm:$0xf]  ;;  %v5830_v10 = vadd.f32 %v8121_v2, %v8103_v46 }
 0x145   :  { %v6609_v8 = vld [vmem:[#allocation2 + $0x2e4] ss:$36 sps:$4 sm:$0xff]   ;;  %v2068_v33 = vsel %vm6832_vm5, %v2063_v41, %v2067_v14  ;;  %2241 = vst [vmem:[#allocation2 + $0x2ec] sm:$0xf] %v2058_v59  ;;  %v1596_v9 = vsel %vm6823_vm4, %v5408_v1, %v1595_v40  ;;  %1748 = vst [vmem:[#allocation2 + $0x354] sm:$0xf] %v5436_v4  ;;  %v8193_v18 = vadd.f32 %v5939_v42, %v8114_v15  ;;  %v5838_v35 = vpop.f32.mrf.mxu0  ;;  %v5950_v41 = vpop.f32.mrf.mxu1 }
 0x146   :  { %v6611_v11 = vld [vmem:[#allocation2 + $0x2e0] ss:$36 sps:$4 sm:$0xff]   ;;  %v1244_v50 = vrot.slane %v1243_v0, 4  ;;  %2242 = vst [vmem:[#allocation2 + $0x310] sm:$0xf] %v2068_v33  ;;  %v1254_v6 = vrot.slane %v1253_v55, 4  ;;  %v5942_v46 = vadd.f32 %v8123_v3, %v8105_v63  ;;  %4431 = vmatprep.mubr.bf16.mxu0 %v6609_v8 }
 0x147   :  { %v1597_v39 = vrot.slane %v1595_v40, 4  ;;  %1682 = vst [vmem:[#allocation2 + $0x32c] sm:$0xf] %v1596_v9  ;;  %v5479_v17 = vld [vmem:[%s9538_s0 + $0xb8] sm:$0xf]  ;;  %v2070_v19 = vshrl.u32 %v5478_v5, 16  ;;  %4432 = vmatmul.mubr.bf16.gmra.mxu0 %v6611_v11  ;;  %v8225_v8 = vpop.f32.mrf.mxu0  ;;  %v8227_v11 = vpop.f32.mrf.mxu1 }
 0x148   :  { %v5480_v14 = vld [vmem:[%s9538_s0 + $0xbc] sm:$0x1]  ;;  %v1249_v2 = vsel %vm6832_vm5, %v1244_v50, %v1248_v49  ;;  %v2073_v25 = vshll.u32 %v5478_v5, 16  ;;  %v2079_v26 = vshll.u32 %v5479_v17, 16  ;;  %v5337_v30 = vld [vmem:[%s9538_s0 + $0xb4] sm:$0xf]  ;;  %v1259_v15 = vsel %vm6832_vm5, %v1254_v6, %v1258_v23 }
 0x149   :  { %1410 = vst [vmem:[#allocation2 + $0x328] sm:$0xf] %v1249_v2  ;;  %v1599_v63 = vsel %vm6823_vm4, %v1597_v39, %v1598_v58  ;;  %v2083_v3 = vshrl.u32 %v5479_v17, 16  ;;  %v2089_v22 = vshll.u32 %v5480_v14, 16  ;;  %v5338_v61 = vld [vmem:[%s9538_s0 + $0xb8] sm:$0xf]  ;;  %v8229_v2 = vadd.f32 %v5942_v46, %v5830_v10 }
 0x14a   :  { %v5339_v62 = vld [vmem:[%s9538_s0 + $0xbc] sm:$0x1]  ;;  %1411 = vst [vmem:[#allocation2 + $0x34c] sm:$0xf] %v1259_v15  ;;  %1683 = vst [vmem:[#allocation2 + $0x350] sm:$0xf] %v1599_v63 }
 0x14b   :  { %v2072_v36 = vrot.slane %v2070_v19, 4  ;;  %v2075_v53 = vrot.slane %v2073_v25, 5  ;;  %v2081_v49 = vrot.slane %v2079_v26, 5  ;;  %v1261_v52 = vshrl.u32 %v5337_v30, 16  ;;  %v5385_v23 = vld [vmem:[%s9538_s0 + $0xb4] sm:$0xe] }
 0x14c   :  { %v2085_v0 = vrot.slane %v2083_v3, 4  ;;  %v2091_v1 = vrot.slane %v2089_v22, 5  ;;  %v1264_v40 = vshll.u32 %v5337_v30, 16  ;;  %v1270_v56 = vshll.u32 %v5338_v61, 16  ;;  %v5386_v59 = vld [vmem:[%s9538_s0 + $0xb8] sm:$0xf]  ;;  %v8235_v3 = vpop.f32.mrf.mxu0 }
 0x14d   :  { %v2076_v55 = vor.u32 %v2075_v53, %v2072_v36  ;;  %v1263_v58 = vrot.slane %v1261_v52, 4  ;;  %v1274_v4 = vshrl.u32 %v5338_v61, 16  ;;  %v1280_v5 = vshll.u32 %v5339_v62, 16  ;;  %v5387_v42 = vld [vmem:[%s9538_s0 + $0xbc] sm:$0x1] }
 0x14e   :  { %v2086_v33 = vor.u32 %v2085_v0, %v2081_v49  ;;  %v1266_v50 = vrot.slane %v1264_v40, 5  ;;  %v1272_v9 = vrot.slane %v1270_v56, 5  ;;  %v5409_v6 = vrot.slane %v5385_v23, 9  ;;  %v6613_v39 = vld [vmem:[#allocation2 + $0x2ec] ss:$36 sps:$4 sm:$0xff]  }
 0x14f   :  { %v6615_v17 = vld [vmem:[#allocation2 + $0x2e8] ss:$36 sps:$4 sm:$0xff]   ;;  %v2077_v14 = vrot.slane %v2076_v55, 4  ;;  %v5833_v19 = vadd.f32 %v8148_v34, %v8138_v12  ;;  %v5945_v25 = vadd.f32 %v8154_v48, %v8143_v24  ;;  %v1276_v15 = vrot.slane %v1274_v4, 4  ;;  %4592 = vmatprep.mubr.bf16.mxu1 %v6613_v39  ;;  %v5437_v10 = vld [vmem:[%s9538_s0 + $0xc0] sm:$0xf]  ;;  %v8244_v34 = vpop.f32.mrf.mxu1 }
 0x150   :  { %v2087_v26 = vrot.slane %v2086_v33, 4  ;;  %v1267_v30 = vor.u32 %v1266_v50, %v1263_v58  ;;  %v1282_v63 = vrot.slane %v1280_v5, 5  ;;  %v1602_v61 = vrot.slane %v5386_v59, 5  ;;  %4593 = vmatmul.mubr.bf16.gmra.mxu1 %v6615_v17  ;;  %1749 = vst [vmem:[#allocation2 + $0x378] sm:$0xf] %v5437_v10 }
 0x151   :  { %v2082_v22 = vsel %vm6832_vm5, %v2077_v14, %v2081_v49  ;;  %v1605_v62 = vrot.slane %v5387_v42, 5  ;;  %v8242_v12 = vadd.f32 %v5945_v25, %v5833_v19  ;;  %v6616_v24 = vld [vmem:[#allocation2 + $0x32c] ss:$36 sps:$4 sm:$0xff]   ;;  %v1277_v53 = vor.u32 %v1276_v15, %v1272_v9  ;;  %v5438_v0 = vld [vmem:[%s9538_s0 + $0xc4] sm:$0xf]  ;;  %v8277_v33 = vpop.f32.mrf.mxu1 }
 0x152   :  { %v6618_v48 = vld [vmem:[#allocation2 + $0x328] ss:$36 sps:$4 sm:$0xff]   ;;  %v2092_v46 = vsel %vm6832_vm5, %v2087_v26, %v2091_v1  ;;  %2243 = vst [vmem:[#allocation2 + $0x334] sm:$0xf] %v2082_v22  ;;  %v1268_v36 = vrot.slane %v1267_v30, 4  ;;  %v5836_v49 = vadd.f32 %v8176_v60, %v8159_v32  ;;  %v1603_v52 = vsel %vm6823_vm4, %v5409_v6, %v1602_v61  ;;  %4439 = vmatprep.mubr.bf16.mxu0 %v6616_v24 }
 0x153   :  { %2244 = vst [vmem:[#allocation2 + $0x358] sm:$0xf] %v2092_v46  ;;  %v1604_v23 = vrot.slane %v1602_v61, 4  ;;  %v5481_v1 = vld [vmem:[%s9538_s0 + $0xc0] sm:$0xf]  ;;  %v5948_v40 = vadd.f32 %v8184_v13, %v8164_v57  ;;  %v5839_v56 = vadd.f32 %v5838_v35, %v8202_v31  ;;  %v1278_v60 = vrot.slane %v1277_v53, 4  ;;  %v8270_v13 = vpop.f32.mrf.mxu0  ;;  %4440 = vmatmul.mubr.bf16.gmra.mxu0 %v6618_v48  ;;  %v8292_v15 = vpop.f32.mrf.mxu1 }
 0x154   :  { %v1273_v32 = vsel %vm6832_vm5, %v1268_v36, %v1272_v9  ;;  %1684 = vst [vmem:[#allocation2 + $0x374] sm:$0xf] %v1603_v52  ;;  %1750 = vst [vmem:[#allocation2 + $0x39c] sm:$0xf] %v5438_v0  ;;  %v5482_v59 = vld [vmem:[%s9538_s0 + $0xc4] sm:$0xf]  ;;  %v5951_v57 = vadd.f32 %v5950_v41, %v8204_v16 }
 0x155   :  { %v5483_v55 = vld [vmem:[%s9538_s0 + $0xc8] sm:$0x1]  ;;  %v2094_v58 = vshrl.u32 %v5481_v1, 16  ;;  %1412 = vst [vmem:[#allocation2 + $0x370] sm:$0xf] %v1273_v32  ;;  %v1606_v31 = vsel %vm6823_vm4, %v1604_v23, %v1605_v62  ;;  %v2097_v35 = vshll.u32 %v5481_v1, 16  ;;  %v1283_v50 = vsel %vm6832_vm5, %v1278_v60, %v1282_v63  ;;  %v5844_v17 = vpop.f32.mrf.mxu0  ;;  %v8302_v52 = vpop.f32.mrf.mxu1 }
 0x156   :  { %v2103_v4 = vshll.u32 %v5482_v59, 16  ;;  %v2107_v5 = vshrl.u32 %v5482_v59, 16  ;;  %v5340_v42 = vld [vmem:[%s9538_s0 + $0xc0] sm:$0xf]  ;;  %1685 = vst [vmem:[#allocation2 + $0x398] sm:$0xf] %v1606_v31  ;;  %v8287_v39 = vadd.f32 %v5948_v40, %v5836_v49  ;;  %v8304_v40 = vadd.f32 %v5951_v57, %v5839_v56 }
 0x157   :  { %v2096_v16 = vrot.slane %v2094_v58, 4  ;;  %v2113_v41 = vshll.u32 %v5483_v55, 16  ;;  %v5341_v9 = vld [vmem:[%s9538_s0 + $0xc4] sm:$0xf]  ;;  %v5342_v6 = vld [vmem:[%s9538_s0 + $0xc8] sm:$0x1]  ;;  %v8297_v24 = vpop.f32.mrf.mxu0  ;;  %v5842_v32 = vadd.f32 %v8235_v3, %v8225_v8  ;;  %v5954_v60 = vadd.f32 %v8244_v34, %v8227_v11 }
 0x158   :  { %1413 = vst [vmem:[#allocation2 + $0x394] sm:$0xf] %v1283_v50  ;;  %v2099_v14 = vrot.slane %v2097_v35, 5  ;;  %v2105_v19 = vrot.slane %v2103_v4, 5  ;;  %v2109_v25 = vrot.slane %v2107_v5, 4  ;;  %v1285_v26 = vshrl.u32 %v5340_v42, 16  ;;  %v8315_v5 = vpop.f32.mrf.mxu1 }
 0x159   :  { %v5388_v30 = vld [vmem:[%s9538_s0 + $0xc0] sm:$0xe]  ;;  %v2115_v63 = vrot.slane %v2113_v41, 5  ;;  %v1288_v22 = vshll.u32 %v5340_v42, 16  ;;  %v1294_v61 = vshll.u32 %v5341_v9, 16  ;;  %v1298_v62 = vshrl.u32 %v5341_v9, 16  ;;  %v8310_v59 = vpop.f32.mrf.mxu0 }
 0x15a   :  { %v5389_v10 = vld [vmem:[%s9538_s0 + $0xc4] sm:$0xf]  ;;  %v2100_v48 = vor.u32 %v2099_v14, %v2096_v16  ;;  %v2110_v46 = vor.u32 %v2109_v25, %v2105_v19  ;;  %v1287_v36 = vrot.slane %v1285_v26, 4  ;;  %v1304_v53 = vshll.u32 %v5342_v6, 16  ;;  %v5390_v49 = vld [vmem:[%s9538_s0 + $0xc8] sm:$0x1]  ;;  %v8332_v14 = vpop.f32.mrf.mxu1 }
 0x15b   :  { %v6619_v23 = vld [vmem:[#allocation2 + $0x334] ss:$36 sps:$4 sm:$0xff]   ;;  %v1290_v1 = vrot.slane %v1288_v22, 5  ;;  %v1296_v31 = vrot.slane %v1294_v61, 5  ;;  %v1300_v35 = vrot.slane %v1298_v62, 4  ;;  %v5410_v42 = vrot.slane %v5388_v30, 9  ;;  %v8330_v6 = vpop.f32.mrf.mxu0 }
 0x15c   :  { %v6621_v0 = vld [vmem:[#allocation2 + $0x330] ss:$36 sps:$4 sm:$0xff]   ;;  %v2101_v55 = vrot.slane %v2100_v48, 4  ;;  %v2111_v58 = vrot.slane %v2110_v46, 4  ;;  %v5439_v4 = vld [vmem:[%s9538_s0 + $0xcc] sm:$0xf]  ;;  %4600 = vmatprep.mubr.bf16.mxu1 %v6619_v23  ;;  %v8339_v22 = vadd.f32 %v5844_v17, %v8270_v13 }
 0x15d   :  { %v1291_v56 = vor.u32 %v1290_v1, %v1287_v36  ;;  %v1306_v57 = vrot.slane %v1304_v53, 5  ;;  %v1609_v8 = vrot.slane %v5389_v10, 5  ;;  %v5440_v11 = vld [vmem:[%s9538_s0 + $0xd0] sm:$0xf]  ;;  %1751 = vst [vmem:[#allocation2 + $0x3c0] sm:$0xf] %v5439_v4  ;;  %4601 = vmatmul.mubr.bf16.gmra.mxu1 %v6621_v0  ;;  %v1301_v50 = vor.u32 %v1300_v35, %v1296_v31  ;;  %v8344_v36 = vpop.f32.mrf.mxu0  ;;  %v8346_v53 = vpop.f32.mrf.mxu1 }
 0x15e   :  { %v2106_v3 = vsel %vm6832_vm5, %v2101_v55, %v2105_v19  ;;  %v2116_v34 = vsel %vm6832_vm5, %v2111_v58, %v2115_v63  ;;  %v1612_v16 = vrot.slane %v5390_v49, 5  ;;  %1752 = vst [vmem:[#allocation2 + $0x3e4] sm:$0xf] %v5440_v11  ;;  %v5484_v41 = vld [vmem:[%s9538_s0 + $0xcc] sm:$0xf]  ;;  %v8336_v63 = vadd.f32 %v5954_v60, %v5842_v32 }
 0x15f   :  { %v5485_v9 = vld [vmem:[%s9538_s0 + $0xd0] sm:$0xf]  ;;  %v6624_v19 = vld [vmem:[#allocation2 + $0x374] ss:$36 sps:$4 sm:$0xff]   ;;  %2245 = vst [vmem:[#allocation2 + $0x37c] sm:$0xf] %v2106_v3  ;;  %v1610_v30 = vsel %vm6823_vm4, %v5410_v42, %v1609_v8  ;;  %v5852_v35 = vpop.f32.mrf.mxu0  ;;  %v8363_v4 = vpop.f32.mrf.mxu1 }
 0x160   :  { %v6622_v25 = vld [vmem:[#allocation2 + $0x370] ss:$36 sps:$4 sm:$0xff]   ;;  %2246 = vst [vmem:[#allocation2 + $0x3a0] sm:$0xf] %v2116_v34  ;;  %v1292_v26 = vrot.slane %v1291_v56, 4  ;;  %v1302_v61 = vrot.slane %v1301_v50, 4  ;;  %4447 = vmatprep.mubr.bf16.mxu0 %v6624_v19 }
 0x161   :  { %v1611_v62 = vrot.slane %v1609_v8, 4  ;;  %1686 = vst [vmem:[#allocation2 + $0x3bc] sm:$0xf] %v1610_v30  ;;  %v5486_v10 = vld [vmem:[%s9538_s0 + $0xd4] sm:$0x1]  ;;  %v2118_v48 = vshrl.u32 %v5484_v41, 16  ;;  %4448 = vmatmul.mubr.bf16.gmra.mxu0 %v6622_v25 }
 0x162   :  { %v2121_v46 = vshll.u32 %v5484_v41, 16  ;;  %v1297_v49 = vsel %vm6832_vm5, %v1292_v26, %v1296_v31  ;;  %v2127_v23 = vshll.u32 %v5485_v9, 16  ;;  %v2131_v13 = vshrl.u32 %v5485_v9, 16  ;;  %v5343_v0 = vld [vmem:[%s9538_s0 + $0xcc] sm:$0xf]  ;;  %v5853_v9 = vpop.f32.mrf.mxu0 }
 0x163   :  { %v2137_v17 = vshll.u32 %v5486_v10, 16  ;;  %v1307_v1 = vsel %vm6832_vm5, %v1302_v61, %v1306_v57  ;;  %1414 = vst [vmem:[#allocation2 + $0x3b8] sm:$0xf] %v1297_v49  ;;  %v1613_v32 = vsel %vm6823_vm4, %v1611_v62, %v1612_v16  ;;  %v2120_v60 = vrot.slane %v2118_v48, 4  ;;  %v5344_v58 = vld [vmem:[%s9538_s0 + $0xd0] sm:$0xf]  ;;  %v8374_v62 = vpop.f32.mrf.mxu1 }
 0x164   :  { %v2123_v55 = vrot.slane %v2121_v46, 5  ;;  %v5345_v31 = vld [vmem:[%s9538_s0 + $0xd4] sm:$0x1]  ;;  %1415 = vst [vmem:[#allocation2 + $0x3dc] sm:$0xf] %v1307_v1  ;;  %v2129_v56 = vrot.slane %v2127_v23, 5  ;;  %v5957_v49 = vadd.f32 %v8292_v15, %v8277_v33  ;;  %v5848_v23 = vadd.f32 %v8310_v59, %v8297_v24 }
 0x165   :  { %1687 = vst [vmem:[#allocation2 + $0x3e0] sm:$0xf] %v1613_v32  ;;  %v2133_v57 = vrot.slane %v2131_v13, 4  ;;  %v2139_v42 = vrot.slane %v2137_v17, 5  ;;  %v1309_v8 = vshrl.u32 %v5343_v0, 16  ;;  %v1312_v34 = vshll.u32 %v5343_v0, 16 }
 0x166   :  { %v5391_v11 = vld [vmem:[%s9538_s0 + $0xcc] sm:$0xe]  ;;  %v2124_v3 = vor.u32 %v2123_v55, %v2120_v60  ;;  %v1318_v50 = vshll.u32 %v5344_v58, 16  ;;  %v1322_v16 = vshrl.u32 %v5344_v58, 16  ;;  %v5392_v41 = vld [vmem:[%s9538_s0 + $0xd0] sm:$0xf] }
 0x167   :  { %v2134_v25 = vor.u32 %v2133_v57, %v2129_v56  ;;  %v1311_v19 = vrot.slane %v1309_v8, 4  ;;  %v1328_v26 = vshll.u32 %v5345_v31, 16  ;;  %v5393_v30 = vld [vmem:[%s9538_s0 + $0xd4] sm:$0x1]  ;;  %v5411_v61 = vrot.slane %v5391_v11, 9  ;;  %v8382_v57 = vpop.f32.mrf.mxu0  ;;  %v8397_v11 = vpop.f32.mrf.mxu1 }
 0x168   :  { %v6626_v10 = vld [vmem:[#allocation2 + $0x378] ss:$36 sps:$4 sm:$0xff]   ;;  %v2125_v48 = vrot.slane %v2124_v3, 4  ;;  %v1314_v46 = vrot.slane %v1312_v34, 5  ;;  %v1320_v0 = vrot.slane %v1318_v50, 5  ;;  %v1324_v1 = vrot.slane %v1322_v16, 4 }
 0x169   :  { %v6628_v13 = vld [vmem:[#allocation2 + $0x37c] ss:$36 sps:$4 sm:$0xff]   ;;  %v2135_v17 = vrot.slane %v2134_v25, 4  ;;  %v1330_v32 = vrot.slane %v1328_v26, 5  ;;  %v1616_v58 = vrot.slane %v5392_v41, 5  ;;  %v1619_v31 = vrot.slane %v5393_v30, 5  ;;  %v8405_v41 = vpop.f32.mrf.mxu0 }
 0x16a   :  { %v2130_v60 = vsel %vm6832_vm5, %v2125_v48, %v2129_v56  ;;  %v1315_v55 = vor.u32 %v1314_v46, %v1311_v19  ;;  %4608 = vmatprep.mubr.bf16.mxu1 %v6628_v13  ;;  %v1325_v15 = vor.u32 %v1324_v1, %v1320_v0  ;;  %v5441_v24 = vld [vmem:[%s9538_s0 + $0xd8] sm:$0xf]  ;;  %v5442_v59 = vld [vmem:[%s9538_s0 + $0xdc] sm:$0xf]  ;;  %v8393_v56 = vadd.f32 %v5957_v49, %v8339_v22  ;;  %v5503_v54 = vld [vmem:[%s9538_s0 + $0x40] sm:$0xf] }
 0x16b   :  { %v2140_v33 = vsel %vm6832_vm5, %v2135_v17, %v2139_v42  ;;  %2247 = vst [vmem:[#allocation2 + $0x3c4] sm:$0xf] %v2130_v60  ;;  %v5960_v8 = vadd.f32 %v8315_v5, %v8302_v52  ;;  %4609 = vmatmul.mubr.bf16.gmra.mxu1 %v6626_v10  ;;  %v6629_v42 = vld [vmem:[#allocation2 + $0x3b8] ss:$36 sps:$4 sm:$0xff]   ;;  %v1617_v50 = vsel %vm6823_vm4, %v5411_v61, %v1616_v58  ;;  %1753 = vst [vmem:[#allocation2 + $0x408] sm:$0xf] %v5441_v24  ;;  %v8424_v48 = vpop.f32.mrf.mxu0 }
 0x16c   :  { %v6631_v3 = vld [vmem:[#allocation2 + $0x3bc] ss:$36 sps:$4 sm:$0xff]   ;;  %2248 = vst [vmem:[#allocation2 + $0x3e8] sm:$0xf] %v2140_v33  ;;  %v1316_v34 = vrot.slane %v1315_v55, 4  ;;  %v5851_v16 = vadd.f32 %v8344_v36, %v8330_v6  ;;  %v5963_v22 = vadd.f32 %v8346_v53, %v8332_v14  ;;  %v1326_v52 = vrot.slane %v1325_v15, 4  ;;  %v8417_v6 = vpop.f32.mrf.mxu1 }
 0x16d   :  { %1754 = vst [vmem:[#allocation2 + $0x42c] sm:$0xf] %v5442_v59  ;;  %v1618_v5 = vrot.slane %v1616_v58, 4  ;;  %1688 = vst [vmem:[#allocation2 + $0x404] sm:$0xf] %v1617_v50  ;;  %v8413_v26 = vadd.f32 %v5960_v8, %v5848_v23  ;;  %v8415_v30 = vadd.f32 %v5853_v9, %v5852_v35  ;;  %4455 = vmatprep.mubr.bf16.mxu0 %v6631_v3  ;;  %v5859_v58 = vpop.f32.mrf.mxu0 }
 0x16e   :  { %v5487_v25 = vld [vmem:[%s9538_s0 + $0xd8] sm:$0xf]  ;;  %v5488_v19 = vld [vmem:[%s9538_s0 + $0xdc] sm:$0xf]  ;;  %v1321_v14 = vsel %vm6832_vm5, %v1316_v34, %v1320_v0  ;;  %v5489_v36 = vld [vmem:[%s9538_s0 + $0xe0] sm:$0x1]  ;;  %4456 = vmatmul.mubr.bf16.gmra.mxu0 %v6629_v42  ;;  %v1331_v35 = vsel %vm6832_vm5, %v1326_v52, %v1330_v32  ;;  %v8436_v17 = vpop.f32.mrf.mxu1 }
 0x16f   :  { %v2142_v53 = vshrl.u32 %v5487_v25, 16  ;;  %v2145_v61 = vshll.u32 %v5487_v25, 16  ;;  %v2151_v10 = vshll.u32 %v5488_v19, 16  ;;  %1416 = vst [vmem:[#allocation2 + $0x400] sm:$0xf] %v1321_v14  ;;  %v1620_v9 = vsel %vm6823_vm4, %v1618_v5, %v1619_v31 }
 0x170   :  { %v2155_v46 = vshrl.u32 %v5488_v19, 16  ;;  %v2161_v49 = vshll.u32 %v5489_v36, 16  ;;  %v5346_v23 = vld [vmem:[%s9538_s0 + $0xd8] sm:$0xf]  ;;  %v5347_v13 = vld [vmem:[%s9538_s0 + $0xdc] sm:$0xf]  ;;  %v8444_v8 = vpop.f32.mrf.mxu1  ;;  %v8449_v36 = vadd.f32 %v5963_v22, %v5851_v16 }
 0x171   :  { %1417 = vst [vmem:[#allocation2 + $0x424] sm:$0xf] %v1331_v35  ;;  %1689 = vst [vmem:[#allocation2 + $0x428] sm:$0xf] %v1620_v9  ;;  %v2144_v0 = vrot.slane %v2142_v53, 4  ;;  %v2147_v1 = vrot.slane %v2145_v61, 5  ;;  %v5966_v53 = vadd.f32 %v8374_v62, %v8363_v4  ;;  %v8453_v61 = vpop.f32.mrf.mxu0 }
 0x172   :  { %v2153_v32 = vrot.slane %v2151_v10, 5  ;;  %v5348_v60 = vld [vmem:[%s9538_s0 + $0xe0] sm:$0x1]  ;;  %v1333_v55 = vshrl.u32 %v5346_v23, 16  ;;  %v2157_v31 = vrot.slane %v2155_v46, 4  ;;  %v2163_v33 = vrot.slane %v2161_v49, 5  ;;  %v8455_v10 = vpop.f32.mrf.mxu1 }
 0x173   :  { %v1336_v15 = vshll.u32 %v5346_v23, 16  ;;  %v1342_v24 = vshll.u32 %v5347_v13, 16  ;;  %v5394_v59 = vld [vmem:[%s9538_s0 + $0xd8] sm:$0xe]  ;;  %v2148_v42 = vor.u32 %v2147_v1, %v2144_v0  ;;  %v1346_v34 = vshrl.u32 %v5347_v13, 16  ;;  %v8463_v62 = vpop.f32.mrf.mxu0 }
 0x174   :  { %v1335_v3 = vrot.slane %v1333_v55, 4  ;;  %v1352_v50 = vshll.u32 %v5348_v60, 16  ;;  %v5395_v52 = vld [vmem:[%s9538_s0 + $0xdc] sm:$0xf]  ;;  %v6632_v5 = vld [vmem:[#allocation2 + $0x3c0] ss:$36 sps:$4 sm:$0xff]   ;;  %v2158_v19 = vor.u32 %v2157_v31, %v2153_v32  ;;  %v8465_v1 = vpop.f32.mrf.mxu1 }
 0x175   :  { %v6634_v25 = vld [vmem:[#allocation2 + $0x3c4] ss:$36 sps:$4 sm:$0xff]   ;;  %v1338_v14 = vrot.slane %v1336_v15, 5  ;;  %v2149_v35 = vrot.slane %v2148_v42, 4  ;;  %v1344_v9 = vrot.slane %v1342_v24, 5  ;;  %v1348_v46 = vrot.slane %v1346_v34, 4 }
 0x176   :  { %v1354_v49 = vrot.slane %v1352_v50, 5  ;;  %v5396_v23 = vld [vmem:[%s9538_s0 + $0xe0] sm:$0x1]  ;;  %4616 = vmatprep.mubr.bf16.mxu1 %v6634_v25  ;;  %v2159_v13 = vrot.slane %v2158_v19, 4  ;;  %v5412_v16 = vrot.slane %v5394_v59, 9  ;;  %v1623_v22 = vrot.slane %v5395_v52, 5  ;;  %v8486_v25 = vpop.f32.mrf.mxu1 }
 0x177   :  { %v1339_v0 = vor.u32 %v1338_v14, %v1335_v3  ;;  %v5443_v4 = vld [vmem:[%s9538_s0 + $0xe4] sm:$0xf]  ;;  %4617 = vmatmul.mubr.bf16.gmra.mxu1 %v6632_v5  ;;  %v2154_v60 = vsel %vm6832_vm5, %v2149_v35, %v2153_v32  ;;  %v1349_v55 = vor.u32 %v1348_v46, %v1344_v9  ;;  %v1626_v31 = vrot.slane %v5396_v23, 5  ;;  %v5444_v15 = vld [vmem:[%s9538_s0 + $0xe8] sm:$0xf]  ;;  %v8484_v5 = vpop.f32.mrf.mxu0 }
 0x178   :  { %1755 = vst [vmem:[#allocation2 + $0x450] sm:$0xf] %v5443_v4  ;;  %v5490_v24 = vld [vmem:[%s9538_s0 + $0xe4] sm:$0xf]  ;;  %v8476_v59 = vadd.f32 %v5966_v53, %v8415_v30  ;;  %v2164_v34 = vsel %vm6832_vm5, %v2159_v13, %v2163_v33  ;;  %2249 = vst [vmem:[#allocation2 + $0x40c] sm:$0xf] %v2154_v60  ;;  %v1624_v50 = vsel %vm6823_vm4, %v5412_v16, %v1623_v22 }
 0x179   :  { %v6635_v42 = vld [vmem:[#allocation2 + $0x400] ss:$36 sps:$4 sm:$0xff]   ;;  %v1340_v32 = vrot.slane %v1339_v0, 4  ;;  %1756 = vst [vmem:[#allocation2 + $0x474] sm:$0xf] %v5444_v15  ;;  %v5857_v52 = vadd.f32 %v8405_v41, %v8382_v57  ;;  %v1350_v30 = vrot.slane %v1349_v55, 4  ;;  %v5969_v53 = vadd.f32 %v8417_v6, %v8397_v11  ;;  %v8504_v0 = vpop.f32.mrf.mxu0 }
 0x17a   :  { %v6637_v3 = vld [vmem:[#allocation2 + $0x404] ss:$36 sps:$4 sm:$0xff]   ;;  %2250 = vst [vmem:[#allocation2 + $0x430] sm:$0xf] %v2164_v34  ;;  %v1625_v19 = vrot.slane %v1623_v22, 4  ;;  %v8497_v57 = vadd.f32 %v5859_v58, %v8424_v48  ;;  %v2166_v35 = vshrl.u32 %v5490_v24, 16  ;;  %v8516_v22 = vpop.f32.mrf.mxu1 }
 0x17b   :  { %1690 = vst [vmem:[#allocation2 + $0x44c] sm:$0xf] %v1624_v50  ;;  %v5491_v33 = vld [vmem:[%s9538_s0 + $0xe8] sm:$0xf]  ;;  %v5492_v14 = vld [vmem:[%s9538_s0 + $0xec] sm:$0x1]  ;;  %4463 = vmatprep.mubr.bf16.mxu0 %v6637_v3  ;;  %v1345_v41 = vsel %vm6832_vm5, %v1340_v32, %v1344_v9  ;;  %v1355_v11 = vsel %vm6832_vm5, %v1350_v30, %v1354_v49 }
 0x17c   :  { %v2169_v46 = vshll.u32 %v5490_v24, 16  ;;  %v2175_v23 = vshll.u32 %v5491_v33, 16  ;;  %v5493_v13 = vld [vmem:[%s9538_s0 + $0x18] sm:$0xe]  ;;  %4464 = vmatmul.mubr.bf16.gmra.mxu0 %v6635_v42  ;;  %1418 = vst [vmem:[#allocation2 + $0x448] sm:$0xf] %v1345_v41  ;;  %v1627_v6 = vsel %vm6823_vm4, %v1625_v19, %v1626_v31  ;;  %v5867_v41 = vpop.f32.mrf.mxu0 }
 0x17d   :  { %v2179_v48 = vshrl.u32 %v5491_v33, 16  ;;  %v2185_v58 = vshll.u32 %v5492_v14, 16  ;;  %v5494_v9 = vld [vmem:[%s9538_s0 + $0x1c] sm:$0xf]  ;;  %v5495_v16 = vld [vmem:[%s9538_s0 + $0x20] sm:$0x1]  ;;  %v8530_v14 = vadd.f32 %v5969_v53, %v5857_v52  ;;  %v5972_v53 = vadd.f32 %v8444_v8, %v8436_v17 }
 0x17e   :  { %1419 = vst [vmem:[#allocation2 + $0x46c] sm:$0xf] %v1355_v11  ;;  %1691 = vst [vmem:[#allocation2 + $0x470] sm:$0xf] %v1627_v6  ;;  %v2168_v4 = vrot.slane %v2166_v35, 4  ;;  %v2171_v49 = vrot.slane %v2169_v46, 5  ;;  %v8537_v6 = vpop.f32.mrf.mxu1 }
 0x17f   :  { %v2177_v60 = vrot.slane %v2175_v23, 5  ;;  %v5541_v55 = vrot.slane %v5493_v13, 9  ;;  %v5496_v31 = vld [vmem:[%s9538_s0 + $0x24] sm:$0xe]  ;;  %v2181_v15 = vrot.slane %v2179_v48, 4  ;;  %v2187_v24 = vrot.slane %v2185_v58, 5 }
 0x180   :  { %v2351_v42 = vrot.slane %v5494_v9, 5  ;;  %v2354_v3 = vrot.slane %v5495_v16, 5  ;;  %v5497_v34 = vld [vmem:[%s9538_s0 + $0x28] sm:$0xf]  ;;  %v2172_v32 = vor.u32 %v2171_v49, %v2168_v4  ;;  %v5498_v50 = vld [vmem:[%s9538_s0 + $0x2c] sm:$0x1]  ;;  %v5863_v16 = vadd.f32 %v8463_v62, %v8453_v61  ;;  %v5868_v4 = vpop.f32.mrf.mxu0 }
 0x181   :  { %v5542_v30 = vrot.slane %v5496_v31, 9  ;;  %v2358_v19 = vrot.slane %v5497_v34, 5  ;;  %v5499_v33 = vld [vmem:[%s9538_s0 + $0x30] sm:$0xe]  ;;  %v2182_v35 = vor.u32 %v2181_v15, %v2177_v60  ;;  %v2361_v13 = vrot.slane %v5498_v50, 5  ;;  %v5980_v34 = vpop.f32.mrf.mxu1 }
 0x182   :  { %v2352_v46 = vsel %vm6823_vm4, %v5541_v55, %v2351_v42  ;;  %v2353_v23 = vrot.slane %v2351_v42, 4  ;;  %v5500_v11 = vld [vmem:[%s9538_s0 + $0x34] sm:$0xf]  ;;  %v6639_v48 = vld [vmem:[#allocation2 + $0x408] ss:$36 sps:$4 sm:$0xff]   ;;  %v2173_v9 = vrot.slane %v2172_v32, 4  ;;  %v5870_v32 = vpop.f32.mrf.mxu0 }
 0x183   :  { %v6641_v58 = vld [vmem:[#allocation2 + $0x40c] ss:$36 sps:$4 sm:$0xff]   ;;  %2493 = vst [vmem:[#allocation2 + $0x20] sm:$0xf] %v2352_v46  ;;  %v2359_v52 = vsel %vm6823_vm4, %v5542_v30, %v2358_v19  ;;  %v2183_v49 = vrot.slane %v2182_v35, 4  ;;  %v2360_v31 = vrot.slane %v2358_v19, 4  ;;  %v5975_v35 = vadd.f32 %v8465_v1, %v8455_v10  ;;  %v5982_v46 = vpop.f32.mrf.mxu1 }
 0x184   :  { %v2355_v55 = vsel %vm6823_vm4, %v2353_v23, %v2354_v3  ;;  %2495 = vst [vmem:[#allocation2 + $0x68] sm:$0xf] %v2359_v52  ;;  %v5501_v15 = vld [vmem:[%s9538_s0 + $0x38] sm:$0x1]  ;;  %v5543_v42 = vrot.slane %v5499_v33, 9  ;;  %4624 = vmatprep.mubr.bf16.mxu1 %v6641_v58  ;;  %v2178_v17 = vsel %vm6832_vm5, %v2173_v9, %v2177_v60  ;;  %v2365_v8 = vrot.slane %v5500_v11, 5  ;;  %v5871_v1 = vpop.f32.mrf.mxu0 }
 0x185   :  { %2494 = vst [vmem:[#allocation2 + $0x44] sm:$0xf] %v2355_v55  ;;  %v2368_v61 = vrot.slane %v5501_v15, 5  ;;  %v5502_v62 = vld [vmem:[%s9538_s0 + $0x3c] sm:$0xe]  ;;  %v8556_v3 = vadd.f32 %v5972_v53, %v8497_v57  ;;  %4625 = vmatmul.mubr.bf16.gmra.mxu1 %v6639_v48  ;;  %v2188_v19 = vsel %vm6832_vm5, %v2183_v49, %v2187_v24  ;;  %v2362_v60 = vsel %vm6823_vm4, %v2360_v31, %v2361_v13 }
 0x186   :  { %v6642_v50 = vld [vmem:[#allocation2 + $0x448] ss:$36 sps:$4 sm:$0xff]   ;;  %2251 = vst [vmem:[#allocation2 + $0x454] sm:$0xf] %v2178_v17  ;;  %v5544_v33 = vrot.slane %v5502_v62, 9  ;;  %v2366_v57 = vsel %vm6823_vm4, %v5543_v42, %v2365_v8  ;;  %v2367_v23 = vrot.slane %v2365_v8, 4  ;;  %v5866_v13 = vadd.f32 %v8504_v0, %v8484_v5  ;;  %v5983_v5 = vpop.f32.mrf.mxu1 }
 0x187   :  { %v6644_v30 = vld [vmem:[#allocation2 + $0x44c] ss:$36 sps:$4 sm:$0xff]   ;;  %2252 = vst [vmem:[#allocation2 + $0x478] sm:$0xf] %v2188_v19  ;;  %2496 = vst [vmem:[#allocation2 + $0x8c] sm:$0xf] %v2362_v60  ;;  %v5978_v10 = vadd.f32 %v8516_v22, %v8486_v25  ;;  %v8582_v52 = vadd.f32 %v5975_v35, %v5863_v16  ;;  %v5869_v53 = vadd.f32 %v5868_v4, %v5867_v41  ;;  %v5873_v19 = vpop.f32.mrf.mxu0 }
 0x188   :  { %v5504_v24 = vld [vmem:[%s9538_s0 + $0x44] sm:$0x1]  ;;  %4471 = vmatprep.mubr.bf16.mxu0 %v6644_v30  ;;  %2497 = vst [vmem:[#allocation2 + $0xb0] sm:$0xf] %v2366_v57  ;;  %v2372_v11 = vrot.slane %v5503_v54, 5  ;;  %v2369_v25 = vsel %vm6823_vm4, %v2367_v23, %v2368_v61  ;;  %v5981_v42 = vadd.f32 %v5980_v34, %v8537_v6  ;;  %v5985_v17 = vpop.f32.mrf.mxu1  ;;  %v5872_v30 = vadd.f32 %v5871_v1, %v5870_v32 }
 0x189   :  { %v2375_v48 = vrot.slane %v5504_v24, 5  ;;  %v5505_v58 = vld [vmem:[%s9538_s0 + $0x48] sm:$0xe]  ;;  %v5506_v9 = vld [vmem:[%s9538_s0 + $0x4c] sm:$0xf]  ;;  %4472 = vmatmul.mubr.bf16.gmra.mxu0 %v6642_v50  ;;  %v8592_v31 = vadd.f32 %v5978_v10, %v5866_v13  ;;  %v5984_v24 = vadd.f32 %v5983_v5, %v5982_v46  ;;  %v5874_v13 = vpop.f32.mrf.mxu0 }
 0x18a   :  { %v5507_v0 = vld [vmem:[%s9538_s0 + $0x50] sm:$0x1]  ;;  %v5545_v22 = vrot.slane %v5505_v58, 9  ;;  %v2379_v49 = vrot.slane %v5506_v9, 5  ;;  %v5508_v55 = vld [vmem:[%s9538_s0 + $0x54] sm:$0xe]  ;;  %v2373_v41 = vsel %vm6823_vm4, %v5544_v33, %v2372_v11  ;;  %v8607_v34 = vadd.f32 %v5981_v42, %v5869_v53  ;;  %v5986_v57 = vpop.f32.mrf.mxu1 }
 0x18b   :  { %2498 = vst [vmem:[#allocation2 + $0xd4] sm:$0xf] %v2369_v25  ;;  %v2374_v16 = vrot.slane %v2372_v11, 4  ;;  %v2382_v4 = vrot.slane %v5507_v0, 5  ;;  %v5509_v15 = vld [vmem:[%s9538_s0 + $0x58] sm:$0xf]  ;;  %v5987_v10 = vadd.f32 %v5986_v57, %v5985_v17  ;;  %v5875_v9 = vadd.f32 %v5874_v13, %v5873_v19 }
 0x18c   :  { %2499 = vst [vmem:[#allocation2 + $0xf8] sm:$0xf] %v2373_v41  ;;  %v2380_v8 = vsel %vm6823_vm4, %v5545_v22, %v2379_v49  ;;  %v2381_v61 = vrot.slane %v2379_v49, 4  ;;  %v5510_v62 = vld [vmem:[%s9538_s0 + $0x5c] sm:$0x1]  ;;  %v5546_v50 = vrot.slane %v5508_v55, 9  ;;  %v5988_v53 = vpop.f32.mrf.mxu1  ;;  %v8619_v0 = vadd.f32 %v5984_v24, %v5872_v30  ;;  %v5876_v22 = vpop.f32.mrf.mxu0 }
 0x18d   :  { %v6648_v60 = vld [vmem:[#allocation2 + $0x20] ss:$36 sps:$4 sm:$0xff]   ;;  %v2376_v33 = vsel %vm6823_vm4, %v2374_v16, %v2375_v48  ;;  %2501 = vst [vmem:[#allocation2 + $0x140] sm:$0xf] %v2380_v8  ;;  %v2386_v35 = vrot.slane %v5509_v15, 5  ;;  %v2389_v6 = vrot.slane %v5510_v62, 5  ;;  %v8629_v16 = vadd.f32 %v5987_v10, %v5875_v9 }
 0x18e   :  { %2500 = vst [vmem:[#allocation2 + $0x11c] sm:$0xf] %v2376_v33  ;;  %v2383_v23 = vsel %vm6823_vm4, %v2381_v61, %v2382_v4  ;;  %v5511_v54 = vld [vmem:[%s9538_s0 + $0x60] sm:$0xe]  ;;  %v5512_v32 = vld [vmem:[%s9538_s0 + $0x64] sm:$0xf]  ;;  %6295 = vmatprep.mubr.bf16.mxu0 %v6648_v60  ;;  %v5989_v4 = vpop.f32.mrf.mxu1  ;;  %v5877_v8 = vpop.f32.mrf.mxu0 }
 0x18f   :  { %v6645_v1 = vld [vmem:[#allocation2 + $0x450] ss:$36 sps:$4 sm:$0xff]   ;;  %2502 = vst [vmem:[#allocation2 + $0x164] sm:$0xf] %v2383_v23  ;;  %v2387_v48 = vsel %vm6823_vm4, %v5546_v50, %v2386_v35  ;;  %v2388_v58 = vrot.slane %v2386_v35, 4  ;;  %v5547_v49 = vrot.slane %v5511_v54, 9  ;;  %v5990_v61 = vadd.f32 %v5989_v4, %v5988_v53 }
 0x190   :  { %v6647_v11 = vld [vmem:[#allocation2 + $0x454] ss:$36 sps:$4 sm:$0xff]   ;;  %v6649_v25 = vld [vmem:[#allocation2 + $0x68] ss:$36 sps:$4 sm:$0xff]   ;;  %2503 = vst [vmem:[#allocation2 + $0x188] sm:$0xf] %v2387_v48  ;;  %v5878_v19 = vadd.f32 %v5877_v8, %v5876_v22 }
 0x191   :  { %4632 = vmatprep.mubr.bf16.mxu1 %v6647_v11  ;;  %v2390_v46 = vsel %vm6823_vm4, %v2388_v58, %v2389_v6  ;;  %v5513_v5 = vld [vmem:[%s9538_s0 + $0x68] sm:$0x1]  ;;  %v2393_v55 = vrot.slane %v5512_v32, 5  ;;  %v5514_v41 = vld [vmem:[%s9538_s0 + $0x6c] sm:$0xe]  ;;  %6296 = vmatmul.mubr.bf16.vlgmr.msra.gmra.mxu0 %v6649_v25  ;;  %v5991_v25 = vpop.f32.mrf.mxu1 }
 0x192   :  { %4633 = vmatmul.mubr.bf16.gmra.mxu1 %v6645_v1  ;;  %v6650_v15 = vld [vmem:[#allocation2 + $0xb0] ss:$36 sps:$4 sm:$0xff]   ;;  %2504 = vst [vmem:[#allocation2 + $0x1ac] sm:$0xf] %v2390_v46  ;;  %v2396_v42 = vrot.slane %v5513_v5, 5  ;;  %v5548_v17 = vrot.slane %v5514_v41, 9  ;;  %v8641_v23 = vadd.f32 %v5990_v61, %v5878_v19  ;;  %v5879_v1 = vpop.f32.mrf.mxu0 }
 0x193   :  { %v2394_v62 = vsel %vm6823_vm4, %v5547_v49, %v2393_v55  ;;  %v2395_v50 = vrot.slane %v2393_v55, 4  ;;  %v5515_v30 = vld [vmem:[%s9538_s0 + $0x70] sm:$0xf]  ;;  %6299 = vmatprep.mubr.bf16.mxu0 %v6650_v15  ;;  %v5516_v60 = vld [vmem:[%s9538_s0 + $0x74] sm:$0x1] }
 0x194   :  { %2505 = vst [vmem:[#allocation2 + $0x1d0] sm:$0xf] %v2394_v62  ;;  %v2400_v33 = vrot.slane %v5515_v30, 5  ;;  %v2403_v57 = vrot.slane %v5516_v60, 5  ;;  %v5517_v13 = vld [vmem:[%s9538_s0 + $0x90] sm:$0xe]  ;;  %v5880_v5 = vpop.f32.mrf.mxu0 }
 0x195   :  { %v6651_v35 = vld [vmem:[#allocation2 + $0xf8] ss:$36 sps:$4 sm:$0xff]   ;;  %v2397_v6 = vsel %vm6823_vm4, %v2395_v50, %v2396_v42  ;;  %v5518_v10 = vld [vmem:[%s9538_s0 + $0x94] sm:$0xf]  ;;  %v5549_v58 = vrot.slane %v5517_v13, 9  ;;  %v5881_v15 = vadd.f32 %v5880_v5, %v5879_v1  ;;  %v5992_v42 = vpop.f32.mrf.mxu1  ;;  %v9546_v30 = vmov 0.0  }
 0x196   :  { %v6652_v54 = vld [vmem:[#allocation2 + $0x140] ss:$36 sps:$4 sm:$0xff]   ;;  %2506 = vst [vmem:[#allocation2 + $0x1f4] sm:$0xf] %v2397_v6  ;;  %v2401_v32 = vsel %vm6823_vm4, %v5548_v17, %v2400_v33  ;;  %v2402_v24 = vrot.slane %v2400_v33, 4  ;;  %v2407_v9 = vrot.slane %v5518_v10, 5  ;;  %v5993_v62 = vadd.f32 %v5992_v42, %v5991_v25  ;;  %v5882_v50 = vpop.f32.mrf.mxu0  ;;  %6327 = vmatprep.subr.mxu1 %v9546_v30 }
 0x197   :  { %2507 = vst [vmem:[#allocation2 + $0x218] sm:$0xf] %v2401_v32  ;;  %v5519_v48 = vld [vmem:[%s9538_s0 + $0x98] sm:$0x1]  ;;  %v5520_v53 = vld [vmem:[%s9538_s0 + $0x9c] sm:$0xe] }
 0x198   :  { %v2404_v11 = vsel %vm6823_vm4, %v2402_v24, %v2403_v57  ;;  %v2410_v22 = vrot.slane %v5519_v48, 5  ;;  %v5550_v46 = vrot.slane %v5520_v53, 9  ;;  %v2408_v49 = vsel %vm6823_vm4, %v5549_v58, %v2407_v9  ;;  %v5521_v41 = vld [vmem:[%s9538_s0 + $0xa0] sm:$0xf]  ;;  %v5522_v4 = vld [vmem:[%s9538_s0 + $0xa4] sm:$0x1]  ;;  %v5994_v57 = vpop.f32.mrf.mxu1  ;;  %v5883_v1 = vpop.f32.mrf.mxu0 }
 0x199   :  { %2508 = vst [vmem:[#allocation2 + $0x23c] sm:$0xf] %v2404_v11  ;;  %6300 = vmatmul.mubr.bf16.gmra.mxu0 %v6651_v35  ;;  %v2409_v55 = vrot.slane %v2407_v9, 4  ;;  %2509 = vst [vmem:[#allocation2 + $0x260] sm:$0xf] %v2408_v49  ;;  %v2414_v17 = vrot.slane %v5521_v41, 5  ;;  %v8681_v10 = vadd.f32 %v5993_v62, %v5881_v15  ;;  %v5884_v58 = vadd.f32 %v5883_v1, %v5882_v50 }
 0x19a   :  { %6303 = vmatprep.mubr.bf16.mxu0 %v6652_v54  ;;  %v2417_v8 = vrot.slane %v5522_v4, 5  ;;  %v5523_v61 = vld [vmem:[%s9538_s0 + $0xa8] sm:$0xe]  ;;  %v5524_v33 = vld [vmem:[%s9538_s0 + $0xac] sm:$0xf]  ;;  %v5995_v9 = vpop.f32.mrf.mxu1  ;;  %v8689_v53 = vld [vmem:[%s9539_s2 + $0x78] sm:$0xff] }
 0x19b   :  { %v6653_v19 = vld [vmem:[#allocation2 + $0x188] ss:$36 sps:$4 sm:$0xff]   ;;  %v2411_v60 = vsel %vm6823_vm4, %v2409_v55, %v2410_v22  ;;  %v5525_v35 = vld [vmem:[%s9538_s0 + $0xb0] sm:$0x1]  ;;  %v5551_v6 = vrot.slane %v5523_v61, 9  ;;  %v2415_v32 = vsel %vm6823_vm4, %v5550_v46, %v2414_v17  ;;  %v2416_v24 = vrot.slane %v2414_v17, 4  ;;  %6328 = vmatpush3.msra.mxu1 %v8689_v53 }
 0x19c   :  { %2510 = vst [vmem:[#allocation2 + $0x284] sm:$0xf] %v2411_v60  ;;  %v2421_v13 = vrot.slane %v5524_v33, 5  ;;  %2511 = vst [vmem:[#allocation2 + $0x2a8] sm:$0xf] %v2415_v32  ;;  %v2424_v11 = vrot.slane %v5525_v35, 5  ;;  %v5996_v15 = vadd.f32 %v5995_v9, %v5994_v57  ;;  %6329 = vmatprep.subr.mxu1 %v9546_v30  ;;  %v6013_v35 = vpop.f32.mrf.mxu0 }
 0x19d   :  { %v6654_v54 = vld [vmem:[#allocation2 + $0x1d0] ss:$36 sps:$4 sm:$0xff]   ;;  %9566 = vst [vmem:[#allocation3_spill] sm:$0xff] %v8689_v53  ;;  %v2418_v25 = vsel %vm6823_vm4, %v2416_v24, %v2417_v8  ;;  %v5527_v5 = vld [vmem:[%s9538_s0 + $0xb8] sm:$0xf] }
 0x19e   :  { %v5526_v48 = vld [vmem:[%s9538_s0 + $0xb4] sm:$0xe]  ;;  %v2422_v22 = vsel %vm6823_vm4, %v5551_v6, %v2421_v13  ;;  %v2423_v46 = vrot.slane %v2421_v13, 4  ;;  %v5528_v49 = vld [vmem:[%s9538_s0 + $0xbc] sm:$0x1]  ;;  %v2428_v41 = vrot.slane %v5527_v5, 5 }
 0x19f   :  { %v5552_v55 = vrot.slane %v5526_v48, 9  ;;  %2512 = vst [vmem:[#allocation2 + $0x2cc] sm:$0xf] %v2418_v25  ;;  %2513 = vst [vmem:[#allocation2 + $0x2f0] sm:$0xf] %v2422_v22  ;;  %v2431_v4 = vrot.slane %v5528_v49, 5  ;;  %v6014_v48 = vpop.f32.mrf.mxu0 }
 0x1a0   :  { %v2425_v42 = vsel %vm6823_vm4, %v2423_v46, %v2424_v11  ;;  %v5529_v17 = vld [vmem:[%s9538_s0 + $0xc0] sm:$0xe]  ;;  %v5530_v8 = vld [vmem:[%s9538_s0 + $0xc4] sm:$0xf]  ;;  %v5531_v61 = vld [vmem:[%s9538_s0 + $0xc8] sm:$0x1]  ;;  %v6015_v22 = vadd.f32 %v6014_v48, %v6013_v35 }
 0x1a1   :  { %6304 = vmatmul.mubr.bf16.gmra.mxu0 %v6653_v19  ;;  %2514 = vst [vmem:[#allocation2 + $0x314] sm:$0xf] %v2425_v42  ;;  %v2429_v62 = vsel %vm6823_vm4, %v5552_v55, %v2428_v41  ;;  %v2430_v50 = vrot.slane %v2428_v41, 4  ;;  %v5553_v60 = vrot.slane %v5529_v17, 9  ;;  %v2435_v33 = vrot.slane %v5530_v8, 5  ;;  %v6016_v55 = vpop.f32.mrf.mxu0 }
 0x1a2   :  { %6307 = vmatprep.mubr.bf16.mxu0 %v6654_v54  ;;  %2515 = vst [vmem:[#allocation2 + $0x338] sm:$0xf] %v2429_v62  ;;  %v2438_v6 = vrot.slane %v5531_v61, 5  ;;  %v5532_v57 = vld [vmem:[%s9538_s0 + $0xcc] sm:$0xe]  ;;  %v8722_v19 = vadd.f32 %v5996_v15, %v5884_v58  ;;  %v4354_v15 = vadd.f32 %v6015_v22, %v7832_v38 }
 0x1a3   :  { %v5533_v32 = vld [vmem:[%s9538_s0 + $0xd0] sm:$0xf]  ;;  %v6655_v24 = vld [vmem:[#allocation2 + $0x218] ss:$36 sps:$4 sm:$0xff]   ;;  %v2432_v13 = vsel %vm6823_vm4, %v2430_v50, %v2431_v4  ;;  %v2436_v1 = vsel %vm6823_vm4, %v5553_v60, %v2435_v33  ;;  %v2437_v54 = vrot.slane %v2435_v33, 4  ;;  %v5554_v11 = vrot.slane %v5532_v57, 9  ;;  %v6017_v62 = vpop.f32.mrf.mxu0 }
 0x1a4   :  { %2516 = vst [vmem:[#allocation2 + $0x35c] sm:$0xf] %v2432_v13  ;;  %2517 = vst [vmem:[#allocation2 + $0x380] sm:$0xf] %v2436_v1  ;;  %v5534_v9 = vld [vmem:[%s9538_s0 + $0xd4] sm:$0x1]  ;;  %v6018_v33 = vadd.f32 %v6017_v62, %v6016_v55  ;;  %v6125_v1 = vpop.f32.mrf.mxu1 }
 0x1a5   :  { %v2442_v25 = vrot.slane %v5533_v32, 5  ;;  %v2439_v58 = vsel %vm6823_vm4, %v2437_v54, %v2438_v6  ;;  %v2445_v46 = vrot.slane %v5534_v9, 5  ;;  %v5535_v5 = vld [vmem:[%s9538_s0 + $0xd8] sm:$0xe]  ;;  %v5536_v49 = vld [vmem:[%s9538_s0 + $0xdc] sm:$0xf] }
 0x1a6   :  { %v6656_v41 = vld [vmem:[#allocation2 + $0x260] ss:$36 sps:$4 sm:$0xff]   ;;  %2518 = vst [vmem:[#allocation2 + $0x3a4] sm:$0xf] %v2439_v58  ;;  %v5555_v8 = vrot.slane %v5535_v5, 9  ;;  %v2449_v61 = vrot.slane %v5536_v49, 5  ;;  %v8766_v54 = vadd.f32 %v6018_v33, %v7870_v27 }
 0x1a7   :  { %v2443_v4 = vsel %vm6823_vm4, %v5554_v11, %v2442_v25  ;;  %v2444_v42 = vrot.slane %v2442_v25, 4  ;;  %v5537_v17 = vld [vmem:[%s9538_s0 + $0xe0] sm:$0x1]  ;;  %v8748_v50 = vld [vmem:[%s9539_s2 + $0x70] sm:$0xff]  ;;  %v5538_v57 = vld [vmem:[%s9538_s0 + $0xe4] sm:$0xe]  ;;  %v6126_v25 = vpop.f32.mrf.mxu1 }
 0x1a8   :  { %2519 = vst [vmem:[#allocation2 + $0x3c8] sm:$0xf] %v2443_v4  ;;  %9567 = vst [vmem:[#allocation4_spill] sm:$0xff] %v8748_v50  ;;  %v2452_v60 = vrot.slane %v5537_v17, 5  ;;  %6330 = vmatpush3.msra.mxu1 %v8748_v50  ;;  %v2450_v35 = vsel %vm6823_vm4, %v5555_v8, %v2449_v61  ;;  %v2451_v6 = vrot.slane %v2449_v61, 4  ;;  %v5556_v13 = vrot.slane %v5538_v57, 9 }
 0x1a9   :  { %6308 = vmatmul.mubr.bf16.gmra.mxu0 %v6655_v24  ;;  %v2446_v38 = vsel %vm6823_vm4, %v2444_v42, %v2445_v46  ;;  %6331 = vmatprep.subr.mxu1 %v9546_v30  ;;  %2521 = vst [vmem:[#allocation2 + $0x410] sm:$0xf] %v2450_v35  ;;  %v5539_v32 = vld [vmem:[%s9538_s0 + $0xe8] sm:$0xf]  ;;  %v5540_v24 = vld [vmem:[%s9538_s0 + $0xec] sm:$0x1]  ;;  %v6127_v58 = vadd.f32 %v6126_v25, %v6125_v1  ;;  %v6019_v46 = vpop.f32.mrf.mxu0 }
 0x1aa   :  { %6311 = vmatprep.mubr.bf16.mxu0 %v6656_v41  ;;  %2520 = vst [vmem:[#allocation2 + $0x3ec] sm:$0xf] %v2446_v38  ;;  %v2453_v11 = vsel %vm6823_vm4, %v2451_v6, %v2452_v60  ;;  %v2456_v48 = vrot.slane %v5539_v32, 5  ;;  %v2459_v9 = vrot.slane %v5540_v24, 5  ;;  %v6657_v22 = vld [vmem:[#allocation2 + $0x2a8] ss:$36 sps:$4 sm:$0xff]   ;;  %v8772_v41 = vpop.f32.mrf.mxu1 }
 0x1ab   :  { %2522 = vst [vmem:[#allocation2 + $0x434] sm:$0xf] %v2453_v11  ;;  %v6658_v5 = vld [vmem:[#allocation2 + $0x2f0] ss:$36 sps:$4 sm:$0xff]   ;;  %v6020_v27 = vpop.f32.mrf.mxu0  ;;  %v8774_v4 = vadd.f32 %v6127_v58, %v4354_v15  ;;  %v8788_v15 = vld [vmem:[%s9539_s2 + $0x68] sm:$0xff]  ;;  %v8807_v25 = vld [vmem:[%s9539_s2 + $0x60] sm:$0xff] }
 0x1ac   :  { %v2457_v49 = vsel %vm6823_vm4, %v5556_v13, %v2456_v48  ;;  %v2458_v55 = vrot.slane %v2456_v48, 4  ;;  %v8778_v17 = vpop.f32.mrf.mxu1  ;;  %v6021_v8 = vadd.f32 %v6020_v27, %v6019_v46  ;;  %9568 = vst [vmem:[#allocation5_spill] sm:$0xff] %v8788_v15  ;;  %6332 = vmatpush3.msra.mxu1 %v8788_v15  ;;  %v6659_v38 = vld [vmem:[#allocation2 + $0x338] ss:$36 sps:$4 sm:$0xff]   ;;  %9569 = vst [vmem:[#allocation6_spill] sm:$0xff] %v8807_v25 }
 0x1ad   :  { %2523 = vst [vmem:[#allocation2 + $0x458] sm:$0xf] %v2457_v49  ;;  %v6022_v61 = vpop.f32.mrf.mxu0  ;;  %6333 = vmatprep.subr.mxu1 %v9546_v30  ;;  %v6660_v6 = vld [vmem:[#allocation2 + $0x380] ss:$36 sps:$4 sm:$0xff]  }
 0x1ae   :  { %v2460_v42 = vsel %vm6823_vm4, %v2458_v55, %v2459_v9  ;;  %v8781_v62 = vadd.f32 %v6021_v8, %v7872_v28  ;;  %v8783_v60 = vpop.f32.mrf.mxu1  ;;  %6334 = vmatpush3.msra.mxu1 %v8807_v25  ;;  %v8879_v25 = vld [vmem:[%s9539_s2 + $0x40] sm:$0xff] }
 0x1af   :  { %2524 = vst [vmem:[#allocation2 + $0x47c] sm:$0xf] %v2460_v42  ;;  %v6023_v33 = vpop.f32.mrf.mxu0  ;;  %6335 = vmatprep.subr.mxu1 %v9546_v30  ;;  %9573 = vst [vmem:[#allocation10_spill] sm:$0xff] %v8879_v25 }
 0x1b0   :  { %v6024_v51 = vadd.f32 %v6023_v33, %v6022_v61  ;;  %v8791_v35 = vpop.f32.mrf.mxu1 }
 0x1b1   :  { %6312 = vmatmul.mubr.bf16.gmra.mxu0 %v6657_v22  ;;  %v6025_v32 = vpop.f32.mrf.mxu0  ;;  %v6661_v48 = vld [vmem:[#allocation2 + $0x3c8] ss:$36 sps:$4 sm:$0xff]  }
 0x1b2   :  { %6315 = vmatprep.mubr.bf16.mxu0 %v6658_v5  ;;  %v8795_v28 = vadd.f32 %v6024_v51, %v7939_v45  ;;  %v8797_v57 = vpop.f32.mrf.mxu1  ;;  %v6662_v45 = vld [vmem:[#allocation2 + $0x410] ss:$36 sps:$4 sm:$0xff]  }
 0x1b3   :  { %v6026_v24 = vpop.f32.mrf.mxu0 }
 0x1b4   :  { %v8799_v13 = vpop.f32.mrf.mxu1  ;;  %v6027_v1 = vadd.f32 %v6026_v24, %v6025_v32 }
 0x1b5   :  { %v6028_v11 = vpop.f32.mrf.mxu0 }
 0x1b6   :  { %v8802_v9 = vadd.f32 %v6027_v1, %v7941_v47  ;;  %v8810_v58 = vpop.f32.mrf.mxu1  ;;  %v6663_v42 = vld [vmem:[#allocation2 + $0x458] ss:$36 sps:$4 sm:$0xff]  }
 0x1b7   :  { %v6029_v22 = vpop.f32.mrf.mxu0 }
 0x1b8   :  { %v6030_v46 = vadd.f32 %v6029_v22, %v6028_v11  ;;  %v8813_v5 = vpop.f32.mrf.mxu1 }
 0x1b9   :  { %6316 = vmatmul.mubr.bf16.gmra.mxu0 %v6659_v38  ;;  %v6031_v49 = vpop.f32.mrf.mxu0 }
 0x1ba   :  { %6319 = vmatprep.mubr.bf16.mxu0 %v6660_v6  ;;  %v8816_v47 = vadd.f32 %v6030_v46, %v7966_v7  ;;  %v8818_v55 = vpop.f32.mrf.mxu1  ;;  %v8828_v7 = vld [vmem:[%s9539_s2 + $0x58] sm:$0xff] }
 0x1bb   :  { %v6032_v27 = vpop.f32.mrf.mxu0  ;;  %9570 = vst [vmem:[#allocation7_spill] sm:$0xff] %v8828_v7  ;;  %6336 = vmatpush3.msra.mxu1 %v8828_v7 }
 0x1bc   :  { %v6033_v8 = vadd.f32 %v6032_v27, %v6031_v49  ;;  %v8820_v61 = vpop.f32.mrf.mxu1  ;;  %6337 = vmatprep.subr.mxu1 %v9546_v30 }
 0x1bd   :  { %v6034_v33 = vpop.f32.mrf.mxu0 }
 0x1be   :  { %v8823_v51 = vadd.f32 %v6033_v8, %v7994_v29  ;;  %v8830_v32 = vpop.f32.mrf.mxu1 }
 0x1bf   :  { %v6035_v38 = vpop.f32.mrf.mxu0 }
 0x1c0   :  { %v6036_v6 = vadd.f32 %v6035_v38, %v6034_v33  ;;  %v8837_v1 = vpop.f32.mrf.mxu1 }
 0x1c1   :  { %6320 = vmatmul.mubr.bf16.gmra.mxu0 %v6661_v48  ;;  %v6037_v11 = vpop.f32.mrf.mxu0 }
 0x1c2   :  { %6323 = vmatprep.mubr.bf16.mxu0 %v6662_v45  ;;  %v8834_v24 = vadd.f32 %v6036_v6, %v8037_v20  ;;  %v8839_v29 = vpop.f32.mrf.mxu1  ;;  %v8849_v20 = vld [vmem:[%s9539_s2 + $0x50] sm:$0xff] }
 0x1c3   :  { %v6038_v48 = vpop.f32.mrf.mxu0  ;;  %9571 = vst [vmem:[#allocation8_spill] sm:$0xff] %v8849_v20  ;;  %6338 = vmatpush3.msra.mxu1 %v8849_v20 }
 0x1c4   :  { %v8841_v45 = vpop.f32.mrf.mxu1  ;;  %v6039_v22 = vadd.f32 %v6038_v48, %v6037_v11  ;;  %6339 = vmatprep.subr.mxu1 %v9546_v30 }
 0x1c5   :  { %v6040_v46 = vpop.f32.mrf.mxu0 }
 0x1c6   :  { %v8844_v49 = vadd.f32 %v6039_v22, %v8039_v21  ;;  %v8863_v21 = vld [vmem:[%s9539_s2 + $0x48] sm:$0xff] }
 0x1c7   :  { %v6041_v27 = vpop.f32.mrf.mxu0  ;;  %9572 = vst [vmem:[#allocation9_spill] sm:$0xff] %v8863_v21  ;;  %6340 = vmatpush3.msra.mxu1 %v8863_v21  ;;  %v9575_v21 = vmov 0.0  }
 0x1c8   :  { %v6042_v8 = vadd.f32 %v6041_v27, %v6040_v46  ;;  %6341 = vmatprep.subr.mxu1 %v9546_v30  ;;  %6359 = vmatprep.mubr.msk.f32.mxu1 %vm6667_vm6, %v9575_v21 }
 0x1c9   :  { %6324 = vmatmul.mubr.bf16.gmra.mxu0 %v6663_v42  ;;  %v8851_v42 = vpop.f32.mrf.mxu1  ;;  %v6043_v11 = vpop.f32.mrf.mxu0  ;;  %6342 = vmatpush3.msra.mxu1 %v8879_v25 }
 0x1ca   :  { %v8858_v38 = vadd.f32 %v6042_v8, %v8094_v37  ;;  %6343 = vmatprep.subr.mxu1 %v9575_v21 }
 0x1cb   :  { %v8855_v33 = vpop.f32.mrf.mxu1  ;;  %v6044_v48 = vpop.f32.mrf.mxu0 }
 0x1cc   :  { %v6045_v46 = vadd.f32 %v6044_v48, %v6043_v11 }
 0x1cd   :  { %v8865_v6 = vpop.f32.mrf.mxu1  ;;  %v6046_v27 = vpop.f32.mrf.mxu0 }
 0x1ce   :  { %v8872_v37 = vadd.f32 %v6045_v46, %v8150_v43 }
 0x1cf   :  { %v8869_v22 = vpop.f32.mrf.mxu1  ;;  %v6047_v8 = vpop.f32.mrf.mxu0 }
 0x1d0   :  { %v6048_v7 = vadd.f32 %v6047_v8, %v6046_v27  ;;  %v8893_v8 = vld [vmem:[%s9539_s2 + $0x38] sm:$0xff] }
 0x1d1   :  { %v8874_v20 = vpop.f32.mrf.mxu1  ;;  %9576 = vst [vmem:[#allocation12_spill] sm:$0xff] %v8893_v8  ;;  %6344 = vmatpush3.msra.mxu1 %v8893_v8 }
 0x1d2   :  { %v8883_v30 = vadd.f32 %v6048_v7, %v8152_v44  ;;  %6345 = vmatprep.subr.mxu1 %v9575_v21 }
 0x1d3   :  { %v8886_v11 = vpop.f32.mrf.mxu1 }
 0x1d4   :  { %9574 = vst [vmem:[#allocation11_spill] sm:$0xff] %v8883_v30  ;;  %v6049_v43 = vpop.f32.mrf.mxu0  ;;  %v8910_v30 = vld [vmem:[%s9539_s2 + $0x30] sm:$0xff] }
 0x1d5   :  { %v8888_v46 = vpop.f32.mrf.mxu1  ;;  %9579 = vst [vmem:[#allocation15_spill] sm:$0xff] %v8910_v30  ;;  %6346 = vmatpush3.msra.mxu1 %v8910_v30  ;;  %v8927_v30 = vld [vmem:[%s9539_s2 + $0x28] sm:$0xff] }
 0x1d6   :  { %v6050_v48 = vpop.f32.mrf.mxu0  ;;  %6347 = vmatprep.subr.mxu1 %v9575_v21  ;;  %9582 = vst [vmem:[#allocation18_spill] sm:$0xff] %v8927_v30 }
 0x1d7   :  { %v6051_v15 = vadd.f32 %v6050_v48, %v6049_v43  ;;  %v8900_v7 = vpop.f32.mrf.mxu1  ;;  %6348 = vmatpush3.msra.mxu1 %v8927_v30 }
 0x1d8   :  { %v6052_v27 = vpop.f32.mrf.mxu0  ;;  %6349 = vmatprep.subr.mxu1 %v9575_v21 }
 0x1d9   :  { %v8896_v25 = vadd.f32 %v6051_v15, %v8193_v18 }
 0x1da   :  { %v6053_v44 = vpop.f32.mrf.mxu0 }
 0x1db   :  { %9577 = vst [vmem:[#allocation13_spill] sm:$0xff] %v8896_v25  ;;  %v6054_v50 = vadd.f32 %v6053_v44, %v6052_v27 }
 0x1dd   :  { %v8903_v53 = vadd.f32 %v6054_v50, %v8229_v2 }
 0x1de   :  { %v8905_v43 = vpop.f32.mrf.mxu1 }
 0x1df   :  { %9578 = vst [vmem:[#allocation14_spill] sm:$0xff] %v8903_v53 }
 0x1e0   :  { %v8914_v8 = vpop.f32.mrf.mxu1 }
 0x1e1   :  { %v6055_v48 = vpop.f32.mrf.mxu0 }
 0x1e2   :  { %v8919_v53 = vpop.f32.mrf.mxu1 }
 0x1e3   :  { %v6056_v18 = vpop.f32.mrf.mxu0 }
 0x1e4   :  { %v6057_v15 = vadd.f32 %v6056_v18, %v6055_v48  ;;  %v8931_v48 = vpop.f32.mrf.mxu1 }
 0x1e5   :  { %v6058_v27 = vpop.f32.mrf.mxu0  ;;  %9583 = vst [vmem:[#allocation19_spill] sm:$0xff] %v8931_v48 }
 0x1e6   :  { %v8917_v2 = vadd.f32 %v6057_v15, %v8242_v12 }
 0x1e7   :  { %v6059_v50 = vpop.f32.mrf.mxu0 }
 0x1e8   :  { %9580 = vst [vmem:[#allocation16_spill] sm:$0xff] %v8917_v2  ;;  %v6060_v44 = vadd.f32 %v6059_v50, %v6058_v27 }
 0x1ea   :  { %v8922_v25 = vadd.f32 %v6060_v44, %v8287_v39  ;;  %v8933_v27 = vpop.f32.mrf.mxu1  ;;  %v8941_v44 = vld [vmem:[%s9539_s2 + $0x20] sm:$0xff] }
 0x1eb   :  { %9584 = vst [vmem:[#allocation20_spill] sm:$0xff] %v8933_v27  ;;  %9586 = vst [vmem:[#allocation22_spill] sm:$0xff] %v8941_v44  ;;  %6350 = vmatpush3.msra.mxu1 %v8941_v44 }
 0x1ec   :  { %9581 = vst [vmem:[#allocation17_spill] sm:$0xff] %v8922_v25  ;;  %6351 = vmatprep.subr.mxu1 %v9575_v21  ;;  %v8945_v2 = vpop.f32.mrf.mxu1 }
 0x1ed   :  { %9587 = vst [vmem:[#allocation23_spill] sm:$0xff] %v8945_v2 }
 0x1ee   :  { %v6061_v12 = vpop.f32.mrf.mxu0  ;;  %v8950_v27 = vpop.f32.mrf.mxu1 }
 0x1ef   :  { %9589 = vst [vmem:[#allocation25_spill] sm:$0xff] %v8950_v27 }
 0x1f0   :  { %v6062_v18 = vpop.f32.mrf.mxu0 }
 0x1f1   :  { %v6063_v15 = vadd.f32 %v6062_v18, %v6061_v12 }
 0x1f2   :  { %v6064_v50 = vpop.f32.mrf.mxu0 }
 0x1f3   :  { %v8936_v39 = vadd.f32 %v6063_v15, %v8304_v40  ;;  %v8955_v15 = vld [vmem:[%s9539_s2 + $0x18] sm:$0xff] }
 0x1f4   :  { %v6065_v25 = vpop.f32.mrf.mxu0  ;;  %9590 = vst [vmem:[#allocation26_spill] sm:$0xff] %v8955_v15  ;;  %6352 = vmatpush3.msra.mxu1 %v8955_v15 }
 0x1f5   :  { %9585 = vst [vmem:[#allocation21_spill] sm:$0xff] %v8936_v39  ;;  %v6066_v30 = vadd.f32 %v6065_v25, %v6064_v50  ;;  %6353 = vmatprep.subr.mxu1 %v9575_v21  ;;  %v8959_v50 = vpop.f32.mrf.mxu1 }
 0x1f6   :  { %9591 = vst [vmem:[#allocation27_spill] sm:$0xff] %v8959_v50 }
 0x1f7   :  { %v8948_v12 = vadd.f32 %v6066_v30, %v8336_v63 }
 0x1f9   :  { %9588 = vst [vmem:[#allocation24_spill] sm:$0xff] %v8948_v12  ;;  %v8964_v12 = vpop.f32.mrf.mxu1 }
 0x1fa   :  { %9593 = vst [vmem:[#allocation29_spill] sm:$0xff] %v8964_v12 }
 0x1fb   :  { %v6067_v18 = vpop.f32.mrf.mxu0  ;;  %v8976_v15 = vpop.f32.mrf.mxu1 }
 0x1fc   :  { %9596 = vst [vmem:[#allocation32_spill] sm:$0xff] %v8976_v15 }
 0x1fd   :  { %v6068_v40 = vpop.f32.mrf.mxu0 }
 0x1fe   :  { %v6069_v39 = vadd.f32 %v6068_v40, %v6067_v18  ;;  %v8972_v18 = vld [vmem:[%s9539_s2 + $0x10] sm:$0xff] }
 0x1ff   :  { %v6070_v25 = vpop.f32.mrf.mxu0  ;;  %9595 = vst [vmem:[#allocation31_spill] sm:$0xff] %v8972_v18  ;;  %6354 = vmatpush3.msra.mxu1 %v8972_v18 }
 0x200   :  { %v8962_v63 = vadd.f32 %v6069_v39, %v8393_v56  ;;  %6355 = vmatprep.subr.mxu1 %v9575_v21 }
 0x201   :  { %v6071_v30 = vpop.f32.mrf.mxu0 }
 0x202   :  { %9592 = vst [vmem:[#allocation28_spill] sm:$0xff] %v8962_v63  ;;  %v6072_v44 = vadd.f32 %v6071_v30, %v6070_v25 }
 0x204   :  { %v8967_v27 = vadd.f32 %v6072_v44, %v8413_v26  ;;  %v8981_v26 = vpop.f32.mrf.mxu1 }
 0x206   :  { %9594 = vst [vmem:[#allocation30_spill] sm:$0xff] %v8967_v27  ;;  %v8986_v12 = vpop.f32.mrf.mxu1 }
 0x207   :  { %v6073_v40 = vpop.f32.mrf.mxu0 }
 0x208   :  { %v8988_v2 = vpop.f32.mrf.mxu1 }
 0x209   :  { %v6074_v56 = vpop.f32.mrf.mxu0 }
 0x20a   :  { %v6075_v39 = vadd.f32 %v6074_v56, %v6073_v40  ;;  %v8996_v56 = vld [vmem:[%s9539_s2 + $0x8] sm:$0xff] }
 0x20b   :  { %v6076_v25 = vpop.f32.mrf.mxu0  ;;  %9600 = vst [vmem:[#allocation36_spill] sm:$0xff] %v8996_v56  ;;  %6356 = vmatpush3.msra.mxu1 %v8996_v56 }
 0x20c   :  { %v8979_v30 = vadd.f32 %v6075_v39, %v8449_v36  ;;  %6357 = vmatprep.subr.mxu1 %v9575_v21 }
 0x20d   :  { %v6077_v44 = vpop.f32.mrf.mxu0 }
 0x20e   :  { %9597 = vst [vmem:[#allocation33_spill] sm:$0xff] %v8979_v30  ;;  %v6078_v27 = vadd.f32 %v6077_v44, %v6076_v25 }
 0x210   :  { %v8984_v63 = vadd.f32 %v6078_v27, %v8476_v59  ;;  %v9001_v59 = vld [vmem:[%s9539_s2] sm:$0xff]  ;;  %v9003_v27 = vpop.f32.mrf.mxu1 }
 0x211   :  { %9601 = vst [vmem:[#allocation37_spill] sm:$0xff] %v9001_v59  ;;  %6358 = vmatpush3.msra.mxu1 %v9001_v59 }
 0x212   :  { %9598 = vst [vmem:[#allocation34_spill] sm:$0xff] %v8984_v63  ;;  %6362 = vmatprep.subr.mxu1 %v9575_v21 }
 0x213   :  { %v6079_v18 = vpop.f32.mrf.mxu0 }
 0x215   :  { %v6080_v50 = vpop.f32.mrf.mxu0 }
 0x216   :  { %v6081_v15 = vadd.f32 %v6080_v50, %v6079_v18 }
 0x217   :  { %v6082_v48 = vpop.f32.mrf.mxu0 }
 0x218   :  { %v8991_v40 = vadd.f32 %v6081_v15, %v8530_v14  ;;  %v9014_v15 = vpop.f32.mrf.mxu1 }
 0x219   :  { %v6083_v36 = vpop.f32.mrf.mxu0 }
 0x21a   :  { %9599 = vst [vmem:[#allocation35_spill] sm:$0xff] %v8991_v40  ;;  %v6084_v39 = vadd.f32 %v6083_v36, %v6082_v48  ;;  %v9016_v48 = vpop.f32.mrf.mxu1 }
 0x21b   :  { %9603 = vst [vmem:[#allocation39_spill] sm:$0xff] %v9016_v48 }
 0x21c   :  { %v9010_v14 = vadd.f32 %v6084_v39, %v8556_v3  ;;  %v9021_v40 = vpop.f32.mrf.mxu1 }
 0x21e   :  { %9602 = vst [vmem:[#allocation38_spill] sm:$0xff] %v9010_v14  ;;  %v9026_v59 = vpop.f32.mrf.mxu1 }
 0x220   :  { %v9028_v30 = vpop.f32.mrf.mxu1 }
 0x221   :  { %v6085_v50 = vpop.f32.mrf.mxu0 }
 0x223   :  { %v6086_v18 = vpop.f32.mrf.mxu0 }
 0x224   :  { %v6087_v25 = vadd.f32 %v6086_v18, %v6085_v50 }
 0x225   :  { %v6088_v44 = vpop.f32.mrf.mxu0 }
 0x226   :  { %v9019_v36 = vadd.f32 %v6087_v25, %v8582_v52  ;;  %v9033_v25 = vpop.f32.mrf.mxu1 }
 0x227   :  { %v6089_v56 = vpop.f32.mrf.mxu0 }
 0x228   :  { %9604 = vst [vmem:[#allocation40_spill] sm:$0xff] %v9019_v36  ;;  %v6090_v3 = vadd.f32 %v6089_v56, %v6088_v44  ;;  %v9038_v44 = vpop.f32.mrf.mxu1 }
 0x229   :  { %9608 = vst [vmem:[#allocation44_spill] sm:$0xff] %v9038_v44 }
 0x22a   :  { %v9024_v39 = vadd.f32 %v6090_v3, %v8592_v31 }
 0x22c   :  { %9605 = vst [vmem:[#allocation41_spill] sm:$0xff] %v9024_v39 }
 0x22e   :  { %v6091_v21 = vpop.f32.mrf.mxu0 }
 0x230   :  { %v6092_v14 = vpop.f32.mrf.mxu0 }
 0x231   :  { %v6093_v63 = vadd.f32 %v6092_v14, %v6091_v21  ;;  %v9040_v21 = vpop.f32.mrf.mxu1 }
 0x232   :  { %v6094_v48 = vpop.f32.mrf.mxu0 }
 0x233   :  { %v9031_v50 = vadd.f32 %v6093_v63, %v8607_v34 }
 0x234   :  { %v6095_v52 = vpop.f32.mrf.mxu0 }
 0x235   :  { %9606 = vst [vmem:[#allocation42_spill] sm:$0xff] %v9031_v50  ;;  %v6096_v18 = vadd.f32 %v6095_v52, %v6094_v48  ;;  %v9045_v50 = vpop.f32.mrf.mxu1 }
 0x237   :  { %v9036_v56 = vadd.f32 %v6096_v18, %v8619_v0  ;;  %v9050_v52 = vpop.f32.mrf.mxu1 }
 0x239   :  { %9607 = vst [vmem:[#allocation43_spill] sm:$0xff] %v9036_v56 }
 0x23c   :  { %v6097_v31 = vpop.f32.mrf.mxu0 }
 0x23e   :  { %v6098_v3 = vpop.f32.mrf.mxu0 }
 0x23f   :  { %v6099_v39 = vadd.f32 %v6098_v3, %v6097_v31  ;;  %v9055_v3 = vpop.f32.mrf.mxu1 }
 0x240   :  { %v6100_v36 = vpop.f32.mrf.mxu0 }
 0x241   :  { %v9043_v14 = vadd.f32 %v6099_v39, %v8629_v16 }
 0x242   :  { %v6101_v34 = vpop.f32.mrf.mxu0 }
 0x243   :  { %9609 = vst [vmem:[#allocation45_spill] sm:$0xff] %v9043_v14  ;;  %v6102_v63 = vadd.f32 %v6101_v34, %v6100_v36  ;;  %v6130_v36 = vadd.f32 %v8778_v17, %v8772_v41  ;;  %v9062_v34 = vpop.f32.mrf.mxu1  ;;  %v6139_v41 = vadd.f32 %v8813_v5, %v8810_v58 }
 0x245   :  { %v9048_v48 = vadd.f32 %v6102_v63, %v8641_v23 }
 0x249   :  { %v6103_v0 = vpop.f32.mrf.mxu0 }
 0x24b   :  { %v6104_v18 = vpop.f32.mrf.mxu0 }
 0x24c   :  { %v6105_v56 = vadd.f32 %v6104_v18, %v6103_v0  ;;  %v6133_v0 = vadd.f32 %v8791_v35, %v8783_v60  ;;  %v6142_v35 = vadd.f32 %v8820_v61, %v8818_v55  ;;  %v6148_v61 = vadd.f32 %v8841_v45, %v8839_v29 }
 0x24d   :  { %v6106_v44 = vpop.f32.mrf.mxu0  ;;  %v6154_v29 = vadd.f32 %v8869_v22, %v8865_v6  ;;  %v6160_v6 = vadd.f32 %v8900_v7, %v8888_v46  ;;  %v9610_v46 = vld [vmem:[#allocation19_spill] sm:$0xff] }
 0x24e   :  { %v9053_v31 = vadd.f32 %v6105_v56, %v8681_v10  ;;  %v6136_v10 = vadd.f32 %v8799_v13, %v8797_v57  ;;  %v4518_v56 = vadd.f32 %v6130_v36, %v8766_v54  ;;  %v6166_v7 = vadd.f32 %v9610_v46, %v8919_v53  ;;  %v9615_v53 = vld [vmem:[#allocation25_spill] sm:$0xff] }
 0x24f   :  { %v6107_v16 = vpop.f32.mrf.mxu0 }
 0x250   :  { %v6108_v39 = vadd.f32 %v6107_v16, %v6106_v44  ;;  %v9069_v44 = vpop.f32.mrf.mxu1  ;;  %v4526_v54 = vadd.f32 %v6136_v10, %v8795_v28 }
 0x251   :  { %v6297_v14 = vpop.f32.mrf.mxu0 }
 0x252   :  { %v9060_v23 = vadd.f32 %v6108_v39, %v8722_v19  ;;  %v4523_v19 = vadd.f32 %v6133_v0, %v8781_v62  ;;  %v9086_v36 = vpop.f32.mrf.mxu1  ;;  %v4534_v0 = vadd.f32 %v6142_v35, %v8816_v47  ;;  %v4542_v47 = vadd.f32 %v6148_v61, %v8834_v24  ;;  %v9611_v61 = vld [vmem:[#allocation11_spill] sm:$0xff] }
 0x253   :  { %v4675_v63 = vpop.f32.mrf.mxu0 }
 0x254   :  { %v9075_v17 = vadd.f32 %v4675_v63, %v8774_v4  ;;  %v9081_v57 = vadd.f32 %v6297_v14, %v4523_v19  ;;  %v6145_v4 = vadd.f32 %v8837_v1, %v8830_v32  ;;  %v4531_v63 = vadd.f32 %v6139_v41, %v8802_v9  ;;  %v9100_v10 = vpop.f32.mrf.mxu1 }
 0x255   :  { %v6298_v18 = vpop.f32.mrf.mxu0  ;;  %v6151_v32 = vadd.f32 %v8855_v33, %v8851_v42 }
 0x256   :  { %v9090_v62 = vadd.f32 %v6298_v18, %v4526_v54  ;;  %v4539_v1 = vadd.f32 %v6145_v4, %v8823_v51  ;;  %v9114_v19 = vpop.f32.mrf.mxu1  ;;  %v6157_v51 = vadd.f32 %v8886_v11, %v8874_v20  ;;  %v6163_v20 = vadd.f32 %v8914_v8, %v8905_v43  ;;  %v9612_v8 = vld [vmem:[#allocation20_spill] sm:$0xff]  ;;  %v9613_v43 = vld [vmem:[#allocation23_spill] sm:$0xff] }
 0x257   :  { %v4678_v16 = vpop.f32.mrf.mxu0  ;;  %v4547_v54 = vadd.f32 %v6151_v32, %v8844_v49 }
 0x258   :  { %v9077_v39 = vadd.f32 %v4678_v16, %v4518_v56  ;;  %v4555_v11 = vadd.f32 %v6157_v51, %v8872_v37  ;;  %v6169_v37 = vadd.f32 %v9613_v43, %v9612_v8 }
 0x259   :  { %v6301_v60 = vpop.f32.mrf.mxu0 }
 0x25a   :  { %v4802_v13 = vadd.f32 %v9077_v39, %v9075_v17  ;;  %v9110_v45 = vadd.f32 %v6301_v60, %v4539_v1  ;;  %v4550_v60 = vadd.f32 %v6154_v29, %v8858_v38  ;;  %v4558_v38 = vadd.f32 %v6160_v6, %v9611_v61 }
 0x25b   :  { %v4691_v58 = vpop.f32.mrf.mxu0 }
 0x25c   :  { %v4803_v5 = vadd.f32 %v4802_v13, %v9081_v57  ;;  %v9096_v28 = vadd.f32 %v4691_v58, %v4531_v63  ;;  %v9128_v58 = vpop.f32.mrf.mxu1 }
 0x25d   :  { %v6302_v55 = vpop.f32.mrf.mxu0 }
 0x25e   :  { %v4804_v14 = vadd.f32 %v4803_v5, %v9090_v62  ;;  %v9118_v42 = vadd.f32 %v6302_v55, %v4542_v47 }
 0x25f   :  { %v4694_v56 = vpop.f32.mrf.mxu0 }
 0x260   :  { %v4805_v9 = vadd.f32 %v4804_v14, %v9096_v28  ;;  %v9106_v18 = vadd.f32 %v4694_v56, %v4534_v0  ;;  %v9142_v0 = vpop.f32.mrf.mxu1 }
 0x261   :  { %v6305_v16 = vpop.f32.mrf.mxu0 }
 0x262   :  { %v4806_v41 = vadd.f32 %v4805_v9, %v9106_v18  ;;  %v9138_v55 = vadd.f32 %v6305_v16, %v4555_v11  ;;  %v9614_v9 = vld [vmem:[#allocation13_spill] sm:$0xff]  ;;  %v9616_v16 = vld [vmem:[#allocation27_spill] sm:$0xff]  ;;  %v9156_v6 = vpop.f32.mrf.mxu1  ;;  %v9620_v11 = vld [vmem:[#allocation16_spill] sm:$0xff] }
 0x263   :  { %v4707_v35 = vpop.f32.mrf.mxu0  ;;  %v4563_v29 = vadd.f32 %v6163_v20, %v9614_v9  ;;  %v6181_v9 = vadd.f32 %v9003_v27, %v8988_v2  ;;  %v6187_v2 = vadd.f32 %v9026_v59, %v9021_v40  ;;  %v9625_v27 = vld [vmem:[#allocation28_spill] sm:$0xff] }
 0x264   :  { %v4807_v33 = vadd.f32 %v4806_v41, %v9110_v45  ;;  %v9124_v22 = vadd.f32 %v4707_v35, %v4547_v54  ;;  %v6172_v41 = vadd.f32 %v9616_v16, %v9615_v53  ;;  %v6210_v43 = vpop.f32.mrf.mxu1  ;;  %v9622_v53 = vld [vmem:[#allocation21_spill] sm:$0xff] }
 0x265   :  { %v6306_v13 = vpop.f32.mrf.mxu0 }
 0x266   :  { %v4808_v24 = vadd.f32 %v4807_v33, %v9118_v42  ;;  %v9146_v32 = vadd.f32 %v6306_v13, %v4558_v38  ;;  %v9617_v33 = vld [vmem:[#allocation14_spill] sm:$0xff]  ;;  %v9619_v13 = vld [vmem:[#allocation32_spill] sm:$0xff]  ;;  %v6178_v38 = vadd.f32 %v8986_v12, %v8981_v26  ;;  %v9623_v12 = vld [vmem:[#allocation39_spill] sm:$0xff] }
 0x267   :  { %v4710_v4 = vpop.f32.mrf.mxu0  ;;  %v4566_v54 = vadd.f32 %v6166_v7, %v9617_v33  ;;  %v6184_v26 = vadd.f32 %v9623_v12, %v9014_v15  ;;  %v9624_v33 = vld [vmem:[#allocation24_spill] sm:$0xff]  ;;  %v6190_v15 = vadd.f32 %v9033_v25, %v9028_v30  ;;  %v6196_v30 = vadd.f32 %v9050_v52, %v9045_v50  ;;  %v9629_v12 = vld [vmem:[#allocation34_spill] sm:$0xff] }
 0x268   :  { %v4809_v49 = vadd.f32 %v4808_v24, %v9124_v22  ;;  %v9134_v5 = vadd.f32 %v4710_v4, %v4550_v60  ;;  %v9618_v60 = vld [vmem:[#allocation29_spill] sm:$0xff]  ;;  %v6202_v50 = vadd.f32 %v9086_v36, %v9069_v44  ;;  %v6208_v44 = vadd.f32 %v9142_v0, %v9128_v58  ;;  %v9635_v58 = vld [vmem:[#allocation43_spill] sm:$0xff] }
 0x269   :  { %v6309_v63 = vpop.f32.mrf.mxu0  ;;  %v6175_v4 = vadd.f32 %v9619_v13, %v9618_v60 }
 0x26a   :  { %v4810_v14 = vadd.f32 %v4809_v49, %v9134_v5  ;;  %v4571_v49 = vadd.f32 %v6169_v37, %v9620_v11  ;;  %v4622_v0 = vadd.f32 %v6208_v44, %v9635_v58  ;;  %v9643_v58 = vld [vmem:[#allocation8_spill] sm:$0xff] }
 0x26b   :  { %v4723_v56 = vpop.f32.mrf.mxu0  ;;  %v4579_v16 = vadd.f32 %v6175_v4, %v9622_v53 }
 0x26c   :  { %v4811_v1 = vadd.f32 %v4810_v14, %v9138_v55  ;;  %v9152_v35 = vadd.f32 %v4723_v56, %v4563_v29  ;;  %v9166_v14 = vadd.f32 %v6309_v63, %v4571_v49  ;;  %v9621_v56 = vld [vmem:[#allocation17_spill] sm:$0xff] }
 0x26d   :  { %v6310_v47 = vpop.f32.mrf.mxu0  ;;  %v4574_v7 = vadd.f32 %v6172_v41, %v9621_v56 }
 0x26e   :  { %v4812_v51 = vadd.f32 %v4811_v1, %v9146_v32 }
 0x26f   :  { %v4726_v24 = vpop.f32.mrf.mxu0  ;;  %v9172_v37 = vadd.f32 %v6310_v47, %v4574_v7  ;;  %v4587_v47 = vadd.f32 %v6181_v9, %v9625_v27 }
 0x270   :  { %v4813_v20 = vadd.f32 %v4812_v51, %v9152_v35  ;;  %v9162_v46 = vadd.f32 %v4726_v24, %v4566_v54  ;;  %v4582_v54 = vadd.f32 %v6178_v38, %v9624_v33  ;;  %v6212_v24 = vpop.f32.mrf.mxu1 }
 0x271   :  { %v6313_v61 = vpop.f32.mrf.mxu0 }
 0x272   :  { %v4814_v8 = vadd.f32 %v4813_v20, %v9162_v46  ;;  %v9190_v49 = vadd.f32 %v6313_v61, %v4587_v47  ;;  %v9626_v20 = vld [vmem:[#allocation30_spill] sm:$0xff]  ;;  %v6213_v7 = vpop.f32.mrf.mxu1 }
 0x273   :  { %v4739_v1 = vpop.f32.mrf.mxu0  ;;  %v4590_v56 = vadd.f32 %v6184_v26, %v9626_v20  ;;  %v4598_v26 = vadd.f32 %v6190_v15, %v9629_v12  ;;  %v9631_v47 = vld [vmem:[#allocation38_spill] sm:$0xff] }
 0x274   :  { %v4815_v29 = vadd.f32 %v4814_v8, %v9166_v14  ;;  %v9178_v63 = vadd.f32 %v4739_v1, %v4579_v16  ;;  %v9627_v1 = vld [vmem:[#allocation44_spill] sm:$0xff] }
 0x275   :  { %v6314_v51 = vpop.f32.mrf.mxu0  ;;  %v6193_v40 = vadd.f32 %v9040_v21, %v9627_v1  ;;  %v6199_v21 = vadd.f32 %v9062_v34, %v9055_v3  ;;  %v6205_v3 = vadd.f32 %v9114_v19, %v9100_v10  ;;  %v6211_v10 = vadd.f32 %v6210_v43, %v9156_v6  ;;  %v9634_v19 = vld [vmem:[#allocation42_spill] sm:$0xff]  ;;  %v9636_v43 = vld [vmem:[#allocation45_spill] sm:$0xff] }
 0x276   :  { %v4816_v41 = vadd.f32 %v4815_v29, %v9172_v37  ;;  %v9196_v59 = vadd.f32 %v6314_v51, %v4590_v56  ;;  %v9628_v29 = vld [vmem:[#allocation33_spill] sm:$0xff]  ;;  %v9630_v51 = vld [vmem:[#allocation35_spill] sm:$0xff] }
 0x277   :  { %v4742_v60 = vpop.f32.mrf.mxu0  ;;  %v4595_v53 = vadd.f32 %v6187_v2, %v9628_v29 }
 0x278   :  { %v4817_v13 = vadd.f32 %v4816_v41, %v9178_v63  ;;  %v9186_v4 = vadd.f32 %v4742_v60, %v4582_v54  ;;  %v6215_v41 = vpop.f32.mrf.mxu1  ;;  %v4603_v54 = vadd.f32 %v6193_v40, %v9630_v51 }
 0x279   :  { %v6317_v11 = vpop.f32.mrf.mxu0 }
 0x27a   :  { %v4818_v38 = vadd.f32 %v4817_v13, %v9186_v4  ;;  %v9214_v52 = vadd.f32 %v6317_v11, %v4603_v54  ;;  %v4606_v13 = vadd.f32 %v6196_v30, %v9631_v47  ;;  %v6216_v20 = vpop.f32.mrf.mxu1 }
 0x27b   :  { %v4755_v8 = vpop.f32.mrf.mxu0 }
 0x27c   :  { %v4819_v9 = vadd.f32 %v4818_v38, %v9190_v49  ;;  %v9202_v25 = vadd.f32 %v4755_v8, %v4595_v53  ;;  %v9632_v8 = vld [vmem:[#allocation40_spill] sm:$0xff]  ;;  %v6218_v53 = vpop.f32.mrf.mxu1 }
 0x27d   :  { %v6318_v16 = vpop.f32.mrf.mxu0  ;;  %v4611_v1 = vadd.f32 %v6199_v21, %v9632_v8 }
 0x27e   :  { %v4820_v61 = vadd.f32 %v4819_v9, %v9196_v59  ;;  %v9220_v34 = vadd.f32 %v6318_v16, %v4606_v13  ;;  %v9633_v9 = vld [vmem:[#allocation41_spill] sm:$0xff]  ;;  %v4619_v16 = vadd.f32 %v6205_v3, %v9634_v19  ;;  %v6219_v54 = vpop.f32.mrf.mxu1  ;;  %v4627_v13 = vadd.f32 %v6211_v10, %v9636_v43  ;;  %v9637_v19 = vld [vmem:[#allocation3_spill] sm:$0xff]  ;;  %v9650_v43 = vld [vmem:[#allocation26_spill] sm:$0xff] }
 0x27f   :  { %v4758_v33 = vpop.f32.mrf.mxu0  ;;  %v4614_v29 = vadd.f32 %v6202_v50, %v9633_v9  ;;  %v6217_v50 = vadd.f32 %v6216_v20, %v6215_v41 }
 0x280   :  { %v4821_v60 = vadd.f32 %v4820_v61, %v9202_v25  ;;  %v9210_v2 = vadd.f32 %v4758_v33, %v4598_v26  ;;  %v6214_v33 = vadd.f32 %v6213_v7, %v6212_v24 }
 0x281   :  { %v6321_v27 = vpop.f32.mrf.mxu0 }
 0x282   :  { %v4822_v15 = vadd.f32 %v4821_v60, %v9210_v2  ;;  %v9235_v21 = vadd.f32 %v6321_v27, %v4619_v16  ;;  %v4630_v7 = vadd.f32 %v6214_v33, %v9048_v48  ;;  %v9638_v16 = vmov 0.0   ;;  %v9642_v33 = vld [vmem:[#allocation7_spill] sm:$0xff] }
 0x283   :  { %v4771_v56 = vpop.f32.mrf.mxu0 }
 0x284   :  { %v4823_v38 = vadd.f32 %v4822_v15, %v9214_v52  ;;  %v9226_v36 = vadd.f32 %v4771_v56, %v4611_v1  ;;  %v6220_v56 = vadd.f32 %v6219_v54, %v6218_v53  ;;  %v9646_v54 = vld [vmem:[#allocation12_spill] sm:$0xff] }
 0x285   :  { %v6322_v40 = vpop.f32.mrf.mxu0 }
 0x286   :  { %v4824_v11 = vadd.f32 %v4823_v38, %v9220_v34  ;;  %v9239_v47 = vadd.f32 %v6322_v40, %v4622_v0  ;;  %v4635_v38 = vadd.f32 %v6217_v50, %v9053_v31  ;;  %v4638_v1 = vadd.f32 %v6220_v56, %v9060_v23  ;;  %v9639_v23 = vld [vmem:[#allocation4_spill] sm:$0xff]  ;;  %v9644_v0 = vld [vmem:[#allocation9_spill] sm:$0xff]  ;;  %v9648_v50 = vld [vmem:[#allocation18_spill] sm:$0xff] }
 0x287   :  { %v4774_v30 = vpop.f32.mrf.mxu0  ;;  %v9653_v56 = vld [vmem:[#allocation37_spill] sm:$0xff] }
 0x288   :  { %v4825_v61 = vadd.f32 %v4824_v11, %v9226_v36  ;;  %v9233_v12 = vadd.f32 %v4774_v30, %v4614_v29 }
 0x289   :  { %v6325_v26 = vpop.f32.mrf.mxu0 }
 0x28a   :  { %v4826_v51 = vadd.f32 %v4825_v61, %v9233_v12  ;;  %v9251_v20 = vadd.f32 %v6325_v26, %v4635_v38  ;;  %v9640_v61 = vld [vmem:[#allocation5_spill] sm:$0xff]  ;;  %v9641_v26 = vld [vmem:[#allocation6_spill] sm:$0xff] }
 0x28b   :  { %v4787_v60 = vpop.f32.mrf.mxu0 }
 0x28c   :  { %v4827_v6 = vadd.f32 %v4826_v51, %v9235_v21  ;;  %v9243_v3 = vadd.f32 %v4787_v60, %v4627_v13  ;;  %v9645_v51 = vld [vmem:[#allocation10_spill] sm:$0xff]  ;;  %v9647_v60 = vld [vmem:[#allocation15_spill] sm:$0xff] }
 0x28d   :  { %v6326_v15 = vpop.f32.mrf.mxu0  ;;  %v9651_v13 = vld [vmem:[#allocation31_spill] sm:$0xff] }
 0x28e   :  { %v4828_v24 = vadd.f32 %v4827_v6, %v9239_v47  ;;  %v9255_v44 = vadd.f32 %v6326_v15, %v4638_v1  ;;  %v9649_v6 = vld [vmem:[#allocation22_spill] sm:$0xff]  ;;  %v9652_v15 = vld [vmem:[#allocation36_spill] sm:$0xff] }
 0x28f   :  { %v4790_v27 = vpop.f32.mrf.mxu0 }
 0x290   :  { %v4829_v8 = vadd.f32 %v4828_v24, %v9243_v3  ;;  %v9249_v41 = vadd.f32 %v4790_v27, %v4630_v7  ;;  %v4926_v24 = vlaneseq }
 0x292   :  { %v4830_v40 = vadd.f32 %v4829_v8, %v9249_v41  ;;  %v4927_v27 = vshrl.u32 %v4926_v24, 7 }
 0x294   :  { %v4831_v11 = vadd.f32 %v4830_v40, %v9251_v20  ;;  %v9294_v1 = vsub.s32 0, %v4927_v27 }
 0x296   :  { %v4832_v9 = vadd.f32 %v4831_v11, %v9255_v44 }
 0x298   :  { %v4833_v48 = vrot.slane %v4832_v9, 4 }
 0x29a   :  { %v4834_v29 = vadd.f32 %v4833_v48, %v4832_v9 }
 0x29c   :  { %v4835_v53 = vrot.slane %v4834_v29, 2 }
 0x29e   :  { %v4836_v31 = vadd.f32 %v4835_v53, %v4834_v29 }
 0x2a0   :  { %v4837_v30 = vrot.slane %v4836_v31, 1 }
 0x2a2   :  { %v4838_v10 = vadd.f32 %v4837_v30, %v4836_v31 }
 0x2a4   :  { %6360 = vmatmul.mubr.f32.vlgmr.msra.gmra.mxu1 %v4838_v10 }
 0x2a5   :  { %6363 = vmatpush3.msra.mxu1 %v9637_v19  ;;  %6394 = vmatprep.mubr.msk.f32.mxu1 %vm6667_vm6, %v9638_v16 }
 0x2a6   :  { %6364 = vmatprep.subr.mxu1 %v9638_v16 }
 0x2a7   :  { %6365 = vmatpush3.msra.mxu1 %v9639_v23 }
 0x2a8   :  { %6366 = vmatprep.subr.mxu1 %v9638_v16 }
 0x2a9   :  { %6367 = vmatpush3.msra.mxu1 %v9640_v61 }
 0x2aa   :  { %6368 = vmatprep.subr.mxu1 %v9638_v16 }
 0x2ab   :  { %6369 = vmatpush3.msra.mxu1 %v9641_v26 }
 0x2ac   :  { %6370 = vmatprep.subr.mxu1 %v9638_v16 }
 0x2ad   :  { %6371 = vmatpush3.msra.mxu1 %v9642_v33 }
 0x2ae   :  { %6372 = vmatprep.subr.mxu1 %v9638_v16 }
 0x2af   :  { %6373 = vmatpush3.msra.mxu1 %v9643_v58 }
 0x2b0   :  { %6374 = vmatprep.subr.mxu1 %v9638_v16 }
 0x2b1   :  { %6375 = vmatpush3.msra.mxu1 %v9644_v0 }
 0x2b2   :  { %6376 = vmatprep.subr.mxu1 %v9638_v16 }
 0x2b3   :  { %6377 = vmatpush3.msra.mxu1 %v9645_v51 }
 0x2b4   :  { %6378 = vmatprep.subr.mxu1 %v9638_v16 }
 0x2b5   :  { %6379 = vmatpush3.msra.mxu1 %v9646_v54 }
 0x2b6   :  { %6380 = vmatprep.subr.mxu1 %v9638_v16 }
 0x2b7   :  { %6381 = vmatpush3.msra.mxu1 %v9647_v60 }
 0x2b8   :  { %6382 = vmatprep.subr.mxu1 %v9638_v16 }
 0x2b9   :  { %6383 = vmatpush3.msra.mxu1 %v9648_v50 }
 0x2ba   :  { %6384 = vmatprep.subr.mxu1 %v9638_v16 }
 0x2bb   :  { %6385 = vmatpush3.msra.mxu1 %v9649_v6 }
 0x2bc   :  { %6386 = vmatprep.subr.mxu1 %v9638_v16 }
 0x2bd   :  { %6387 = vmatpush3.msra.mxu1 %v9650_v43 }
 0x2be   :  { %6388 = vmatprep.subr.mxu1 %v9638_v16 }
 0x2bf   :  { %6389 = vmatpush3.msra.mxu1 %v9651_v13 }
 0x2c0   :  { %6390 = vmatprep.subr.mxu1 %v9638_v16 }
 0x2c1   :  { %6391 = vmatpush3.msra.mxu1 %v9652_v15 }
 0x2c2   :  { %6392 = vmatprep.subr.mxu1 %v9638_v16 }
 0x2c3   :  { %6393 = vmatpush3.msra.mxu1 %v9653_v56 }
 0x364   :  { %v4921_v7 = vpop.f32.mrf.mxu1 }
 0x365   :  { %v9292_v8 = vmul.f32 0.00024414063, %v4921_v7 }
 0x366   :  { %v6361_v38 = vpop.f32.mrf.mxu1 }
 0x367   :  { %v9298_v40 = vrot.slane %v9292_v8, %v9294_v1 }
 0x369   :  { %v4930_v11 = vsub.f32 %v9075_v17, %v9298_v40  ;;  %v4931_v9 = vsub.f32 %v9077_v39, %v9298_v40  ;;  %v4932_v48 = vsub.f32 %v9081_v57, %v9298_v40  ;;  %v4933_v31 = vsub.f32 %v9090_v62, %v9298_v40 }
 0x36a   :  { %v4934_v30 = vsub.f32 %v9096_v28, %v9298_v40  ;;  %v4935_v16 = vsub.f32 %v9106_v18, %v9298_v40  ;;  %v4936_v26 = vsub.f32 %v9110_v45, %v9298_v40  ;;  %v4937_v0 = vsub.f32 %v9118_v42, %v9298_v40 }
 0x36b   :  { %v4962_v29 = vmul.f32 %v4930_v11, %v4930_v11  ;;  %v4963_v53 = vmul.f32 %v4931_v9, %v4931_v9  ;;  %v4964_v10 = vmul.f32 %v4932_v48, %v4932_v48  ;;  %v4965_v23 = vmul.f32 %v4933_v31, %v4933_v31 }
 0x36c   :  { %v4966_v33 = vmul.f32 %v4934_v30, %v4934_v30  ;;  %v4967_v51 = vmul.f32 %v4935_v16, %v4935_v16  ;;  %v4938_v60 = vsub.f32 %v9124_v22, %v9298_v40  ;;  %v4968_v50 = vmul.f32 %v4936_v26, %v4936_v26 }
 0x36d   :  { %v4994_v19 = vadd.f32 %v4963_v53, %v4962_v29  ;;  %v4939_v43 = vsub.f32 %v9134_v5, %v9298_v40  ;;  %v4969_v13 = vmul.f32 %v4937_v0, %v4937_v0  ;;  %v4940_v56 = vsub.f32 %v9138_v55, %v9298_v40 }
 0x36e   :  { %v4970_v24 = vmul.f32 %v4938_v60, %v4938_v60  ;;  %v4941_v27 = vsub.f32 %v9146_v32, %v9298_v40  ;;  %v4942_v9 = vsub.f32 %v9152_v35, %v9298_v40  ;;  %v4943_v53 = vsub.f32 %v9162_v46, %v9298_v40 }
 0x36f   :  { %v4995_v61 = vadd.f32 %v4994_v19, %v4964_v10  ;;  %v4971_v38 = vmul.f32 %v4939_v43, %v4939_v43  ;;  %v4972_v48 = vmul.f32 %v4940_v56, %v4940_v56  ;;  %v4944_v10 = vsub.f32 %v9166_v14, %v9298_v40 }
 0x370   :  { %v4973_v31 = vmul.f32 %v4941_v27, %v4941_v27  ;;  %v4974_v19 = vmul.f32 %v4942_v9, %v4942_v9 }
 0x371   :  { %v4996_v58 = vadd.f32 %v4995_v61, %v4965_v23  ;;  %v4945_v23 = vsub.f32 %v9172_v37, %v9298_v40  ;;  %v4975_v61 = vmul.f32 %v4943_v53, %v4943_v53 }
 0x373   :  { %v4997_v54 = vadd.f32 %v4996_v58, %v4966_v33  ;;  %v4946_v33 = vsub.f32 %v9178_v63, %v9298_v40  ;;  %v4976_v58 = vmul.f32 %v4944_v10, %v4944_v10 }
 0x375   :  { %v4998_v6 = vadd.f32 %v4997_v54, %v4967_v51  ;;  %v4947_v51 = vsub.f32 %v9186_v4, %v9298_v40  ;;  %v4977_v54 = vmul.f32 %v4945_v23, %v4945_v23 }
 0x377   :  { %v4999_v15 = vadd.f32 %v4998_v6, %v4968_v50  ;;  %v4948_v50 = vsub.f32 %v9190_v49, %v9298_v40  ;;  %v4978_v6 = vmul.f32 %v4946_v33, %v4946_v33 }
 0x379   :  { %v5000_v7 = vadd.f32 %v4999_v15, %v4969_v13  ;;  %v4949_v13 = vsub.f32 %v9196_v59, %v9298_v40  ;;  %v4979_v15 = vmul.f32 %v4947_v51, %v4947_v51 }
 0x37b   :  { %v5001_v11 = vadd.f32 %v5000_v7, %v4970_v24  ;;  %v4950_v24 = vsub.f32 %v9202_v25, %v9298_v40  ;;  %v4980_v7 = vmul.f32 %v4948_v50, %v4948_v50 }
 0x37d   :  { %v5002_v29 = vadd.f32 %v5001_v11, %v4971_v38  ;;  %v4951_v38 = vsub.f32 %v9210_v2, %v9298_v40  ;;  %v4981_v11 = vmul.f32 %v4949_v13, %v4949_v13 }
 0x37f   :  { %v5003_v30 = vadd.f32 %v5002_v29, %v4972_v48  ;;  %v4952_v48 = vsub.f32 %v9214_v52, %v9298_v40  ;;  %v4982_v29 = vmul.f32 %v4950_v24, %v4950_v24 }
 0x381   :  { %v5004_v16 = vadd.f32 %v5003_v30, %v4973_v31  ;;  %v4953_v31 = vsub.f32 %v9220_v34, %v9298_v40  ;;  %v4983_v30 = vmul.f32 %v4951_v38, %v4951_v38 }
 0x383   :  { %v5005_v26 = vadd.f32 %v5004_v16, %v4974_v19  ;;  %v4954_v19 = vsub.f32 %v9226_v36, %v9298_v40  ;;  %v4984_v16 = vmul.f32 %v4952_v48, %v4952_v48 }
 0x385   :  { %v5006_v0 = vadd.f32 %v5005_v26, %v4975_v61  ;;  %v4955_v61 = vsub.f32 %v9233_v12, %v9298_v40  ;;  %v4985_v26 = vmul.f32 %v4953_v31, %v4953_v31 }
 0x387   :  { %v5007_v60 = vadd.f32 %v5006_v0, %v4976_v58  ;;  %v4956_v58 = vsub.f32 %v9235_v21, %v9298_v40  ;;  %v4986_v0 = vmul.f32 %v4954_v19, %v4954_v19 }
 0x389   :  { %v5008_v43 = vadd.f32 %v5007_v60, %v4977_v54  ;;  %v4957_v54 = vsub.f32 %v9239_v47, %v9298_v40  ;;  %v4987_v60 = vmul.f32 %v4955_v61, %v4955_v61 }
 0x38b   :  { %v5009_v56 = vadd.f32 %v5008_v43, %v4978_v6  ;;  %v4958_v6 = vsub.f32 %v9243_v3, %v9298_v40  ;;  %v4988_v43 = vmul.f32 %v4956_v58, %v4956_v58 }
 0x38d   :  { %v5010_v27 = vadd.f32 %v5009_v56, %v4979_v15  ;;  %v4959_v15 = vsub.f32 %v9249_v41, %v9298_v40  ;;  %v4989_v56 = vmul.f32 %v4957_v54, %v4957_v54 }
 0x38f   :  { %v5011_v9 = vadd.f32 %v5010_v27, %v4980_v7  ;;  %v4960_v7 = vsub.f32 %v9251_v20, %v9298_v40  ;;  %v4990_v27 = vmul.f32 %v4958_v6, %v4958_v6  ;;  %v5106_v6 = vld [vmem:[%s9541_s4] sm:$0x1] }
 0x391   :  { %v5012_v53 = vadd.f32 %v5011_v9, %v4981_v11  ;;  %v4961_v11 = vsub.f32 %v9255_v44, %v9298_v40  ;;  %v4991_v9 = vmul.f32 %v4959_v15, %v4959_v15  ;;  %v5102_v40 = vld [vmem:[%s9540_s3] sm:$0x1] }
 0x393   :  { %v5013_v10 = vadd.f32 %v5012_v53, %v4982_v29  ;;  %v4992_v29 = vmul.f32 %v4960_v7, %v4960_v7  ;;  %v4993_v31 = vmul.f32 %v4961_v11, %v4961_v11 }
 0x395   :  { %v5014_v23 = vadd.f32 %v5013_v10, %v4983_v30 }
 0x397   :  { %v5015_v33 = vadd.f32 %v5014_v23, %v4984_v16 }
 0x399   :  { %v5016_v51 = vadd.f32 %v5015_v33, %v4985_v26 }
 0x39b   :  { %v5017_v50 = vadd.f32 %v5016_v51, %v4986_v0 }
 0x39d   :  { %v5018_v13 = vadd.f32 %v5017_v50, %v4987_v60 }
 0x39f   :  { %v5019_v24 = vadd.f32 %v5018_v13, %v4988_v43 }
 0x3a1   :  { %v5020_v38 = vadd.f32 %v5019_v24, %v4989_v56 }
 0x3a3   :  { %v5021_v48 = vadd.f32 %v5020_v38, %v4990_v27 }
 0x3a5   :  { %v5022_v53 = vadd.f32 %v5021_v48, %v4991_v9 }
 0x3a7   :  { %v5023_v30 = vadd.f32 %v5022_v53, %v4992_v29 }
 0x3a9   :  { %v5024_v10 = vadd.f32 %v5023_v30, %v4993_v31 }
 0x3ab   :  { %v5025_v19 = vrot.slane %v5024_v10, 4 }
 0x3ad   :  { %v5026_v16 = vadd.f32 %v5025_v19, %v5024_v10 }
 0x3af   :  { %v5027_v23 = vrot.slane %v5026_v16, 2 }
 0x3b1   :  { %v5028_v61 = vadd.f32 %v5027_v23, %v5026_v16 }
 0x3b3   :  { %v5029_v26 = vrot.slane %v5028_v61, 1 }
 0x3b5   :  { %v5030_v33 = vadd.f32 %v5029_v26, %v5028_v61 }
 0x3b7   :  { %6395 = vmatmul.mubr.f32.vlgmr.msra.gmra.mxu1 %v5030_v33 }
 0x477   :  { %v5097_v58 = vpop.f32.mrf.mxu1 }
 0x478   :  { %v5101_v0 = vmul.f32 0.00024414063, %v5097_v58 }
 0x479   :  { %v6396_v51 = vpop.f32.mrf.mxu1 }
 0x47a   :  { %v5103_v54 = vadd.f32 0.001, %v5101_v0 }
 0x47c   :  { %6664 = vrsqrt.f32 %v5103_v54 }
 0x489   :  { %v6665_v60 = vpop.eup %6664 }
 0x48a   :  { %v5105_v50 = vmul.f32 %v6665_v60, %v5102_v40 }
 0x48c   :  { %v5107_v43 = vmul.f32 %v5105_v50, %v9292_v8  ;;  %v5113_v13 = vrot.slane %v5105_v50, %v9294_v1 }
 0x48e   :  { %v5108_v15 = vsub.f32 %v5106_v6, %v5107_v43  ;;  %v5115_v56 = vmul.f32 %v5113_v13, %v9075_v17  ;;  %v5116_v24 = vmul.f32 %v5113_v13, %v9077_v39  ;;  %v5117_v7 = vmul.f32 %v5113_v13, %v9081_v57 }
 0x48f   :  { %v5118_v27 = vmul.f32 %v5113_v13, %v9090_v62  ;;  %v5119_v38 = vmul.f32 %v5113_v13, %v9096_v28  ;;  %v5120_v11 = vmul.f32 %v5113_v13, %v9106_v18  ;;  %v5121_v9 = vmul.f32 %v5113_v13, %v9110_v45 }
 0x490   :  { %v5122_v48 = vmul.f32 %v5113_v13, %v9118_v42  ;;  %v5123_v8 = vmul.f32 %v5113_v13, %v9124_v22  ;;  %v5124_v29 = vmul.f32 %v5113_v13, %v9134_v5  ;;  %v5125_v17 = vmul.f32 %v5113_v13, %v9138_v55 }
 0x491   :  { %v5126_v39 = vmul.f32 %v5113_v13, %v9146_v32  ;;  %v5127_v57 = vmul.f32 %v5113_v13, %v9152_v35  ;;  %v5128_v62 = vmul.f32 %v5113_v13, %v9162_v46  ;;  %v5129_v28 = vmul.f32 %v5113_v13, %v9166_v14 }
 0x492   :  { %v5130_v18 = vmul.f32 %v5113_v13, %v9172_v37  ;;  %v5131_v45 = vmul.f32 %v5113_v13, %v9178_v63  ;;  %v5132_v42 = vmul.f32 %v5113_v13, %v9186_v4  ;;  %v5133_v22 = vmul.f32 %v5113_v13, %v9190_v49 }
 0x493   :  { %v5134_v5 = vmul.f32 %v5113_v13, %v9196_v59  ;;  %v5135_v55 = vmul.f32 %v5113_v13, %v9202_v25  ;;  %v5136_v32 = vmul.f32 %v5113_v13, %v9210_v2  ;;  %v5137_v35 = vmul.f32 %v5113_v13, %v9214_v52 }
 0x494   :  { %v5138_v46 = vmul.f32 %v5113_v13, %v9220_v34  ;;  %v5139_v14 = vmul.f32 %v5113_v13, %v9226_v36  ;;  %v5140_v37 = vmul.f32 %v5113_v13, %v9233_v12  ;;  %v5141_v63 = vmul.f32 %v5113_v13, %v9235_v21 }
 0x495   :  { %v5142_v4 = vmul.f32 %v5113_v13, %v9239_v47  ;;  %v5151_v49 = vrot.slane %v5108_v15, %v9294_v1  ;;  %v5143_v59 = vmul.f32 %v5113_v13, %v9243_v3  ;;  %v5144_v25 = vmul.f32 %v5113_v13, %v9249_v41 }
 0x496   :  { %v5145_v2 = vmul.f32 %v5113_v13, %v9251_v20  ;;  %v5146_v52 = vmul.f32 %v5113_v13, %v9255_v44 }
 0x497   :  { %v5153_v53 = vadd.f32 %v5151_v49, %v5115_v56  ;;  %v5154_v34 = vadd.f32 %v5151_v49, %v5116_v24  ;;  %v5155_v31 = vadd.f32 %v5151_v49, %v5117_v7  ;;  %v5156_v36 = vadd.f32 %v5151_v49, %v5118_v27 }
 0x498   :  { %v5157_v30 = vadd.f32 %v5151_v49, %v5119_v38  ;;  %v5158_v12 = vadd.f32 %v5151_v49, %v5120_v11  ;;  %v5159_v10 = vadd.f32 %v5151_v49, %v5121_v9  ;;  %v5160_v21 = vadd.f32 %v5151_v49, %v5122_v48 }
 0x499   :  { %v5161_v19 = vadd.f32 %v5151_v49, %v5123_v8  ;;  %v5162_v47 = vadd.f32 %v5151_v49, %v5124_v29  ;;  %v5163_v16 = vadd.f32 %v5151_v49, %v5125_v17  ;;  %v5164_v1 = vadd.f32 %v5151_v49, %v5126_v39 }
 0x49a   :  { %v5165_v23 = vadd.f32 %v5151_v49, %v5127_v57  ;;  %v5166_v3 = vadd.f32 %v5151_v49, %v5128_v62  ;;  %v5167_v61 = vadd.f32 %v5151_v49, %v5129_v28  ;;  %v5168_v41 = vadd.f32 %v5151_v49, %v5130_v18 }
 0x49b   :  { %v5169_v26 = vadd.f32 %v5151_v49, %v5131_v45  ;;  %v5170_v20 = vadd.f32 %v5151_v49, %v5132_v42  ;;  %v5171_v33 = vadd.f32 %v5151_v49, %v5133_v22  ;;  %v5172_v44 = vadd.f32 %v5151_v49, %v5134_v5 }
 0x49c   :  { %v9405_v58 = vadd.f32 %v5151_v49, %v5135_v55  ;;  %v9407_v0 = vadd.f32 %v5151_v49, %v5136_v32  ;;  %v9409_v51 = vadd.f32 %v5151_v49, %v5137_v35  ;;  %v9411_v54 = vadd.f32 %v5151_v49, %v5138_v46 }
 0x49d   :  { %v9413_v40 = vadd.f32 %v5151_v49, %v5139_v14  ;;  %v9415_v60 = vadd.f32 %v5151_v49, %v5140_v37  ;;  %v9417_v50 = vadd.f32 %v5151_v49, %v5141_v63  ;;  %v9419_v6 = vadd.f32 %v5151_v49, %v5142_v4 }
 0x49e   :  { %v9421_v43 = vadd.f32 %v5151_v49, %v5143_v59  ;;  %v9423_v13 = vadd.f32 %v5151_v49, %v5144_v25  ;;  %v9425_v15 = vadd.f32 %v5151_v49, %v5145_v2  ;;  %v9427_v56 = vadd.f32 %v5151_v49, %v5146_v52 }
 0x49f   :  { %v5185_v24 = vmax.f32 %v5153_v53, 0.0  ;;  %v5186_v7 = vmax.f32 %v5154_v34, 0.0  ;;  %v5187_v27 = vmax.f32 %v5155_v31, 0.0  ;;  %v5188_v38 = vmax.f32 %v5156_v36, 0.0 }
 0x4a0   :  { %v5189_v11 = vmax.f32 %v5157_v30, 0.0  ;;  %v5190_v9 = vmax.f32 %v5158_v12, 0.0  ;;  %v5191_v48 = vmax.f32 %v5159_v10, 0.0  ;;  %v5192_v8 = vmax.f32 %v5160_v21, 0.0 }
 0x4a1   :  { %v5193_v29 = vmax.f32 %v5161_v19, 0.0  ;;  %v5194_v17 = vmax.f32 %v5162_v47, 0.0  ;;  %v5195_v39 = vmax.f32 %v5163_v16, 0.0  ;;  %v5196_v57 = vmax.f32 %v5164_v1, 0.0  ;;  %5217 = vst [vmem:[%s9542_s5] sm:$0xff] %v5185_v24  ;;  %5218 = vst [vmem:[%s9542_s5 + $0x8] sm:$0xff] %v5186_v7 }
 0x4a2   :  { %5219 = vst [vmem:[%s9542_s5 + $0x10] sm:$0xff] %v5187_v27  ;;  %5220 = vst [vmem:[%s9542_s5 + $0x18] sm:$0xff] %v5188_v38  ;;  %v5197_v62 = vmax.f32 %v5165_v23, 0.0  ;;  %v5198_v28 = vmax.f32 %v5166_v3, 0.0  ;;  %v5199_v18 = vmax.f32 %v5167_v61, 0.0  ;;  %v5200_v45 = vmax.f32 %v5168_v41, 0.0 }
 0x4a3   :  { %5221 = vst [vmem:[%s9542_s5 + $0x20] sm:$0xff] %v5189_v11  ;;  %5222 = vst [vmem:[%s9542_s5 + $0x28] sm:$0xff] %v5190_v9  ;;  %v5201_v42 = vmax.f32 %v5169_v26, 0.0  ;;  %v5202_v22 = vmax.f32 %v5170_v20, 0.0  ;;  %v5203_v5 = vmax.f32 %v5171_v33, 0.0  ;;  %v5204_v55 = vmax.f32 %v5172_v44, 0.0 }
 0x4a4   :  { %5223 = vst [vmem:[%s9542_s5 + $0x30] sm:$0xff] %v5191_v48  ;;  %5224 = vst [vmem:[%s9542_s5 + $0x38] sm:$0xff] %v5192_v8  ;;  %v5205_v32 = vmax.f32 %v9405_v58, 0.0  ;;  %v5206_v35 = vmax.f32 %v9407_v0, 0.0  ;;  %v5207_v46 = vmax.f32 %v9409_v51, 0.0  ;;  %v5208_v14 = vmax.f32 %v9411_v54, 0.0 }
 0x4a5   :  { %5225 = vst [vmem:[%s9542_s5 + $0x40] sm:$0xff] %v5193_v29  ;;  %5226 = vst [vmem:[%s9542_s5 + $0x48] sm:$0xff] %v5194_v17  ;;  %v5209_v37 = vmax.f32 %v9413_v40, 0.0  ;;  %v5210_v63 = vmax.f32 %v9415_v60, 0.0  ;;  %v5211_v4 = vmax.f32 %v9417_v50, 0.0  ;;  %v5212_v49 = vmax.f32 %v9419_v6, 0.0 }
 0x4a6   :  { %5227 = vst [vmem:[%s9542_s5 + $0x50] sm:$0xff] %v5195_v39  ;;  %5228 = vst [vmem:[%s9542_s5 + $0x58] sm:$0xff] %v5196_v57  ;;  %v5213_v59 = vmax.f32 %v9421_v43, 0.0  ;;  %v5214_v25 = vmax.f32 %v9423_v13, 0.0  ;;  %v5215_v2 = vmax.f32 %v9425_v15, 0.0  ;;  %v5216_v52 = vmax.f32 %v9427_v56, 0.0 }
 0x4a7   :  { %5229 = vst [vmem:[%s9542_s5 + $0x60] sm:$0xff] %v5197_v62  ;;  %5230 = vst [vmem:[%s9542_s5 + $0x68] sm:$0xff] %v5198_v28 }
 0x4a8   :  { %5231 = vst [vmem:[%s9542_s5 + $0x70] sm:$0xff] %v5199_v18  ;;  %5232 = vst [vmem:[%s9542_s5 + $0x78] sm:$0xff] %v5200_v45 }
 0x4a9   :  { %5233 = vst [vmem:[%s9542_s5 + $0x80] sm:$0xff] %v5201_v42  ;;  %5234 = vst [vmem:[%s9542_s5 + $0x88] sm:$0xff] %v5202_v22 }
 0x4aa   :  { %5235 = vst [vmem:[%s9542_s5 + $0x90] sm:$0xff] %v5203_v5  ;;  %5236 = vst [vmem:[%s9542_s5 + $0x98] sm:$0xff] %v5204_v55 }
 0x4ab   :  { %5237 = vst [vmem:[%s9542_s5 + $0xa0] sm:$0xff] %v5205_v32  ;;  %5238 = vst [vmem:[%s9542_s5 + $0xa8] sm:$0xff] %v5206_v35 }
 0x4ac   :  { %5239 = vst [vmem:[%s9542_s5 + $0xb0] sm:$0xff] %v5207_v46  ;;  %5240 = vst [vmem:[%s9542_s5 + $0xb8] sm:$0xff] %v5208_v14 }
 0x4ad   :  { %5241 = vst [vmem:[%s9542_s5 + $0xc0] sm:$0xff] %v5209_v37  ;;  %5242 = vst [vmem:[%s9542_s5 + $0xc8] sm:$0xff] %v5210_v63 }
 0x4ae   :  { %5243 = vst [vmem:[%s9542_s5 + $0xd0] sm:$0xff] %v5211_v4  ;;  %5244 = vst [vmem:[%s9542_s5 + $0xd8] sm:$0xff] %v5212_v49 }
 0x4af   :  { %5245 = vst [vmem:[%s9542_s5 + $0xe0] sm:$0xff] %v5213_v59  ;;  %5246 = vst [vmem:[%s9542_s5 + $0xe8] sm:$0xff] %v5214_v25 }
 0x4b0   :  { %5247 = vst [vmem:[%s9542_s5 + $0xf0] sm:$0xff] %v5215_v2  ;;  %5248 = vst [vmem:[%s9542_s5 + $0xf8] sm:$0xff] %v5216_v52 }

</bundles_post_ra>
